<compile_context>
chip_gen: v5e
topology: v5e:2x2
jax: 0.10.0
libtpu: 0.0.40
codegen_flags: <defaults>
</compile_context>

<pallas_src>
import functools

import jax
import jax.numpy as jnp
from jax import lax
from jax.experimental import pallas as pl
from jax.experimental.pallas import tpu as pltpu

PAD_IDX, SOS_IDX, EOS_IDX = 0, 1, 2


def _round_up(x, m):
    return ((x + m - 1) // m) * m


def _pick_time_block(seq_len, max_blk=32):
    """Time steps per grid iteration (largest divisor of seq_len <= max_blk)."""
    # TODO(synk): support non-divisor t_blk via a masked remainder block (valid step count
    # in SMEM) so long prime-length sequences still pipeline in large fixed blocks.
    if seq_len <= max_blk:
        return seq_len
    for t in range(max_blk, 0, -1):
        if seq_len % t == 0:
            return t
    return seq_len


def _pick_row_block(n, max_rows=1024):
    """Prenet row tile: multiple of 8 dividing n (or n itself when small)."""
    if n <= max_rows:
        return n
    for r in range(max_rows - max_rows % 8, 7, -8):
        if n % r == 0:
            return r
    return n


def _use_static_unroll(t_blk, batch_p, hidden_p):
    # Rough vreg footprint of a fully unrolled time block: gates occupy
    # (4*Hp/128 lanes) x (Bp/8 sublanes) vregs per step; past ~half the 64-vreg file,
    # switch to fori_loop so live ranges stay bounded (LLO still sees a visible loop).
    vregs_per_step = (4 * hidden_p // 128) * max(1, batch_p // 8)
    return t_blk * vregs_per_step <= 32


def _gate_pad_cols(w, h, hp):
    """[..., 4h] -> [..., 4hp]: zero-pad each of the 4 gate column blocks to hp lanes."""
    if hp == h:
        return w
    pads = [(0, 0)] * (w.ndim - 1) + [(0, hp - h)]
    return jnp.concatenate(
        [jnp.pad(w[..., k * h:(k + 1) * h], pads) for k in range(4)], axis=-1)


# ----------------------------- Pallas kernels -----------------------------

def _prenet_gates_kernel(emb_ref, prew_ref, preb_ref, wih_ref, b_ref, gates_ref):
    """Fused prenet (Linear+ReLU) + LSTM input projection for one stream (enc or dec).

    emb_ref:  [1, R, E] bf16   wih_ref: [1, e_in, 4Hp] bf16   b_ref: [1, 1, 4Hp] f32
    gates_ref:[1, R, 4Hp] bf16 (lane-dense: 4Hp is a multiple of 128)
    """
    pre = jnp.dot(emb_ref[0], prew_ref[...], preferred_element_type=jnp.float32)
    pre = jnp.maximum(pre + preb_ref[...], 0.0)
    gates = jnp.dot(pre.astype(wih_ref.dtype), wih_ref[0],
                    preferred_element_type=jnp.float32) + b_ref[0]
    gates_ref[0] = gates.astype(gates_ref.dtype)


def prenet_input_gates(emb_both, pre_w, pre_b, wih_both, b_both):
    """emb_both [2, N, E] bf16 (stream 0 = encoder tokens, 1 = decoder teacher tokens);
    returns gates_x [2, N, 4Hp] bf16 = relu(emb @ pre_w + pre_b) @ W_ih + (b_ih + b_hh)."""
    n_stream, N, E = emb_both.shape
    e_in = pre_w.shape[1]
    G = wih_both.shape[2]
    r_blk = _pick_row_block(N)
    return pl.pallas_call(
        _prenet_gates_kernel,
        out_shape=jax.ShapeDtypeStruct((n_stream, N, G), jnp.bfloat16),
        grid=(n_stream, N // r_blk),
        in_specs=[pl.BlockSpec((1, r_blk, E), lambda s, r: (s, r, 0)),
                  pl.BlockSpec((E, e_in), lambda s, r: (0, 0)),
                  pl.BlockSpec((1, e_in), lambda s, r: (0, 0)),
                  pl.BlockSpec((1, e_in, G), lambda s, r: (s, 0, 0)),
                  pl.BlockSpec((1, 1, G), lambda s, r: (s, 0, 0))],
        out_specs=pl.BlockSpec((1, r_blk, G), lambda s, r: (s, r, 0)),
        compiler_params=pltpu.CompilerParams(
            dimension_semantics=("parallel", "parallel")),
    )(emb_both, pre_w, pre_b.reshape(1, e_in), wih_both, b_both)


def _lstm_final_kernel(gx_ref, whh_ref, len_ref, hN_ref, cN_ref, *, use_fori):
    """Encoder LSTM: only (h_n, c_n), accumulated directly in the resident output blocks.

    gx_ref: [T_BLK, Bp, 4Hp] bf16   whh_ref: [Hp, 4Hp] bf16   len_ref: [Bp, 1] int32
    hN_ref/cN_ref: [Bp, Hp] f32 (constant index_map -> VMEM-resident accumulators)
    """
    tb = pl.program_id(0)
    t_blk = gx_ref.shape[0]
    hp = whh_ref.shape[0]

    @pl.when(tb == 0)
    def _():
        hN_ref[...] = jnp.zeros_like(hN_ref)
        cN_ref[...] = jnp.zeros_like(cN_ref)

    def step(t, hc):
        h, c = hc
        gates = gx_ref[t].astype(jnp.float32) + jnp.dot(
            h.astype(whh_ref.dtype), whh_ref[...],
            preferred_element_type=jnp.float32)
        # gate-major, 128-lane-aligned slices: whole-vreg selects, no lane rotations
        i_g = jax.nn.sigmoid(gates[:, 0:hp])
        f_g = jax.nn.sigmoid(gates[:, hp:2 * hp])
        g_g = jnp.tanh(gates[:, 2 * hp:3 * hp])
        o_g = jax.nn.sigmoid(gates[:, 3 * hp:4 * hp])
        c_new = f_g * c + i_g * g_g
        h_new = o_g * jnp.tanh(c_new)
        # pack_padded_sequence semantics: freeze (h, c) past each row's length
        valid = (tb * t_blk + t) < len_ref[...]
        return jnp.where(valid, h_new, h), jnp.where(valid, c_new, c)

    # TODO(synk): hold whh in the MXU weight registers across the block
    # (pltpu.matmul_push_rhs / matmul_acc_lhs / matmul_pop) to drop per-step RHS pushes.
    h, c = hN_ref[...], cN_ref[...]
    if use_fori:
        h, c = lax.fori_loop(0, t_blk, step, (h, c), unroll=4)
    else:
        for t in range(t_blk):
            h, c = step(t, (h, c))
    hN_ref[...] = h
    cN_ref[...] = c


def lstm_encode_final(gates_x, whh, lens):
    """gates_x: [S, Bp, 4Hp] bf16 seq-major precomputed x@W_ih + b; returns (h_n, c_n) f32."""
    S, Bp, G = gates_x.shape
    Hp = whh.shape[0]
    t_blk = _pick_time_block(S)
    kernel = functools.partial(
        _lstm_final_kernel, use_fori=not _use_static_unroll(t_blk, Bp, Hp))
    # TODO(synk): for v7x production batches add a leading "parallel" batch-tile grid axis
    # so both TensorCores run independent half-batch recurrences.
    return pl.pallas_call(
        kernel,
        out_shape=(jax.ShapeDtypeStruct((Bp, Hp), jnp.float32),
                   jax.ShapeDtypeStruct((Bp, Hp), jnp.float32)),
        grid_spec=pltpu.PrefetchScalarGridSpec(
            num_scalar_prefetch=0,
            grid=(S // t_blk,),
            in_specs=[pl.BlockSpec((t_blk, Bp, G), lambda tb: (tb, 0, 0)),
                      pl.BlockSpec((Hp, G), lambda tb: (0, 0)),
                      pl.BlockSpec((Bp, 1), lambda tb: (0, 0))],
            out_specs=[pl.BlockSpec((Bp, Hp), lambda tb: (0, 0)),
                       pl.BlockSpec((Bp, Hp), lambda tb: (0, 0))]),
        compiler_params=pltpu.CompilerParams(
            dimension_semantics=("arbitrary",)),
    )(gates_x, whh, lens)


def _lstm_postnet_kernel(gx_ref, whh_ref, h0_ref, c0_ref, pw_ref, pb_ref,
                         out_ref, h_sc, c_sc, hblk_sc, *, use_fori):
    """Decoder LSTM (teacher forced) fused with the postnet linear.

    gx_ref: [T_BLK, Bp, 4Hp] bf16   whh_ref: [Hp, 4Hp] bf16
    pw_ref: [Hp, Vp] bf16   pb_ref: [1, Vp] f32
    hblk_sc: [T_BLK*Bp, Hp] bf16  (per-step slots 8-sublane aligned since Bp % 8 == 0)
    out_ref: [T_BLK*Bp, Vp] f32   (rows ordered (t, b); lane-dense, written in ONE store)
    """
    tb = pl.program_id(0)
    t_blk = gx_ref.shape[0]
    bp = h_sc.shape[0]
    hp = whh_ref.shape[0]

    @pl.when(tb == 0)
    def _():
        h_sc[...] = h0_ref[...]
        c_sc[...] = c0_ref[...]

    def step(t, hc):
        h, c = hc
        gates = gx_ref[t].astype(jnp.float32) + jnp.dot(
            h.astype(whh_ref.dtype), whh_ref[...],
            preferred_element_type=jnp.float32)
        i_g = jax.nn.sigmoid(gates[:, 0:hp])
        f_g = jax.nn.sigmoid(gates[:, hp:2 * hp])
        g_g = jnp.tanh(gates[:, 2 * hp:3 * hp])
        o_g = jax.nn.sigmoid(gates[:, 3 * hp:4 * hp])
        c = f_g * c + i_g * g_g
        h = o_g * jnp.tanh(c)
        # aligned full-tile scratch store (Bp multiple of 8 sublanes): no RMW / relayout
        start = t * bp if isinstance(t, int) else pl.multiple_of(t * bp, bp)
        hblk_sc[pl.ds(start, bp)] = h.astype(hblk_sc.dtype)
        return h, c

    h, c = h_sc[...], c_sc[...]
    if use_fori:
        h, c = lax.fori_loop(0, t_blk, step, (h, c), unroll=4)
    else:
        for t in range(t_blk):
            h, c = step(t, (h, c))
    h_sc[...] = h
    c_sc[...] = c

    # Postnet for the whole time block: one 2-D MXU matmul (T_BLK*Bp rows at once) and one
    # lane-dense, unmasked full-block store.
    logits = jnp.dot(hblk_sc[...], pw_ref[...],
                     preferred_element_type=jnp.float32) + pb_ref[...]
    out_ref[...] = logits.astype(out_ref.dtype)


def lstm_decode_postnet(gates_x, whh, h0, c0, post_w, post_b):
    """gates_x: [S, Bp, 4Hp] bf16; returns logits [S*Bp, Vp] f32, rows ordered (t, b)."""
    S, Bp, G = gates_x.shape
    Hp = whh.shape[0]
    Vp = post_w.shape[1]
    t_blk = _pick_time_block(S)
    kernel = functools.partial(
        _lstm_postnet_kernel, use_fori=not _use_static_unroll(t_blk, Bp, Hp))
    # TODO(synk): v7x VMEM budget at production sizes — single-buffer the grid-invariant
    # inputs (whh/h0/c0/post_w/post_b) via pipeline_mode=pl.Buffered(1), cap t_blk so that
    # 2*(t_blk*Bp*G*2) + 2*(t_blk*Bp*Vp*4) + Hp*Vp*2 + Hp*G*2 <= ~32 MiB, and tile Vp with an
    # extra grid axis once the vocab grows; set vmem_limit_bytes explicitly on v5e (16 MiB
    # scoped default).
    return pl.pallas_call(
        kernel,
        out_shape=jax.ShapeDtypeStruct((S * Bp, Vp), jnp.float32),
        grid_spec=pltpu.PrefetchScalarGridSpec(
            num_scalar_prefetch=0,
            grid=(S // t_blk,),
            in_specs=[pl.BlockSpec((t_blk, Bp, G), lambda tb: (tb, 0, 0)),
                      pl.BlockSpec((Hp, G), lambda tb: (0, 0)),
                      pl.BlockSpec((Bp, Hp), lambda tb: (0, 0)),
                      pl.BlockSpec((Bp, Hp), lambda tb: (0, 0)),
                      pl.BlockSpec((Hp, Vp), lambda tb: (0, 0)),
                      pl.BlockSpec((1, Vp), lambda tb: (0, 0))],
            out_specs=pl.BlockSpec((t_blk * Bp, Vp), lambda tb: (tb, 0)),
            scratch_shapes=[pltpu.VMEM((Bp, Hp), jnp.float32),
                            pltpu.VMEM((Bp, Hp), jnp.float32),
                            pltpu.VMEM((t_blk * Bp, Hp), jnp.bfloat16)]),
        compiler_params=pltpu.CompilerParams(
            dimension_semantics=("arbitrary",)),
    )(gates_x, whh, h0, c0, post_w, post_b)


# ----------------------------- Model glue -----------------------------

def init_params(key, vocab, emb_dim, e_in, hidden):
    ks = jax.random.split(key, 8)
    s = 0.1
    p = {}
    p['embed'] = s * jax.random.normal(ks[0], (vocab, emb_dim), jnp.float32)
    p['pre_w'] = s * jax.random.normal(ks[1], (emb_dim, e_in), jnp.float32)
    p['pre_b'] = jnp.zeros((e_in,), jnp.float32)
    p['enc_wih'] = s * jax.random.normal(ks[2], (e_in, 4 * hidden), jnp.float32)
    p['enc_whh'] = s * jax.random.normal(ks[3], (hidden, 4 * hidden), jnp.float32)
    p['enc_b'] = jnp.zeros((4 * hidden,), jnp.float32)
    p['dec_wih'] = s * jax.random.normal(ks[4], (e_in, 4 * hidden), jnp.float32)
    p['dec_whh'] = s * jax.random.normal(ks[5], (hidden, 4 * hidden), jnp.float32)
    p['dec_b'] = jnp.zeros((4 * hidden,), jnp.float32)
    p['post_w'] = s * jax.random.normal(ks[6], (hidden, vocab), jnp.float32)
    p['post_b'] = jnp.zeros((vocab,), jnp.float32)
    return p


def text_rnn_forward(params, text, text_lens):
    """TextRNN.forward(text, text_len): encode -> teacher-forced decode_sequence."""
    B, S = text.shape
    emb_dim = params['embed'].shape[1]
    H = params['enc_whh'].shape[0]
    V = params['post_w'].shape[1]
    Hp = _round_up(H, 128)   # gate width padded to a 128-lane boundary
    Vp = _round_up(V, 128)   # lane-dense postnet output, sliced back to V at the end
    Bp = _round_up(B, 8)     # sublane-aligned batch for the recurrent path (no-op if B%8==0)

    # preprocess(): pad mask (unused downstream: no attention with d_attn=None)
    pad_mask = (text == PAD_IDX)                          # noqa: F841

    # Seq-major layout + batch padding done on the tiny int32 token matrix, so NO float
    # tensor is transposed or re-padded in the wrapper. Decoder teacher input =
    # [SOS, text[:, :-1]] (teacher_ratio=1).
    text_p = jnp.pad(text, ((0, Bp - B), (0, 0)), constant_values=PAD_IDX)   # [Bp, S]
    tok_enc = text_p.T                                                        # [S, Bp]
    tok_dec = jnp.concatenate(
        [jnp.full((1, Bp), SOS_IDX, text.dtype), tok_enc[:-1]], axis=0)       # [S, Bp]
    tok_all = jnp.concatenate([tok_enc, tok_dec], axis=0)                     # [2S, Bp]
    # TODO(synk): fuse this tiny-table gather into the prenet kernel to skip one HBM
    # round-trip of the [2S, Bp, E] embedding tensor.
    emb_all = params['embed'].astype(jnp.bfloat16)[tok_all]                   # [2S, Bp, E]
    emb_both = emb_all.reshape(2, S * Bp, emb_dim)        # stream 0 = enc, 1 = dec

    # Gate-major, 128-lane-padded (Hp) weights; bf16 MXU operands, f32 biases/accum.
    enc_wih = _gate_pad_cols(params['enc_wih'], H, Hp)
    dec_wih = _gate_pad_cols(params['dec_wih'], H, Hp)
    enc_whh = _gate_pad_cols(jnp.pad(params['enc_whh'], ((0, Hp - H), (0, 0))), H, Hp)
    dec_whh = _gate_pad_cols(jnp.pad(params['dec_whh'], ((0, Hp - H), (0, 0))), H, Hp)
    wih_both = jnp.stack([enc_wih, dec_wih], axis=0).astype(jnp.bfloat16)
    b_both = jnp.stack([_gate_pad_cols(params['enc_b'], H, Hp),
                        _gate_pad_cols(params['dec_b'], H, Hp)], axis=0)[:, None, :]

    # Fused prenet FC+ReLU and LSTM input projection for BOTH streams in one kernel:
    # gates_x = relu(emb @ pre_w + pre_b) @ W_ih + (b_ih + b_hh), hoisted out of recurrence.
    gates_both = prenet_input_gates(emb_both, params['pre_w'].astype(jnp.bfloat16),
                                    params['pre_b'], wih_both, b_both)   # [2, S*Bp, 4Hp] bf16
    enc_gx = gates_both[0].reshape(S, Bp, 4 * Hp)
    dec_gx = gates_both[1].reshape(S, Bp, 4 * Hp)

    # encode(): encoder hidden sequence is unused downstream (no attention), so the encoder
    # kernel only produces (h_n, c_n); per-row lengths give pack_padded_sequence semantics.
    lens = jnp.pad(text_lens.astype(jnp.int32), (0, Bp - B)).reshape(Bp, 1)
    h_n, c_n = lstm_encode_final(enc_gx, enc_whh.astype(jnp.bfloat16), lens)

    # decode_sequence() with teacher_ratio=1 + postprocess(distrib=False): decoder LSTM
    # initialized from encoder state, postnet fused in, lane-dense block output.
    post_w = jnp.pad(params['post_w'],
                     ((0, Hp - H), (0, Vp - V))).astype(jnp.bfloat16)
    post_b = jnp.pad(params['post_b'], (0, Vp - V)).reshape(1, Vp)
    logits = lstm_decode_postnet(dec_gx, dec_whh.astype(jnp.bfloat16), h_n, c_n,
                                 post_w, post_b)                          # [S*Bp, Vp]
    logits = logits.reshape(S, Bp, Vp)[:, :B, :V]                         # [S, B, V]
    return jnp.transpose(logits, (1, 0, 2))              # [batch, teacher_len, n_phonemes]


if __name__ == "__main__":
    key = jax.random.PRNGKey(0)
    B, S = 2, 8
    vocab, emb_dim, e_in, hidden = 64, 16, 32, 32

    pkey, tkey = jax.random.split(key)
    params = init_params(pkey, vocab, emb_dim, e_in, hidden)
    text = jax.random.randint(tkey, (B, S), 3, vocab, dtype=jnp.int32)
    text_lens = jnp.full((B,), S, dtype=jnp.int32)

    pred = jax.jit(text_rnn_forward)(params, text, text_lens)
    jax.block_until_ready(pred)
    assert pred.shape == (B, S, vocab) and pred.dtype == jnp.float32
    print("KERNEL_OK")
</pallas_src>

<mosaic_0001>
module attributes {stable_mosaic.version = 11 : i64} {
  func.func @_prenet_gates_kernel(%arg0: i32, %arg1: i32, %arg2: memref<1x64x16xbf16, #tpu.memory_space<vmem>>, %arg3: memref<16x32xbf16, #tpu.memory_space<vmem>>, %arg4: memref<1x32xf32, #tpu.memory_space<vmem>>, %arg5: memref<1x32x512xbf16, #tpu.memory_space<vmem>>, %arg6: memref<1x1x512xf32, #tpu.memory_space<vmem>>, %arg7: memref<1x64x512xbf16, #tpu.memory_space<vmem>>) attributes {dimension_semantics = [#tpu.dimension_semantics<parallel>, #tpu.dimension_semantics<parallel>], iteration_bounds = array<i64: 2, 1>, scalar_prefetch = 0 : i64, scratch_operands = 0 : i64, tpu.core_type = #tpu.core_type<tc>, window_params = [{transform_indices = @transform_0, window_bounds = array<i64: 1, 64, 16>}, {pipeline_mode = #tpu.pipeline_mode<synchronous>, transform_indices = @transform_1, window_bounds = array<i64: 16, 32>}, {pipeline_mode = #tpu.pipeline_mode<synchronous>, transform_indices = @transform_2, window_bounds = array<i64: 1, 32>}, {transform_indices = @transform_3, window_bounds = array<i64: 1, 32, 512>}, {transform_indices = @transform_4, window_bounds = array<i64: 1, 1, 512>}, {transform_indices = @transform_5, window_bounds = array<i64: 1, 64, 512>}]} {
    %c0 = arith.constant 0 : index
    %c0_0 = arith.constant 0 : index
    %c0_1 = arith.constant 0 : index
    %0 = vector.load %arg2[%c0, %c0_0, %c0_1] : memref<1x64x16xbf16, #tpu.memory_space<vmem>>, vector<1x64x16xbf16>
    %1 = vector.shape_cast %0 : vector<1x64x16xbf16> to vector<64x16xbf16>
    %c0_2 = arith.constant 0 : index
    %c0_3 = arith.constant 0 : index
    %2 = vector.load %arg3[%c0_2, %c0_3] : memref<16x32xbf16, #tpu.memory_space<vmem>>, vector<16x32xbf16>
    %cst = arith.constant dense<0.000000e+00> : vector<64x32xf32>
    %3 = tpu.matmul %1, %2, %cst {dimension_numbers = #tpu.dot_dimension_numbers<[1], [0], [0], [1], [0, 0, 1, 1], [], []>} : vector<64x16xbf16>, vector<16x32xbf16>, vector<64x32xf32> -> vector<64x32xf32>
    %c0_4 = arith.constant 0 : index
    %c0_5 = arith.constant 0 : index
    %4 = vector.load %arg4[%c0_4, %c0_5] : memref<1x32xf32, #tpu.memory_space<vmem>>, vector<1x32xf32>
    %5 = vector.broadcast %4 : vector<1x32xf32> to vector<64x32xf32>
    %6 = arith.addf %3, %5 : vector<64x32xf32>
    %cst_6 = arith.constant 0.000000e+00 : f32
    %7 = vector.broadcast %cst_6 : f32 to vector<64x32xf32>
    %8 = arith.maximumf %6, %7 : vector<64x32xf32>
    %9 = arith.truncf %8 : vector<64x32xf32> to vector<64x32xbf16>
    %c0_7 = arith.constant 0 : index
    %c0_8 = arith.constant 0 : index
    %c0_9 = arith.constant 0 : index
    %10 = vector.load %arg5[%c0_7, %c0_8, %c0_9] : memref<1x32x512xbf16, #tpu.memory_space<vmem>>, vector<1x32x512xbf16>
    %11 = vector.shape_cast %10 : vector<1x32x512xbf16> to vector<32x512xbf16>
    %cst_10 = arith.constant dense<0.000000e+00> : vector<64x512xf32>
    %12 = tpu.matmul %9, %11, %cst_10 {dimension_numbers = #tpu.dot_dimension_numbers<[1], [0], [0], [1], [0, 0, 1, 1], [], []>} : vector<64x32xbf16>, vector<32x512xbf16>, vector<64x512xf32> -> vector<64x512xf32>
    %c0_11 = arith.constant 0 : index
    %c0_12 = arith.constant 0 : index
    %c0_13 = arith.constant 0 : index
    %13 = vector.load %arg6[%c0_11, %c0_12, %c0_13] : memref<1x1x512xf32, #tpu.memory_space<vmem>>, vector<1x1x512xf32>
    %14 = vector.shape_cast %13 : vector<1x1x512xf32> to vector<1x512xf32>
    %15 = vector.broadcast %14 : vector<1x512xf32> to vector<64x512xf32>
    %16 = arith.addf %12, %15 : vector<64x512xf32>
    %17 = arith.truncf %16 : vector<64x512xf32> to vector<64x512xbf16>
    %c0_14 = arith.constant 0 : index
    %c0_15 = arith.constant 0 : index
    %c0_16 = arith.constant 0 : index
    %18 = vector.load %arg7[%c0_14, %c0_15, %c0_16] : memref<1x64x512xbf16, #tpu.memory_space<vmem>>, vector<1x64x512xbf16>
    %19 = vector.shape_cast %18 : vector<1x64x512xbf16> to vector<64x512xbf16>
    %20 = vector.shape_cast %17 : vector<64x512xbf16> to vector<1x64x512xbf16>
    tpu.vector_store %arg7[%c0_14, %c0_15, %c0_16], %20 {strides = array<i32>} : memref<1x64x512xbf16, #tpu.memory_space<vmem>>, vector<1x64x512xbf16>,
    return
  }
  func.func @transform_0(%arg0: i32, %arg1: i32) -> (i32, i32, i32) {
    %c0_i32 = arith.constant 0 : i32
    %c0_i32_0 = arith.constant 0 : i32
    return %arg0, %arg1, %c0_i32 : i32, i32, i32
  }
  func.func @transform_1(%arg0: i32, %arg1: i32) -> (i32, i32) {
    %c0_i32 = arith.constant 0 : i32
    %c0_i32_0 = arith.constant 0 : i32
    %c0_i32_1 = arith.constant 0 : i32
    return %c0_i32, %c0_i32_0 : i32, i32
  }
  func.func @transform_2(%arg0: i32, %arg1: i32) -> (i32, i32) {
    %c0_i32 = arith.constant 0 : i32
    %c0_i32_0 = arith.constant 0 : i32
    %c0_i32_1 = arith.constant 0 : i32
    return %c0_i32, %c0_i32_0 : i32, i32
  }
  func.func @transform_3(%arg0: i32, %arg1: i32) -> (i32, i32, i32) {
    %c0_i32 = arith.constant 0 : i32
    %c0_i32_0 = arith.constant 0 : i32
    %c0_i32_1 = arith.constant 0 : i32
    return %arg0, %c0_i32, %c0_i32_0 : i32, i32, i32
  }
  func.func @transform_4(%arg0: i32, %arg1: i32) -> (i32, i32, i32) {
    %c0_i32 = arith.constant 0 : i32
    %c0_i32_0 = arith.constant 0 : i32
    %c0_i32_1 = arith.constant 0 : i32
    return %arg0, %c0_i32, %c0_i32_0 : i32, i32, i32
  }
  func.func @transform_5(%arg0: i32, %arg1: i32) -> (i32, i32, i32) {
    %c0_i32 = arith.constant 0 : i32
    %c0_i32_0 = arith.constant 0 : i32
    return %arg0, %arg1, %c0_i32 : i32, i32, i32
  }
}

module attributes {stable_mosaic.version = 11 : i64} {
  func.func @_lstm_final_kernel(%arg0: i32, %arg1: memref<8x8x512xbf16, #tpu.memory_space<vmem>>, %arg2: memref<128x512xbf16, #tpu.memory_space<vmem>>, %arg3: memref<8x1xi32, #tpu.memory_space<vmem>>, %arg4: memref<8x128xf32, #tpu.memory_space<vmem>>, %arg5: memref<8x128xf32, #tpu.memory_space<vmem>>) attributes {dimension_semantics = [#tpu.dimension_semantics<arbitrary>], iteration_bounds = array<i64: 1>, scalar_prefetch = 0 : i64, scratch_operands = 0 : i64, tpu.core_type = #tpu.core_type<tc>, window_params = [{transform_indices = @transform_0, window_bounds = array<i64: 8, 8, 512>}, {pipeline_mode = #tpu.pipeline_mode<synchronous>, transform_indices = @transform_1, window_bounds = array<i64: 128, 512>}, {pipeline_mode = #tpu.pipeline_mode<synchronous>, transform_indices = @transform_2, window_bounds = array<i64: 8, 1>}, {pipeline_mode = #tpu.pipeline_mode<synchronous>, transform_indices = @transform_3, window_bounds = array<i64: 8, 128>}, {pipeline_mode = #tpu.pipeline_mode<synchronous>, transform_indices = @transform_4, window_bounds = array<i64: 8, 128>}]} {
    %c0_i32 = arith.constant 0 : i32
    %0 = arith.cmpi eq, %arg0, %c0_i32 : i32
    %1 = arith.extui %0 : i1 to i32
    %c0_i32_0 = arith.constant 0 : i32
    %2 = arith.cmpi ne, %1, %c0_i32_0 : i32
    scf.if %2 {
      %cst_96 = arith.constant 0.000000e+00 : f32
      %351 = vector.broadcast %cst_96 : f32 to vector<8x128xf32>
      %c0_97 = arith.constant 0 : index
      %c0_98 = arith.constant 0 : index
      %352 = vector.load %arg4[%c0_97, %c0_98] : memref<8x128xf32, #tpu.memory_space<vmem>>, vector<8x128xf32>
      tpu.vector_store %arg4[%c0_97, %c0_98], %351 {strides = array<i32>} : memref<8x128xf32, #tpu.memory_space<vmem>>, vector<8x128xf32>,
      %cst_99 = arith.constant 0.000000e+00 : f32
      %353 = vector.broadcast %cst_99 : f32 to vector<8x128xf32>
      %c0_100 = arith.constant 0 : index
      %c0_101 = arith.constant 0 : index
      %354 = vector.load %arg5[%c0_100, %c0_101] : memref<8x128xf32, #tpu.memory_space<vmem>>, vector<8x128xf32>
      tpu.vector_store %arg5[%c0_100, %c0_101], %353 {strides = array<i32>} : memref<8x128xf32, #tpu.memory_space<vmem>>, vector<8x128xf32>,
    } else {
    }
    %c0 = arith.constant 0 : index
    %c0_1 = arith.constant 0 : index
    %3 = vector.load %arg4[%c0, %c0_1] : memref<8x128xf32, #tpu.memory_space<vmem>>, vector<8x128xf32>
    %c0_2 = arith.constant 0 : index
    %c0_3 = arith.constant 0 : index
    %4 = vector.load %arg5[%c0_2, %c0_3] : memref<8x128xf32, #tpu.memory_space<vmem>>, vector<8x128xf32>
    %c0_4 = arith.constant 0 : index
    %c0_5 = arith.constant 0 : index
    %c0_6 = arith.constant 0 : index
    %5 = vector.load %arg1[%c0_4, %c0_5, %c0_6] : memref<8x8x512xbf16, #tpu.memory_space<vmem>>, vector<1x8x512xbf16>
    %6 = vector.shape_cast %5 : vector<1x8x512xbf16> to vector<8x512xbf16>
    %7 = arith.extf %6 : vector<8x512xbf16> to vector<8x512xf32>
    %8 = arith.truncf %3 : vector<8x128xf32> to vector<8x128xbf16>
    %c0_7 = arith.constant 0 : index
    %c0_8 = arith.constant 0 : index
    %9 = vector.load %arg2[%c0_7, %c0_8] : memref<128x512xbf16, #tpu.memory_space<vmem>>, vector<128x512xbf16>
    %cst = arith.constant dense<0.000000e+00> : vector<8x512xf32>
    %10 = tpu.matmul %8, %9, %cst {dimension_numbers = #tpu.dot_dimension_numbers<[1], [0], [0], [1], [0, 0, 1, 1], [], []>} : vector<8x128xbf16>, vector<128x512xbf16>, vector<8x512xf32> -> vector<8x512xf32>
    %11 = arith.addf %7, %10 : vector<8x512xf32>
    %12 = vector.extract_strided_slice %11 {offsets = [0, 0], sizes = [8, 128], strides = [1, 1]} : vector<8x512xf32> to vector<8x128xf32>
    %13 = arith.negf %12 : vector<8x128xf32>
    %14 = math.exp %13 : vector<8x128xf32>
    %cst_9 = arith.constant 1.000000e+00 : f32
    %15 = vector.broadcast %cst_9 : f32 to vector<8x128xf32>
    %16 = arith.addf %15, %14 : vector<8x128xf32>
    %17 = arith.divf %15, %16 : vector<8x128xf32>
    %18 = vector.extract_strided_slice %11 {offsets = [0, 128], sizes = [8, 128], strides = [1, 1]} : vector<8x512xf32> to vector<8x128xf32>
    %19 = arith.negf %18 : vector<8x128xf32>
    %20 = math.exp %19 : vector<8x128xf32>
    %cst_10 = arith.constant 1.000000e+00 : f32
    %21 = vector.broadcast %cst_10 : f32 to vector<8x128xf32>
    %22 = arith.addf %21, %20 : vector<8x128xf32>
    %23 = arith.divf %21, %22 : vector<8x128xf32>
    %24 = vector.extract_strided_slice %11 {offsets = [0, 256], sizes = [8, 128], strides = [1, 1]} : vector<8x512xf32> to vector<8x128xf32>
    %25 = math.tanh %24 : vector<8x128xf32>
    %26 = vector.extract_strided_slice %11 {offsets = [0, 384], sizes = [8, 128], strides = [1, 1]} : vector<8x512xf32> to vector<8x128xf32>
    %27 = arith.negf %26 : vector<8x128xf32>
    %28 = math.exp %27 : vector<8x128xf32>
    %cst_11 = arith.constant 1.000000e+00 : f32
    %29 = vector.broadcast %cst_11 : f32 to vector<8x128xf32>
    %30 = arith.addf %29, %28 : vector<8x128xf32>
    %31 = arith.divf %29, %30 : vector<8x128xf32>
    %32 = arith.mulf %23, %4 : vector<8x128xf32>
    %33 = arith.mulf %17, %25 : vector<8x128xf32>
    %34 = arith.addf %32, %33 : vector<8x128xf32>
    %35 = math.tanh %34 : vector<8x128xf32>
    %36 = arith.mulf %31, %35 : vector<8x128xf32>
    %c8_i32 = arith.constant 8 : i32
    %37 = arith.muli %arg0, %c8_i32 : i32
    %c0_i32_12 = arith.constant 0 : i32
    %38 = arith.addi %37, %c0_i32_12 : i32
    %c0_13 = arith.constant 0 : index
    %c0_14 = arith.constant 0 : index
    %39 = vector.load %arg3[%c0_13, %c0_14] : memref<8x1xi32, #tpu.memory_space<vmem>>, vector<8x1xi32>
    %40 = vector.broadcast %38 : i32 to vector<8x1xi32>
    %41 = arith.cmpi slt, %40, %39 : vector<8x1xi32>
    %42 = vector.shape_cast %41 : vector<8x1xi1> to vector<8x1xi1>
    %43 = vector.broadcast %42 : vector<8x1xi1> to vector<8x128xi1>
    %44 = arith.select %43, %36, %3 : vector<8x128xi1>, vector<8x128xf32>
    %45 = vector.shape_cast %41 : vector<8x1xi1> to vector<8x1xi1>
    %46 = vector.broadcast %45 : vector<8x1xi1> to vector<8x128xi1>
    %47 = arith.select %46, %34, %4 : vector<8x128xi1>, vector<8x128xf32>
    %c1 = arith.constant 1 : index
    %c0_15 = arith.constant 0 : index
    %c0_16 = arith.constant 0 : index
    %48 = vector.load %arg1[%c1, %c0_15, %c0_16] : memref<8x8x512xbf16, #tpu.memory_space<vmem>>, vector<1x8x512xbf16>
    %49 = vector.shape_cast %48 : vector<1x8x512xbf16> to vector<8x512xbf16>
    %50 = arith.extf %49 : vector<8x512xbf16> to vector<8x512xf32>
    %51 = arith.truncf %44 : vector<8x128xf32> to vector<8x128xbf16>
    %c0_17 = arith.constant 0 : index
    %c0_18 = arith.constant 0 : index
    %52 = vector.load %arg2[%c0_17, %c0_18] : memref<128x512xbf16, #tpu.memory_space<vmem>>, vector<128x512xbf16>
    %cst_19 = arith.constant dense<0.000000e+00> : vector<8x512xf32>
    %53 = tpu.matmul %51, %52, %cst_19 {dimension_numbers = #tpu.dot_dimension_numbers<[1], [0], [0], [1], [0, 0, 1, 1], [], []>} : vector<8x128xbf16>, vector<128x512xbf16>, vector<8x512xf32> -> vector<8x512xf32>
    %54 = arith.addf %50, %53 : vector<8x512xf32>
    %55 = vector.extract_strided_slice %54 {offsets = [0, 0], sizes = [8, 128], strides = [1, 1]} : vector<8x512xf32> to vector<8x128xf32>
    %56 = arith.negf %55 : vector<8x128xf32>
    %57 = math.exp %56 : vector<8x128xf32>
    %cst_20 = arith.constant 1.000000e+00 : f32
    %58 = vector.broadcast %cst_20 : f32 to vector<8x128xf32>
    %59 = arith.addf %58, %57 : vector<8x128xf32>
    %60 = arith.divf %58, %59 : vector<8x128xf32>
    %61 = vector.extract_strided_slice %54 {offsets = [0, 128], sizes = [8, 128], strides = [1, 1]} : vector<8x512xf32> to vector<8x128xf32>
    %62 = arith.negf %61 : vector<8x128xf32>
    %63 = math.exp %62 : vector<8x128xf32>
    %cst_21 = arith.constant 1.000000e+00 : f32
    %64 = vector.broadcast %cst_21 : f32 to vector<8x128xf32>
    %65 = arith.addf %64, %63 : vector<8x128xf32>
    %66 = arith.divf %64, %65 : vector<8x128xf32>
    %67 = vector.extract_strided_slice %54 {offsets = [0, 256], sizes = [8, 128], strides = [1, 1]} : vector<8x512xf32> to vector<8x128xf32>
    %68 = math.tanh %67 : vector<8x128xf32>
    %69 = vector.extract_strided_slice %54 {offsets = [0, 384], sizes = [8, 128], strides = [1, 1]} : vector<8x512xf32> to vector<8x128xf32>
    %70 = arith.negf %69 : vector<8x128xf32>
    %71 = math.exp %70 : vector<8x128xf32>
    %cst_22 = arith.constant 1.000000e+00 : f32
    %72 = vector.broadcast %cst_22 : f32 to vector<8x128xf32>
    %73 = arith.addf %72, %71 : vector<8x128xf32>
    %74 = arith.divf %72, %73 : vector<8x128xf32>
    %75 = arith.mulf %66, %47 : vector<8x128xf32>
    %76 = arith.mulf %60, %68 : vector<8x128xf32>
    %77 = arith.addf %75, %76 : vector<8x128xf32>
    %78 = math.tanh %77 : vector<8x128xf32>
    %79 = arith.mulf %74, %78 : vector<8x128xf32>
    %c8_i32_23 = arith.constant 8 : i32
    %80 = arith.muli %arg0, %c8_i32_23 : i32
    %c1_i32 = arith.constant 1 : i32
    %81 = arith.addi %80, %c1_i32 : i32
    %c0_24 = arith.constant 0 : index
    %c0_25 = arith.constant 0 : index
    %82 = vector.load %arg3[%c0_24, %c0_25] : memref<8x1xi32, #tpu.memory_space<vmem>>, vector<8x1xi32>
    %83 = vector.broadcast %81 : i32 to vector<8x1xi32>
    %84 = arith.cmpi slt, %83, %82 : vector<8x1xi32>
    %85 = vector.shape_cast %84 : vector<8x1xi1> to vector<8x1xi1>
    %86 = vector.broadcast %85 : vector<8x1xi1> to vector<8x128xi1>
    %87 = arith.select %86, %79, %44 : vector<8x128xi1>, vector<8x128xf32>
    %88 = vector.shape_cast %84 : vector<8x1xi1> to vector<8x1xi1>
    %89 = vector.broadcast %88 : vector<8x1xi1> to vector<8x128xi1>
    %90 = arith.select %89, %77, %47 : vector<8x128xi1>, vector<8x128xf32>
    %c2 = arith.constant 2 : index
    %c0_26 = arith.constant 0 : index
    %c0_27 = arith.constant 0 : index
    %91 = vector.load %arg1[%c2, %c0_26, %c0_27] : memref<8x8x512xbf16, #tpu.memory_space<vmem>>, vector<1x8x512xbf16>
    %92 = vector.shape_cast %91 : vector<1x8x512xbf16> to vector<8x512xbf16>
    %93 = arith.extf %92 : vector<8x512xbf16> to vector<8x512xf32>
    %94 = arith.truncf %87 : vector<8x128xf32> to vector<8x128xbf16>
    %c0_28 = arith.constant 0 : index
    %c0_29 = arith.constant 0 : index
    %95 = vector.load %arg2[%c0_28, %c0_29] : memref<128x512xbf16, #tpu.memory_space<vmem>>, vector<128x512xbf16>
    %cst_30 = arith.constant dense<0.000000e+00> : vector<8x512xf32>
    %96 = tpu.matmul %94, %95, %cst_30 {dimension_numbers = #tpu.dot_dimension_numbers<[1], [0], [0], [1], [0, 0, 1, 1], [], []>} : vector<8x128xbf16>, vector<128x512xbf16>, vector<8x512xf32> -> vector<8x512xf32>
    %97 = arith.addf %93, %96 : vector<8x512xf32>
    %98 = vector.extract_strided_slice %97 {offsets = [0, 0], sizes = [8, 128], strides = [1, 1]} : vector<8x512xf32> to vector<8x128xf32>
    %99 = arith.negf %98 : vector<8x128xf32>
    %100 = math.exp %99 : vector<8x128xf32>
    %cst_31 = arith.constant 1.000000e+00 : f32
    %101 = vector.broadcast %cst_31 : f32 to vector<8x128xf32>
    %102 = arith.addf %101, %100 : vector<8x128xf32>
    %103 = arith.divf %101, %102 : vector<8x128xf32>
    %104 = vector.extract_strided_slice %97 {offsets = [0, 128], sizes = [8, 128], strides = [1, 1]} : vector<8x512xf32> to vector<8x128xf32>
    %105 = arith.negf %104 : vector<8x128xf32>
    %106 = math.exp %105 : vector<8x128xf32>
    %cst_32 = arith.constant 1.000000e+00 : f32
    %107 = vector.broadcast %cst_32 : f32 to vector<8x128xf32>
    %108 = arith.addf %107, %106 : vector<8x128xf32>
    %109 = arith.divf %107, %108 : vector<8x128xf32>
    %110 = vector.extract_strided_slice %97 {offsets = [0, 256], sizes = [8, 128], strides = [1, 1]} : vector<8x512xf32> to vector<8x128xf32>
    %111 = math.tanh %110 : vector<8x128xf32>
    %112 = vector.extract_strided_slice %97 {offsets = [0, 384], sizes = [8, 128], strides = [1, 1]} : vector<8x512xf32> to vector<8x128xf32>
    %113 = arith.negf %112 : vector<8x128xf32>
    %114 = math.exp %113 : vector<8x128xf32>
    %cst_33 = arith.constant 1.000000e+00 : f32
    %115 = vector.broadcast %cst_33 : f32 to vector<8x128xf32>
    %116 = arith.addf %115, %114 : vector<8x128xf32>
    %117 = arith.divf %115, %116 : vector<8x128xf32>
    %118 = arith.mulf %109, %90 : vector<8x128xf32>
    %119 = arith.mulf %103, %111 : vector<8x128xf32>
    %120 = arith.addf %118, %119 : vector<8x128xf32>
    %121 = math.tanh %120 : vector<8x128xf32>
    %122 = arith.mulf %117, %121 : vector<8x128xf32>
    %c8_i32_34 = arith.constant 8 : i32
    %123 = arith.muli %arg0, %c8_i32_34 : i32
    %c2_i32 = arith.constant 2 : i32
    %124 = arith.addi %123, %c2_i32 : i32
    %c0_35 = arith.constant 0 : index
    %c0_36 = arith.constant 0 : index
    %125 = vector.load %arg3[%c0_35, %c0_36] : memref<8x1xi32, #tpu.memory_space<vmem>>, vector<8x1xi32>
    %126 = vector.broadcast %124 : i32 to vector<8x1xi32>
    %127 = arith.cmpi slt, %126, %125 : vector<8x1xi32>
    %128 = vector.shape_cast %127 : vector<8x1xi1> to vector<8x1xi1>
    %129 = vector.broadcast %128 : vector<8x1xi1> to vector<8x128xi1>
    %130 = arith.select %129, %122, %87 : vector<8x128xi1>, vector<8x128xf32>
    %131 = vector.shape_cast %127 : vector<8x1xi1> to vector<8x1xi1>
    %132 = vector.broadcast %131 : vector<8x1xi1> to vector<8x128xi1>
    %133 = arith.select %132, %120, %90 : vector<8x128xi1>, vector<8x128xf32>
    %c3 = arith.constant 3 : index
    %c0_37 = arith.constant 0 : index
    %c0_38 = arith.constant 0 : index
    %134 = vector.load %arg1[%c3, %c0_37, %c0_38] : memref<8x8x512xbf16, #tpu.memory_space<vmem>>, vector<1x8x512xbf16>
    %135 = vector.shape_cast %134 : vector<1x8x512xbf16> to vector<8x512xbf16>
    %136 = arith.extf %135 : vector<8x512xbf16> to vector<8x512xf32>
    %137 = arith.truncf %130 : vector<8x128xf32> to vector<8x128xbf16>
    %c0_39 = arith.constant 0 : index
    %c0_40 = arith.constant 0 : index
    %138 = vector.load %arg2[%c0_39, %c0_40] : memref<128x512xbf16, #tpu.memory_space<vmem>>, vector<128x512xbf16>
    %cst_41 = arith.constant dense<0.000000e+00> : vector<8x512xf32>
    %139 = tpu.matmul %137, %138, %cst_41 {dimension_numbers = #tpu.dot_dimension_numbers<[1], [0], [0], [1], [0, 0, 1, 1], [], []>} : vector<8x128xbf16>, vector<128x512xbf16>, vector<8x512xf32> -> vector<8x512xf32>
    %140 = arith.addf %136, %139 : vector<8x512xf32>
    %141 = vector.extract_strided_slice %140 {offsets = [0, 0], sizes = [8, 128], strides = [1, 1]} : vector<8x512xf32> to vector<8x128xf32>
    %142 = arith.negf %141 : vector<8x128xf32>
    %143 = math.exp %142 : vector<8x128xf32>
    %cst_42 = arith.constant 1.000000e+00 : f32
    %144 = vector.broadcast %cst_42 : f32 to vector<8x128xf32>
    %145 = arith.addf %144, %143 : vector<8x128xf32>
    %146 = arith.divf %144, %145 : vector<8x128xf32>
    %147 = vector.extract_strided_slice %140 {offsets = [0, 128], sizes = [8, 128], strides = [1, 1]} : vector<8x512xf32> to vector<8x128xf32>
    %148 = arith.negf %147 : vector<8x128xf32>
    %149 = math.exp %148 : vector<8x128xf32>
    %cst_43 = arith.constant 1.000000e+00 : f32
    %150 = vector.broadcast %cst_43 : f32 to vector<8x128xf32>
    %151 = arith.addf %150, %149 : vector<8x128xf32>
    %152 = arith.divf %150, %151 : vector<8x128xf32>
    %153 = vector.extract_strided_slice %140 {offsets = [0, 256], sizes = [8, 128], strides = [1, 1]} : vector<8x512xf32> to vector<8x128xf32>
    %154 = math.tanh %153 : vector<8x128xf32>
    %155 = vector.extract_strided_slice %140 {offsets = [0, 384], sizes = [8, 128], strides = [1, 1]} : vector<8x512xf32> to vector<8x128xf32>
    %156 = arith.negf %155 : vector<8x128xf32>
    %157 = math.exp %156 : vector<8x128xf32>
    %cst_44 = arith.constant 1.000000e+00 : f32
    %158 = vector.broadcast %cst_44 : f32 to vector<8x128xf32>
    %159 = arith.addf %158, %157 : vector<8x128xf32>
    %160 = arith.divf %158, %159 : vector<8x128xf32>
    %161 = arith.mulf %152, %133 : vector<8x128xf32>
    %162 = arith.mulf %146, %154 : vector<8x128xf32>
    %163 = arith.addf %161, %162 : vector<8x128xf32>
    %164 = math.tanh %163 : vector<8x128xf32>
    %165 = arith.mulf %160, %164 : vector<8x128xf32>
    %c8_i32_45 = arith.constant 8 : i32
    %166 = arith.muli %arg0, %c8_i32_45 : i32
    %c3_i32 = arith.constant 3 : i32
    %167 = arith.addi %166, %c3_i32 : i32
    %c0_46 = arith.constant 0 : index
    %c0_47 = arith.constant 0 : index
    %168 = vector.load %arg3[%c0_46, %c0_47] : memref<8x1xi32, #tpu.memory_space<vmem>>, vector<8x1xi32>
    %169 = vector.broadcast %167 : i32 to vector<8x1xi32>
    %170 = arith.cmpi slt, %169, %168 : vector<8x1xi32>
    %171 = vector.shape_cast %170 : vector<8x1xi1> to vector<8x1xi1>
    %172 = vector.broadcast %171 : vector<8x1xi1> to vector<8x128xi1>
    %173 = arith.select %172, %165, %130 : vector<8x128xi1>, vector<8x128xf32>
    %174 = vector.shape_cast %170 : vector<8x1xi1> to vector<8x1xi1>
    %175 = vector.broadcast %174 : vector<8x1xi1> to vector<8x128xi1>
    %176 = arith.select %175, %163, %133 : vector<8x128xi1>, vector<8x128xf32>
    %c4 = arith.constant 4 : index
    %c0_48 = arith.constant 0 : index
    %c0_49 = arith.constant 0 : index
    %177 = vector.load %arg1[%c4, %c0_48, %c0_49] : memref<8x8x512xbf16, #tpu.memory_space<vmem>>, vector<1x8x512xbf16>
    %178 = vector.shape_cast %177 : vector<1x8x512xbf16> to vector<8x512xbf16>
    %179 = arith.extf %178 : vector<8x512xbf16> to vector<8x512xf32>
    %180 = arith.truncf %173 : vector<8x128xf32> to vector<8x128xbf16>
    %c0_50 = arith.constant 0 : index
    %c0_51 = arith.constant 0 : index
    %181 = vector.load %arg2[%c0_50, %c0_51] : memref<128x512xbf16, #tpu.memory_space<vmem>>, vector<128x512xbf16>
    %cst_52 = arith.constant dense<0.000000e+00> : vector<8x512xf32>
    %182 = tpu.matmul %180, %181, %cst_52 {dimension_numbers = #tpu.dot_dimension_numbers<[1], [0], [0], [1], [0, 0, 1, 1], [], []>} : vector<8x128xbf16>, vector<128x512xbf16>, vector<8x512xf32> -> vector<8x512xf32>
    %183 = arith.addf %179, %182 : vector<8x512xf32>
    %184 = vector.extract_strided_slice %183 {offsets = [0, 0], sizes = [8, 128], strides = [1, 1]} : vector<8x512xf32> to vector<8x128xf32>
    %185 = arith.negf %184 : vector<8x128xf32>
    %186 = math.exp %185 : vector<8x128xf32>
    %cst_53 = arith.constant 1.000000e+00 : f32
    %187 = vector.broadcast %cst_53 : f32 to vector<8x128xf32>
    %188 = arith.addf %187, %186 : vector<8x128xf32>
    %189 = arith.divf %187, %188 : vector<8x128xf32>
    %190 = vector.extract_strided_slice %183 {offsets = [0, 128], sizes = [8, 128], strides = [1, 1]} : vector<8x512xf32> to vector<8x128xf32>
    %191 = arith.negf %190 : vector<8x128xf32>
    %192 = math.exp %191 : vector<8x128xf32>
    %cst_54 = arith.constant 1.000000e+00 : f32
    %193 = vector.broadcast %cst_54 : f32 to vector<8x128xf32>
    %194 = arith.addf %193, %192 : vector<8x128xf32>
    %195 = arith.divf %193, %194 : vector<8x128xf32>
    %196 = vector.extract_strided_slice %183 {offsets = [0, 256], sizes = [8, 128], strides = [1, 1]} : vector<8x512xf32> to vector<8x128xf32>
    %197 = math.tanh %196 : vector<8x128xf32>
    %198 = vector.extract_strided_slice %183 {offsets = [0, 384], sizes = [8, 128], strides = [1, 1]} : vector<8x512xf32> to vector<8x128xf32>
    %199 = arith.negf %198 : vector<8x128xf32>
    %200 = math.exp %199 : vector<8x128xf32>
    %cst_55 = arith.constant 1.000000e+00 : f32
    %201 = vector.broadcast %cst_55 : f32 to vector<8x128xf32>
    %202 = arith.addf %201, %200 : vector<8x128xf32>
    %203 = arith.divf %201, %202 : vector<8x128xf32>
    %204 = arith.mulf %195, %176 : vector<8x128xf32>
    %205 = arith.mulf %189, %197 : vector<8x128xf32>
    %206 = arith.addf %204, %205 : vector<8x128xf32>
    %207 = math.tanh %206 : vector<8x128xf32>
    %208 = arith.mulf %203, %207 : vector<8x128xf32>
    %c8_i32_56 = arith.constant 8 : i32
    %209 = arith.muli %arg0, %c8_i32_56 : i32
    %c4_i32 = arith.constant 4 : i32
    %210 = arith.addi %209, %c4_i32 : i32
    %c0_57 = arith.constant 0 : index
    %c0_58 = arith.constant 0 : index
    %211 = vector.load %arg3[%c0_57, %c0_58] : memref<8x1xi32, #tpu.memory_space<vmem>>, vector<8x1xi32>
    %212 = vector.broadcast %210 : i32 to vector<8x1xi32>
    %213 = arith.cmpi slt, %212, %211 : vector<8x1xi32>
    %214 = vector.shape_cast %213 : vector<8x1xi1> to vector<8x1xi1>
    %215 = vector.broadcast %214 : vector<8x1xi1> to vector<8x128xi1>
    %216 = arith.select %215, %208, %173 : vector<8x128xi1>, vector<8x128xf32>
    %217 = vector.shape_cast %213 : vector<8x1xi1> to vector<8x1xi1>
    %218 = vector.broadcast %217 : vector<8x1xi1> to vector<8x128xi1>
    %219 = arith.select %218, %206, %176 : vector<8x128xi1>, vector<8x128xf32>
    %c5 = arith.constant 5 : index
    %c0_59 = arith.constant 0 : index
    %c0_60 = arith.constant 0 : index
    %220 = vector.load %arg1[%c5, %c0_59, %c0_60] : memref<8x8x512xbf16, #tpu.memory_space<vmem>>, vector<1x8x512xbf16>
    %221 = vector.shape_cast %220 : vector<1x8x512xbf16> to vector<8x512xbf16>
    %222 = arith.extf %221 : vector<8x512xbf16> to vector<8x512xf32>
    %223 = arith.truncf %216 : vector<8x128xf32> to vector<8x128xbf16>
    %c0_61 = arith.constant 0 : index
    %c0_62 = arith.constant 0 : index
    %224 = vector.load %arg2[%c0_61, %c0_62] : memref<128x512xbf16, #tpu.memory_space<vmem>>, vector<128x512xbf16>
    %cst_63 = arith.constant dense<0.000000e+00> : vector<8x512xf32>
    %225 = tpu.matmul %223, %224, %cst_63 {dimension_numbers = #tpu.dot_dimension_numbers<[1], [0], [0], [1], [0, 0, 1, 1], [], []>} : vector<8x128xbf16>, vector<128x512xbf16>, vector<8x512xf32> -> vector<8x512xf32>
    %226 = arith.addf %222, %225 : vector<8x512xf32>
    %227 = vector.extract_strided_slice %226 {offsets = [0, 0], sizes = [8, 128], strides = [1, 1]} : vector<8x512xf32> to vector<8x128xf32>
    %228 = arith.negf %227 : vector<8x128xf32>
    %229 = math.exp %228 : vector<8x128xf32>
    %cst_64 = arith.constant 1.000000e+00 : f32
    %230 = vector.broadcast %cst_64 : f32 to vector<8x128xf32>
    %231 = arith.addf %230, %229 : vector<8x128xf32>
    %232 = arith.divf %230, %231 : vector<8x128xf32>
    %233 = vector.extract_strided_slice %226 {offsets = [0, 128], sizes = [8, 128], strides = [1, 1]} : vector<8x512xf32> to vector<8x128xf32>
    %234 = arith.negf %233 : vector<8x128xf32>
    %235 = math.exp %234 : vector<8x128xf32>
    %cst_65 = arith.constant 1.000000e+00 : f32
    %236 = vector.broadcast %cst_65 : f32 to vector<8x128xf32>
    %237 = arith.addf %236, %235 : vector<8x128xf32>
    %238 = arith.divf %236, %237 : vector<8x128xf32>
    %239 = vector.extract_strided_slice %226 {offsets = [0, 256], sizes = [8, 128], strides = [1, 1]} : vector<8x512xf32> to vector<8x128xf32>
    %240 = math.tanh %239 : vector<8x128xf32>
    %241 = vector.extract_strided_slice %226 {offsets = [0, 384], sizes = [8, 128], strides = [1, 1]} : vector<8x512xf32> to vector<8x128xf32>
    %242 = arith.negf %241 : vector<8x128xf32>
    %243 = math.exp %242 : vector<8x128xf32>
    %cst_66 = arith.constant 1.000000e+00 : f32
    %244 = vector.broadcast %cst_66 : f32 to vector<8x128xf32>
    %245 = arith.addf %244, %243 : vector<8x128xf32>
    %246 = arith.divf %244, %245 : vector<8x128xf32>
    %247 = arith.mulf %238, %219 : vector<8x128xf32>
    %248 = arith.mulf %232, %240 : vector<8x128xf32>
    %249 = arith.addf %247, %248 : vector<8x128xf32>
    %250 = math.tanh %249 : vector<8x128xf32>
    %251 = arith.mulf %246, %250 : vector<8x128xf32>
    %c8_i32_67 = arith.constant 8 : i32
    %252 = arith.muli %arg0, %c8_i32_67 : i32
    %c5_i32 = arith.constant 5 : i32
    %253 = arith.addi %252, %c5_i32 : i32
    %c0_68 = arith.constant 0 : index
    %c0_69 = arith.constant 0 : index
    %254 = vector.load %arg3[%c0_68, %c0_69] : memref<8x1xi32, #tpu.memory_space<vmem>>, vector<8x1xi32>
    %255 = vector.broadcast %253 : i32 to vector<8x1xi32>
    %256 = arith.cmpi slt, %255, %254 : vector<8x1xi32>
    %257 = vector.shape_cast %256 : vector<8x1xi1> to vector<8x1xi1>
    %258 = vector.broadcast %257 : vector<8x1xi1> to vector<8x128xi1>
    %259 = arith.select %258, %251, %216 : vector<8x128xi1>, vector<8x128xf32>
    %260 = vector.shape_cast %256 : vector<8x1xi1> to vector<8x1xi1>
    %261 = vector.broadcast %260 : vector<8x1xi1> to vector<8x128xi1>
    %262 = arith.select %261, %249, %219 : vector<8x128xi1>, vector<8x128xf32>
    %c6 = arith.constant 6 : index
    %c0_70 = arith.constant 0 : index
    %c0_71 = arith.constant 0 : index
    %263 = vector.load %arg1[%c6, %c0_70, %c0_71] : memref<8x8x512xbf16, #tpu.memory_space<vmem>>, vector<1x8x512xbf16>
    %264 = vector.shape_cast %263 : vector<1x8x512xbf16> to vector<8x512xbf16>
    %265 = arith.extf %264 : vector<8x512xbf16> to vector<8x512xf32>
    %266 = arith.truncf %259 : vector<8x128xf32> to vector<8x128xbf16>
    %c0_72 = arith.constant 0 : index
    %c0_73 = arith.constant 0 : index
    %267 = vector.load %arg2[%c0_72, %c0_73] : memref<128x512xbf16, #tpu.memory_space<vmem>>, vector<128x512xbf16>
    %cst_74 = arith.constant dense<0.000000e+00> : vector<8x512xf32>
    %268 = tpu.matmul %266, %267, %cst_74 {dimension_numbers = #tpu.dot_dimension_numbers<[1], [0], [0], [1], [0, 0, 1, 1], [], []>} : vector<8x128xbf16>, vector<128x512xbf16>, vector<8x512xf32> -> vector<8x512xf32>
    %269 = arith.addf %265, %268 : vector<8x512xf32>
    %270 = vector.extract_strided_slice %269 {offsets = [0, 0], sizes = [8, 128], strides = [1, 1]} : vector<8x512xf32> to vector<8x128xf32>
    %271 = arith.negf %270 : vector<8x128xf32>
    %272 = math.exp %271 : vector<8x128xf32>
    %cst_75 = arith.constant 1.000000e+00 : f32
    %273 = vector.broadcast %cst_75 : f32 to vector<8x128xf32>
    %274 = arith.addf %273, %272 : vector<8x128xf32>
    %275 = arith.divf %273, %274 : vector<8x128xf32>
    %276 = vector.extract_strided_slice %269 {offsets = [0, 128], sizes = [8, 128], strides = [1, 1]} : vector<8x512xf32> to vector<8x128xf32>
    %277 = arith.negf %276 : vector<8x128xf32>
    %278 = math.exp %277 : vector<8x128xf32>
    %cst_76 = arith.constant 1.000000e+00 : f32
    %279 = vector.broadcast %cst_76 : f32 to vector<8x128xf32>
    %280 = arith.addf %279, %278 : vector<8x128xf32>
    %281 = arith.divf %279, %280 : vector<8x128xf32>
    %282 = vector.extract_strided_slice %269 {offsets = [0, 256], sizes = [8, 128], strides = [1, 1]} : vector<8x512xf32> to vector<8x128xf32>
    %283 = math.tanh %282 : vector<8x128xf32>
    %284 = vector.extract_strided_slice %269 {offsets = [0, 384], sizes = [8, 128], strides = [1, 1]} : vector<8x512xf32> to vector<8x128xf32>
    %285 = arith.negf %284 : vector<8x128xf32>
    %286 = math.exp %285 : vector<8x128xf32>
    %cst_77 = arith.constant 1.000000e+00 : f32
    %287 = vector.broadcast %cst_77 : f32 to vector<8x128xf32>
    %288 = arith.addf %287, %286 : vector<8x128xf32>
    %289 = arith.divf %287, %288 : vector<8x128xf32>
    %290 = arith.mulf %281, %262 : vector<8x128xf32>
    %291 = arith.mulf %275, %283 : vector<8x128xf32>
    %292 = arith.addf %290, %291 : vector<8x128xf32>
    %293 = math.tanh %292 : vector<8x128xf32>
    %294 = arith.mulf %289, %293 : vector<8x128xf32>
    %c8_i32_78 = arith.constant 8 : i32
    %295 = arith.muli %arg0, %c8_i32_78 : i32
    %c6_i32 = arith.constant 6 : i32
    %296 = arith.addi %295, %c6_i32 : i32
    %c0_79 = arith.constant 0 : index
    %c0_80 = arith.constant 0 : index
    %297 = vector.load %arg3[%c0_79, %c0_80] : memref<8x1xi32, #tpu.memory_space<vmem>>, vector<8x1xi32>
    %298 = vector.broadcast %296 : i32 to vector<8x1xi32>
    %299 = arith.cmpi slt, %298, %297 : vector<8x1xi32>
    %300 = vector.shape_cast %299 : vector<8x1xi1> to vector<8x1xi1>
    %301 = vector.broadcast %300 : vector<8x1xi1> to vector<8x128xi1>
    %302 = arith.select %301, %294, %259 : vector<8x128xi1>, vector<8x128xf32>
    %303 = vector.shape_cast %299 : vector<8x1xi1> to vector<8x1xi1>
    %304 = vector.broadcast %303 : vector<8x1xi1> to vector<8x128xi1>
    %305 = arith.select %304, %292, %262 : vector<8x128xi1>, vector<8x128xf32>
    %c7 = arith.constant 7 : index
    %c0_81 = arith.constant 0 : index
    %c0_82 = arith.constant 0 : index
    %306 = vector.load %arg1[%c7, %c0_81, %c0_82] : memref<8x8x512xbf16, #tpu.memory_space<vmem>>, vector<1x8x512xbf16>
    %307 = vector.shape_cast %306 : vector<1x8x512xbf16> to vector<8x512xbf16>
    %308 = arith.extf %307 : vector<8x512xbf16> to vector<8x512xf32>
    %309 = arith.truncf %302 : vector<8x128xf32> to vector<8x128xbf16>
    %c0_83 = arith.constant 0 : index
    %c0_84 = arith.constant 0 : index
    %310 = vector.load %arg2[%c0_83, %c0_84] : memref<128x512xbf16, #tpu.memory_space<vmem>>, vector<128x512xbf16>
    %cst_85 = arith.constant dense<0.000000e+00> : vector<8x512xf32>
    %311 = tpu.matmul %309, %310, %cst_85 {dimension_numbers = #tpu.dot_dimension_numbers<[1], [0], [0], [1], [0, 0, 1, 1], [], []>} : vector<8x128xbf16>, vector<128x512xbf16>, vector<8x512xf32> -> vector<8x512xf32>
    %312 = arith.addf %308, %311 : vector<8x512xf32>
    %313 = vector.extract_strided_slice %312 {offsets = [0, 0], sizes = [8, 128], strides = [1, 1]} : vector<8x512xf32> to vector<8x128xf32>
    %314 = arith.negf %313 : vector<8x128xf32>
    %315 = math.exp %314 : vector<8x128xf32>
    %cst_86 = arith.constant 1.000000e+00 : f32
    %316 = vector.broadcast %cst_86 : f32 to vector<8x128xf32>
    %317 = arith.addf %316, %315 : vector<8x128xf32>
    %318 = arith.divf %316, %317 : vector<8x128xf32>
    %319 = vector.extract_strided_slice %312 {offsets = [0, 128], sizes = [8, 128], strides = [1, 1]} : vector<8x512xf32> to vector<8x128xf32>
    %320 = arith.negf %319 : vector<8x128xf32>
    %321 = math.exp %320 : vector<8x128xf32>
    %cst_87 = arith.constant 1.000000e+00 : f32
    %322 = vector.broadcast %cst_87 : f32 to vector<8x128xf32>
    %323 = arith.addf %322, %321 : vector<8x128xf32>
    %324 = arith.divf %322, %323 : vector<8x128xf32>
    %325 = vector.extract_strided_slice %312 {offsets = [0, 256], sizes = [8, 128], strides = [1, 1]} : vector<8x512xf32> to vector<8x128xf32>
    %326 = math.tanh %325 : vector<8x128xf32>
    %327 = vector.extract_strided_slice %312 {offsets = [0, 384], sizes = [8, 128], strides = [1, 1]} : vector<8x512xf32> to vector<8x128xf32>
    %328 = arith.negf %327 : vector<8x128xf32>
    %329 = math.exp %328 : vector<8x128xf32>
    %cst_88 = arith.constant 1.000000e+00 : f32
    %330 = vector.broadcast %cst_88 : f32 to vector<8x128xf32>
    %331 = arith.addf %330, %329 : vector<8x128xf32>
    %332 = arith.divf %330, %331 : vector<8x128xf32>
    %333 = arith.mulf %324, %305 : vector<8x128xf32>
    %334 = arith.mulf %318, %326 : vector<8x128xf32>
    %335 = arith.addf %333, %334 : vector<8x128xf32>
    %336 = math.tanh %335 : vector<8x128xf32>
    %337 = arith.mulf %332, %336 : vector<8x128xf32>
    %c8_i32_89 = arith.constant 8 : i32
    %338 = arith.muli %arg0, %c8_i32_89 : i32
    %c7_i32 = arith.constant 7 : i32
    %339 = arith.addi %338, %c7_i32 : i32
    %c0_90 = arith.constant 0 : index
    %c0_91 = arith.constant 0 : index
    %340 = vector.load %arg3[%c0_90, %c0_91] : memref<8x1xi32, #tpu.memory_space<vmem>>, vector<8x1xi32>
    %341 = vector.broadcast %339 : i32 to vector<8x1xi32>
    %342 = arith.cmpi slt, %341, %340 : vector<8x1xi32>
    %343 = vector.shape_cast %342 : vector<8x1xi1> to vector<8x1xi1>
    %344 = vector.broadcast %343 : vector<8x1xi1> to vector<8x128xi1>
    %345 = arith.select %344, %337, %302 : vector<8x128xi1>, vector<8x128xf32>
    %346 = vector.shape_cast %342 : vector<8x1xi1> to vector<8x1xi1>
    %347 = vector.broadcast %346 : vector<8x1xi1> to vector<8x128xi1>
    %348 = arith.select %347, %335, %305 : vector<8x128xi1>, vector<8x128xf32>
    %c0_92 = arith.constant 0 : index
    %c0_93 = arith.constant 0 : index
    %349 = vector.load %arg4[%c0_92, %c0_93] : memref<8x128xf32, #tpu.memory_space<vmem>>, vector<8x128xf32>
    tpu.vector_store %arg4[%c0_92, %c0_93], %345 {strides = array<i32>} : memref<8x128xf32, #tpu.memory_space<vmem>>, vector<8x128xf32>,
    %c0_94 = arith.constant 0 : index
    %c0_95 = arith.constant 0 : index
    %350 = vector.load %arg5[%c0_94, %c0_95] : memref<8x128xf32, #tpu.memory_space<vmem>>, vector<8x128xf32>
    tpu.vector_store %arg5[%c0_94, %c0_95], %348 {strides = array<i32>} : memref<8x128xf32, #tpu.memory_space<vmem>>, vector<8x128xf32>,
    return
  }
  func.func @transform_0(%arg0: i32) -> (i32, i32, i32) {
    %c0_i32 = arith.constant 0 : i32
    %c0_i32_0 = arith.constant 0 : i32
    %c0_i32_1 = arith.constant 0 : i32
    return %arg0, %c0_i32, %c0_i32_0 : i32, i32, i32
  }
  func.func @transform_1(%arg0: i32) -> (i32, i32) {
    %c0_i32 = arith.constant 0 : i32
    %c0_i32_0 = arith.constant 0 : i32
    %c0_i32_1 = arith.constant 0 : i32
    return %c0_i32, %c0_i32_0 : i32, i32
  }
  func.func @transform_2(%arg0: i32) -> (i32, i32) {
    %c0_i32 = arith.constant 0 : i32
    %c0_i32_0 = arith.constant 0 : i32
    %c0_i32_1 = arith.constant 0 : i32
    return %c0_i32, %c0_i32_0 : i32, i32
  }
  func.func @transform_3(%arg0: i32) -> (i32, i32) {
    %c0_i32 = arith.constant 0 : i32
    %c0_i32_0 = arith.constant 0 : i32
    %c0_i32_1 = arith.constant 0 : i32
    return %c0_i32, %c0_i32_0 : i32, i32
  }
  func.func @transform_4(%arg0: i32) -> (i32, i32) {
    %c0_i32 = arith.constant 0 : i32
    %c0_i32_0 = arith.constant 0 : i32
    %c0_i32_1 = arith.constant 0 : i32
    return %c0_i32, %c0_i32_0 : i32, i32
  }
}

module attributes {stable_mosaic.version = 11 : i64} {
  func.func @_lstm_postnet_kernel(%arg0: i32, %arg1: memref<8x8x512xbf16, #tpu.memory_space<vmem>>, %arg2: memref<128x512xbf16, #tpu.memory_space<vmem>>, %arg3: memref<8x128xf32, #tpu.memory_space<vmem>>, %arg4: memref<8x128xf32, #tpu.memory_space<vmem>>, %arg5: memref<128x128xbf16, #tpu.memory_space<vmem>>, %arg6: memref<1x128xf32, #tpu.memory_space<vmem>>, %arg7: memref<64x128xf32, #tpu.memory_space<vmem>>, %arg8: memref<8x128xf32, #tpu.memory_space<vmem>>, %arg9: memref<8x128xf32, #tpu.memory_space<vmem>>, %arg10: memref<64x128xbf16, #tpu.memory_space<vmem>>) attributes {dimension_semantics = [#tpu.dimension_semantics<arbitrary>], iteration_bounds = array<i64: 1>, scalar_prefetch = 0 : i64, scratch_operands = 3 : i64, tpu.core_type = #tpu.core_type<tc>, window_params = [{transform_indices = @transform_0, window_bounds = array<i64: 8, 8, 512>}, {pipeline_mode = #tpu.pipeline_mode<synchronous>, transform_indices = @transform_1, window_bounds = array<i64: 128, 512>}, {pipeline_mode = #tpu.pipeline_mode<synchronous>, transform_indices = @transform_2, window_bounds = array<i64: 8, 128>}, {pipeline_mode = #tpu.pipeline_mode<synchronous>, transform_indices = @transform_3, window_bounds = array<i64: 8, 128>}, {pipeline_mode = #tpu.pipeline_mode<synchronous>, transform_indices = @transform_4, window_bounds = array<i64: 128, 128>}, {pipeline_mode = #tpu.pipeline_mode<synchronous>, transform_indices = @transform_5, window_bounds = array<i64: 1, 128>}, {transform_indices = @transform_6, window_bounds = array<i64: 64, 128>}]} {
    %c0_i32 = arith.constant 0 : i32
    %0 = arith.cmpi eq, %arg0, %c0_i32 : i32
    %1 = arith.extui %0 : i1 to i32
    %c0_i32_0 = arith.constant 0 : i32
    %2 = arith.cmpi ne, %1, %c0_i32_0 : i32
    scf.if %2 {
      %c0_90 = arith.constant 0 : index
      %c0_91 = arith.constant 0 : index
      %286 = vector.load %arg3[%c0_90, %c0_91] : memref<8x128xf32, #tpu.memory_space<vmem>>, vector<8x128xf32>
      %c0_92 = arith.constant 0 : index
      %c0_93 = arith.constant 0 : index
      %287 = vector.load %arg8[%c0_92, %c0_93] : memref<8x128xf32, #tpu.memory_space<vmem>>, vector<8x128xf32>
      tpu.vector_store %arg8[%c0_92, %c0_93], %286 {strides = array<i32>} : memref<8x128xf32, #tpu.memory_space<vmem>>, vector<8x128xf32>,
      %c0_94 = arith.constant 0 : index
      %c0_95 = arith.constant 0 : index
      %288 = vector.load %arg4[%c0_94, %c0_95] : memref<8x128xf32, #tpu.memory_space<vmem>>, vector<8x128xf32>
      %c0_96 = arith.constant 0 : index
      %c0_97 = arith.constant 0 : index
      %289 = vector.load %arg9[%c0_96, %c0_97] : memref<8x128xf32, #tpu.memory_space<vmem>>, vector<8x128xf32>
      tpu.vector_store %arg9[%c0_96, %c0_97], %288 {strides = array<i32>} : memref<8x128xf32, #tpu.memory_space<vmem>>, vector<8x128xf32>,
    } else {
    }
    %c0 = arith.constant 0 : index
    %c0_1 = arith.constant 0 : index
    %3 = vector.load %arg8[%c0, %c0_1] : memref<8x128xf32, #tpu.memory_space<vmem>>, vector<8x128xf32>
    %c0_2 = arith.constant 0 : index
    %c0_3 = arith.constant 0 : index
    %4 = vector.load %arg9[%c0_2, %c0_3] : memref<8x128xf32, #tpu.memory_space<vmem>>, vector<8x128xf32>
    %c0_4 = arith.constant 0 : index
    %c0_5 = arith.constant 0 : index
    %c0_6 = arith.constant 0 : index
    %5 = vector.load %arg1[%c0_4, %c0_5, %c0_6] : memref<8x8x512xbf16, #tpu.memory_space<vmem>>, vector<1x8x512xbf16>
    %6 = vector.shape_cast %5 : vector<1x8x512xbf16> to vector<8x512xbf16>
    %7 = arith.extf %6 : vector<8x512xbf16> to vector<8x512xf32>
    %8 = arith.truncf %3 : vector<8x128xf32> to vector<8x128xbf16>
    %c0_7 = arith.constant 0 : index
    %c0_8 = arith.constant 0 : index
    %9 = vector.load %arg2[%c0_7, %c0_8] : memref<128x512xbf16, #tpu.memory_space<vmem>>, vector<128x512xbf16>
    %cst = arith.constant dense<0.000000e+00> : vector<8x512xf32>
    %10 = tpu.matmul %8, %9, %cst {dimension_numbers = #tpu.dot_dimension_numbers<[1], [0], [0], [1], [0, 0, 1, 1], [], []>} : vector<8x128xbf16>, vector<128x512xbf16>, vector<8x512xf32> -> vector<8x512xf32>
    %11 = arith.addf %7, %10 : vector<8x512xf32>
    %12 = vector.extract_strided_slice %11 {offsets = [0, 0], sizes = [8, 128], strides = [1, 1]} : vector<8x512xf32> to vector<8x128xf32>
    %13 = arith.negf %12 : vector<8x128xf32>
    %14 = math.exp %13 : vector<8x128xf32>
    %cst_9 = arith.constant 1.000000e+00 : f32
    %15 = vector.broadcast %cst_9 : f32 to vector<8x128xf32>
    %16 = arith.addf %15, %14 : vector<8x128xf32>
    %17 = arith.divf %15, %16 : vector<8x128xf32>
    %18 = vector.extract_strided_slice %11 {offsets = [0, 128], sizes = [8, 128], strides = [1, 1]} : vector<8x512xf32> to vector<8x128xf32>
    %19 = arith.negf %18 : vector<8x128xf32>
    %20 = math.exp %19 : vector<8x128xf32>
    %cst_10 = arith.constant 1.000000e+00 : f32
    %21 = vector.broadcast %cst_10 : f32 to vector<8x128xf32>
    %22 = arith.addf %21, %20 : vector<8x128xf32>
    %23 = arith.divf %21, %22 : vector<8x128xf32>
    %24 = vector.extract_strided_slice %11 {offsets = [0, 256], sizes = [8, 128], strides = [1, 1]} : vector<8x512xf32> to vector<8x128xf32>
    %25 = math.tanh %24 : vector<8x128xf32>
    %26 = vector.extract_strided_slice %11 {offsets = [0, 384], sizes = [8, 128], strides = [1, 1]} : vector<8x512xf32> to vector<8x128xf32>
    %27 = arith.negf %26 : vector<8x128xf32>
    %28 = math.exp %27 : vector<8x128xf32>
    %cst_11 = arith.constant 1.000000e+00 : f32
    %29 = vector.broadcast %cst_11 : f32 to vector<8x128xf32>
    %30 = arith.addf %29, %28 : vector<8x128xf32>
    %31 = arith.divf %29, %30 : vector<8x128xf32>
    %32 = arith.mulf %23, %4 : vector<8x128xf32>
    %33 = arith.mulf %17, %25 : vector<8x128xf32>
    %34 = arith.addf %32, %33 : vector<8x128xf32>
    %35 = math.tanh %34 : vector<8x128xf32>
    %36 = arith.mulf %31, %35 : vector<8x128xf32>
    %37 = arith.truncf %36 : vector<8x128xf32> to vector<8x128xbf16>
    %c0_12 = arith.constant 0 : index
    %c0_13 = arith.constant 0 : index
    %38 = vector.load %arg10[%c0_12, %c0_13] : memref<64x128xbf16, #tpu.memory_space<vmem>>, vector<8x128xbf16>
    tpu.vector_store %arg10[%c0_12, %c0_13], %37 {strides = array<i32>} : memref<64x128xbf16, #tpu.memory_space<vmem>>, vector<8x128xbf16>,
    %c1 = arith.constant 1 : index
    %c0_14 = arith.constant 0 : index
    %c0_15 = arith.constant 0 : index
    %39 = vector.load %arg1[%c1, %c0_14, %c0_15] : memref<8x8x512xbf16, #tpu.memory_space<vmem>>, vector<1x8x512xbf16>
    %40 = vector.shape_cast %39 : vector<1x8x512xbf16> to vector<8x512xbf16>
    %41 = arith.extf %40 : vector<8x512xbf16> to vector<8x512xf32>
    %42 = arith.truncf %36 : vector<8x128xf32> to vector<8x128xbf16>
    %c0_16 = arith.constant 0 : index
    %c0_17 = arith.constant 0 : index
    %43 = vector.load %arg2[%c0_16, %c0_17] : memref<128x512xbf16, #tpu.memory_space<vmem>>, vector<128x512xbf16>
    %cst_18 = arith.constant dense<0.000000e+00> : vector<8x512xf32>
    %44 = tpu.matmul %42, %43, %cst_18 {dimension_numbers = #tpu.dot_dimension_numbers<[1], [0], [0], [1], [0, 0, 1, 1], [], []>} : vector<8x128xbf16>, vector<128x512xbf16>, vector<8x512xf32> -> vector<8x512xf32>
    %45 = arith.addf %41, %44 : vector<8x512xf32>
    %46 = vector.extract_strided_slice %45 {offsets = [0, 0], sizes = [8, 128], strides = [1, 1]} : vector<8x512xf32> to vector<8x128xf32>
    %47 = arith.negf %46 : vector<8x128xf32>
    %48 = math.exp %47 : vector<8x128xf32>
    %cst_19 = arith.constant 1.000000e+00 : f32
    %49 = vector.broadcast %cst_19 : f32 to vector<8x128xf32>
    %50 = arith.addf %49, %48 : vector<8x128xf32>
    %51 = arith.divf %49, %50 : vector<8x128xf32>
    %52 = vector.extract_strided_slice %45 {offsets = [0, 128], sizes = [8, 128], strides = [1, 1]} : vector<8x512xf32> to vector<8x128xf32>
    %53 = arith.negf %52 : vector<8x128xf32>
    %54 = math.exp %53 : vector<8x128xf32>
    %cst_20 = arith.constant 1.000000e+00 : f32
    %55 = vector.broadcast %cst_20 : f32 to vector<8x128xf32>
    %56 = arith.addf %55, %54 : vector<8x128xf32>
    %57 = arith.divf %55, %56 : vector<8x128xf32>
    %58 = vector.extract_strided_slice %45 {offsets = [0, 256], sizes = [8, 128], strides = [1, 1]} : vector<8x512xf32> to vector<8x128xf32>
    %59 = math.tanh %58 : vector<8x128xf32>
    %60 = vector.extract_strided_slice %45 {offsets = [0, 384], sizes = [8, 128], strides = [1, 1]} : vector<8x512xf32> to vector<8x128xf32>
    %61 = arith.negf %60 : vector<8x128xf32>
    %62 = math.exp %61 : vector<8x128xf32>
    %cst_21 = arith.constant 1.000000e+00 : f32
    %63 = vector.broadcast %cst_21 : f32 to vector<8x128xf32>
    %64 = arith.addf %63, %62 : vector<8x128xf32>
    %65 = arith.divf %63, %64 : vector<8x128xf32>
    %66 = arith.mulf %57, %34 : vector<8x128xf32>
    %67 = arith.mulf %51, %59 : vector<8x128xf32>
    %68 = arith.addf %66, %67 : vector<8x128xf32>
    %69 = math.tanh %68 : vector<8x128xf32>
    %70 = arith.mulf %65, %69 : vector<8x128xf32>
    %71 = arith.truncf %70 : vector<8x128xf32> to vector<8x128xbf16>
    %c8 = arith.constant 8 : index
    %c0_22 = arith.constant 0 : index
    %72 = vector.load %arg10[%c8, %c0_22] : memref<64x128xbf16, #tpu.memory_space<vmem>>, vector<8x128xbf16>
    tpu.vector_store %arg10[%c8, %c0_22], %71 {strides = array<i32>} : memref<64x128xbf16, #tpu.memory_space<vmem>>, vector<8x128xbf16>,
    %c2 = arith.constant 2 : index
    %c0_23 = arith.constant 0 : index
    %c0_24 = arith.constant 0 : index
    %73 = vector.load %arg1[%c2, %c0_23, %c0_24] : memref<8x8x512xbf16, #tpu.memory_space<vmem>>, vector<1x8x512xbf16>
    %74 = vector.shape_cast %73 : vector<1x8x512xbf16> to vector<8x512xbf16>
    %75 = arith.extf %74 : vector<8x512xbf16> to vector<8x512xf32>
    %76 = arith.truncf %70 : vector<8x128xf32> to vector<8x128xbf16>
    %c0_25 = arith.constant 0 : index
    %c0_26 = arith.constant 0 : index
    %77 = vector.load %arg2[%c0_25, %c0_26] : memref<128x512xbf16, #tpu.memory_space<vmem>>, vector<128x512xbf16>
    %cst_27 = arith.constant dense<0.000000e+00> : vector<8x512xf32>
    %78 = tpu.matmul %76, %77, %cst_27 {dimension_numbers = #tpu.dot_dimension_numbers<[1], [0], [0], [1], [0, 0, 1, 1], [], []>} : vector<8x128xbf16>, vector<128x512xbf16>, vector<8x512xf32> -> vector<8x512xf32>
    %79 = arith.addf %75, %78 : vector<8x512xf32>
    %80 = vector.extract_strided_slice %79 {offsets = [0, 0], sizes = [8, 128], strides = [1, 1]} : vector<8x512xf32> to vector<8x128xf32>
    %81 = arith.negf %80 : vector<8x128xf32>
    %82 = math.exp %81 : vector<8x128xf32>
    %cst_28 = arith.constant 1.000000e+00 : f32
    %83 = vector.broadcast %cst_28 : f32 to vector<8x128xf32>
    %84 = arith.addf %83, %82 : vector<8x128xf32>
    %85 = arith.divf %83, %84 : vector<8x128xf32>
    %86 = vector.extract_strided_slice %79 {offsets = [0, 128], sizes = [8, 128], strides = [1, 1]} : vector<8x512xf32> to vector<8x128xf32>
    %87 = arith.negf %86 : vector<8x128xf32>
    %88 = math.exp %87 : vector<8x128xf32>
    %cst_29 = arith.constant 1.000000e+00 : f32
    %89 = vector.broadcast %cst_29 : f32 to vector<8x128xf32>
    %90 = arith.addf %89, %88 : vector<8x128xf32>
    %91 = arith.divf %89, %90 : vector<8x128xf32>
    %92 = vector.extract_strided_slice %79 {offsets = [0, 256], sizes = [8, 128], strides = [1, 1]} : vector<8x512xf32> to vector<8x128xf32>
    %93 = math.tanh %92 : vector<8x128xf32>
    %94 = vector.extract_strided_slice %79 {offsets = [0, 384], sizes = [8, 128], strides = [1, 1]} : vector<8x512xf32> to vector<8x128xf32>
    %95 = arith.negf %94 : vector<8x128xf32>
    %96 = math.exp %95 : vector<8x128xf32>
    %cst_30 = arith.constant 1.000000e+00 : f32
    %97 = vector.broadcast %cst_30 : f32 to vector<8x128xf32>
    %98 = arith.addf %97, %96 : vector<8x128xf32>
    %99 = arith.divf %97, %98 : vector<8x128xf32>
    %100 = arith.mulf %91, %68 : vector<8x128xf32>
    %101 = arith.mulf %85, %93 : vector<8x128xf32>
    %102 = arith.addf %100, %101 : vector<8x128xf32>
    %103 = math.tanh %102 : vector<8x128xf32>
    %104 = arith.mulf %99, %103 : vector<8x128xf32>
    %105 = arith.truncf %104 : vector<8x128xf32> to vector<8x128xbf16>
    %c16 = arith.constant 16 : index
    %c0_31 = arith.constant 0 : index
    %106 = vector.load %arg10[%c16, %c0_31] : memref<64x128xbf16, #tpu.memory_space<vmem>>, vector<8x128xbf16>
    tpu.vector_store %arg10[%c16, %c0_31], %105 {strides = array<i32>} : memref<64x128xbf16, #tpu.memory_space<vmem>>, vector<8x128xbf16>,
    %c3 = arith.constant 3 : index
    %c0_32 = arith.constant 0 : index
    %c0_33 = arith.constant 0 : index
    %107 = vector.load %arg1[%c3, %c0_32, %c0_33] : memref<8x8x512xbf16, #tpu.memory_space<vmem>>, vector<1x8x512xbf16>
    %108 = vector.shape_cast %107 : vector<1x8x512xbf16> to vector<8x512xbf16>
    %109 = arith.extf %108 : vector<8x512xbf16> to vector<8x512xf32>
    %110 = arith.truncf %104 : vector<8x128xf32> to vector<8x128xbf16>
    %c0_34 = arith.constant 0 : index
    %c0_35 = arith.constant 0 : index
    %111 = vector.load %arg2[%c0_34, %c0_35] : memref<128x512xbf16, #tpu.memory_space<vmem>>, vector<128x512xbf16>
    %cst_36 = arith.constant dense<0.000000e+00> : vector<8x512xf32>
    %112 = tpu.matmul %110, %111, %cst_36 {dimension_numbers = #tpu.dot_dimension_numbers<[1], [0], [0], [1], [0, 0, 1, 1], [], []>} : vector<8x128xbf16>, vector<128x512xbf16>, vector<8x512xf32> -> vector<8x512xf32>
    %113 = arith.addf %109, %112 : vector<8x512xf32>
    %114 = vector.extract_strided_slice %113 {offsets = [0, 0], sizes = [8, 128], strides = [1, 1]} : vector<8x512xf32> to vector<8x128xf32>
    %115 = arith.negf %114 : vector<8x128xf32>
    %116 = math.exp %115 : vector<8x128xf32>
    %cst_37 = arith.constant 1.000000e+00 : f32
    %117 = vector.broadcast %cst_37 : f32 to vector<8x128xf32>
    %118 = arith.addf %117, %116 : vector<8x128xf32>
    %119 = arith.divf %117, %118 : vector<8x128xf32>
    %120 = vector.extract_strided_slice %113 {offsets = [0, 128], sizes = [8, 128], strides = [1, 1]} : vector<8x512xf32> to vector<8x128xf32>
    %121 = arith.negf %120 : vector<8x128xf32>
    %122 = math.exp %121 : vector<8x128xf32>
    %cst_38 = arith.constant 1.000000e+00 : f32
    %123 = vector.broadcast %cst_38 : f32 to vector<8x128xf32>
    %124 = arith.addf %123, %122 : vector<8x128xf32>
    %125 = arith.divf %123, %124 : vector<8x128xf32>
    %126 = vector.extract_strided_slice %113 {offsets = [0, 256], sizes = [8, 128], strides = [1, 1]} : vector<8x512xf32> to vector<8x128xf32>
    %127 = math.tanh %126 : vector<8x128xf32>
    %128 = vector.extract_strided_slice %113 {offsets = [0, 384], sizes = [8, 128], strides = [1, 1]} : vector<8x512xf32> to vector<8x128xf32>
    %129 = arith.negf %128 : vector<8x128xf32>
    %130 = math.exp %129 : vector<8x128xf32>
    %cst_39 = arith.constant 1.000000e+00 : f32
    %131 = vector.broadcast %cst_39 : f32 to vector<8x128xf32>
    %132 = arith.addf %131, %130 : vector<8x128xf32>
    %133 = arith.divf %131, %132 : vector<8x128xf32>
    %134 = arith.mulf %125, %102 : vector<8x128xf32>
    %135 = arith.mulf %119, %127 : vector<8x128xf32>
    %136 = arith.addf %134, %135 : vector<8x128xf32>
    %137 = math.tanh %136 : vector<8x128xf32>
    %138 = arith.mulf %133, %137 : vector<8x128xf32>
    %139 = arith.truncf %138 : vector<8x128xf32> to vector<8x128xbf16>
    %c24 = arith.constant 24 : index
    %c0_40 = arith.constant 0 : index
    %140 = vector.load %arg10[%c24, %c0_40] : memref<64x128xbf16, #tpu.memory_space<vmem>>, vector<8x128xbf16>
    tpu.vector_store %arg10[%c24, %c0_40], %139 {strides = array<i32>} : memref<64x128xbf16, #tpu.memory_space<vmem>>, vector<8x128xbf16>,
    %c4 = arith.constant 4 : index
    %c0_41 = arith.constant 0 : index
    %c0_42 = arith.constant 0 : index
    %141 = vector.load %arg1[%c4, %c0_41, %c0_42] : memref<8x8x512xbf16, #tpu.memory_space<vmem>>, vector<1x8x512xbf16>
    %142 = vector.shape_cast %141 : vector<1x8x512xbf16> to vector<8x512xbf16>
    %143 = arith.extf %142 : vector<8x512xbf16> to vector<8x512xf32>
    %144 = arith.truncf %138 : vector<8x128xf32> to vector<8x128xbf16>
    %c0_43 = arith.constant 0 : index
    %c0_44 = arith.constant 0 : index
    %145 = vector.load %arg2[%c0_43, %c0_44] : memref<128x512xbf16, #tpu.memory_space<vmem>>, vector<128x512xbf16>
    %cst_45 = arith.constant dense<0.000000e+00> : vector<8x512xf32>
    %146 = tpu.matmul %144, %145, %cst_45 {dimension_numbers = #tpu.dot_dimension_numbers<[1], [0], [0], [1], [0, 0, 1, 1], [], []>} : vector<8x128xbf16>, vector<128x512xbf16>, vector<8x512xf32> -> vector<8x512xf32>
    %147 = arith.addf %143, %146 : vector<8x512xf32>
    %148 = vector.extract_strided_slice %147 {offsets = [0, 0], sizes = [8, 128], strides = [1, 1]} : vector<8x512xf32> to vector<8x128xf32>
    %149 = arith.negf %148 : vector<8x128xf32>
    %150 = math.exp %149 : vector<8x128xf32>
    %cst_46 = arith.constant 1.000000e+00 : f32
    %151 = vector.broadcast %cst_46 : f32 to vector<8x128xf32>
    %152 = arith.addf %151, %150 : vector<8x128xf32>
    %153 = arith.divf %151, %152 : vector<8x128xf32>
    %154 = vector.extract_strided_slice %147 {offsets = [0, 128], sizes = [8, 128], strides = [1, 1]} : vector<8x512xf32> to vector<8x128xf32>
    %155 = arith.negf %154 : vector<8x128xf32>
    %156 = math.exp %155 : vector<8x128xf32>
    %cst_47 = arith.constant 1.000000e+00 : f32
    %157 = vector.broadcast %cst_47 : f32 to vector<8x128xf32>
    %158 = arith.addf %157, %156 : vector<8x128xf32>
    %159 = arith.divf %157, %158 : vector<8x128xf32>
    %160 = vector.extract_strided_slice %147 {offsets = [0, 256], sizes = [8, 128], strides = [1, 1]} : vector<8x512xf32> to vector<8x128xf32>
    %161 = math.tanh %160 : vector<8x128xf32>
    %162 = vector.extract_strided_slice %147 {offsets = [0, 384], sizes = [8, 128], strides = [1, 1]} : vector<8x512xf32> to vector<8x128xf32>
    %163 = arith.negf %162 : vector<8x128xf32>
    %164 = math.exp %163 : vector<8x128xf32>
    %cst_48 = arith.constant 1.000000e+00 : f32
    %165 = vector.broadcast %cst_48 : f32 to vector<8x128xf32>
    %166 = arith.addf %165, %164 : vector<8x128xf32>
    %167 = arith.divf %165, %166 : vector<8x128xf32>
    %168 = arith.mulf %159, %136 : vector<8x128xf32>
    %169 = arith.mulf %153, %161 : vector<8x128xf32>
    %170 = arith.addf %168, %169 : vector<8x128xf32>
    %171 = math.tanh %170 : vector<8x128xf32>
    %172 = arith.mulf %167, %171 : vector<8x128xf32>
    %173 = arith.truncf %172 : vector<8x128xf32> to vector<8x128xbf16>
    %c32 = arith.constant 32 : index
    %c0_49 = arith.constant 0 : index
    %174 = vector.load %arg10[%c32, %c0_49] : memref<64x128xbf16, #tpu.memory_space<vmem>>, vector<8x128xbf16>
    tpu.vector_store %arg10[%c32, %c0_49], %173 {strides = array<i32>} : memref<64x128xbf16, #tpu.memory_space<vmem>>, vector<8x128xbf16>,
    %c5 = arith.constant 5 : index
    %c0_50 = arith.constant 0 : index
    %c0_51 = arith.constant 0 : index
    %175 = vector.load %arg1[%c5, %c0_50, %c0_51] : memref<8x8x512xbf16, #tpu.memory_space<vmem>>, vector<1x8x512xbf16>
    %176 = vector.shape_cast %175 : vector<1x8x512xbf16> to vector<8x512xbf16>
    %177 = arith.extf %176 : vector<8x512xbf16> to vector<8x512xf32>
    %178 = arith.truncf %172 : vector<8x128xf32> to vector<8x128xbf16>
    %c0_52 = arith.constant 0 : index
    %c0_53 = arith.constant 0 : index
    %179 = vector.load %arg2[%c0_52, %c0_53] : memref<128x512xbf16, #tpu.memory_space<vmem>>, vector<128x512xbf16>
    %cst_54 = arith.constant dense<0.000000e+00> : vector<8x512xf32>
    %180 = tpu.matmul %178, %179, %cst_54 {dimension_numbers = #tpu.dot_dimension_numbers<[1], [0], [0], [1], [0, 0, 1, 1], [], []>} : vector<8x128xbf16>, vector<128x512xbf16>, vector<8x512xf32> -> vector<8x512xf32>
    %181 = arith.addf %177, %180 : vector<8x512xf32>
    %182 = vector.extract_strided_slice %181 {offsets = [0, 0], sizes = [8, 128], strides = [1, 1]} : vector<8x512xf32> to vector<8x128xf32>
    %183 = arith.negf %182 : vector<8x128xf32>
    %184 = math.exp %183 : vector<8x128xf32>
    %cst_55 = arith.constant 1.000000e+00 : f32
    %185 = vector.broadcast %cst_55 : f32 to vector<8x128xf32>
    %186 = arith.addf %185, %184 : vector<8x128xf32>
    %187 = arith.divf %185, %186 : vector<8x128xf32>
    %188 = vector.extract_strided_slice %181 {offsets = [0, 128], sizes = [8, 128], strides = [1, 1]} : vector<8x512xf32> to vector<8x128xf32>
    %189 = arith.negf %188 : vector<8x128xf32>
    %190 = math.exp %189 : vector<8x128xf32>
    %cst_56 = arith.constant 1.000000e+00 : f32
    %191 = vector.broadcast %cst_56 : f32 to vector<8x128xf32>
    %192 = arith.addf %191, %190 : vector<8x128xf32>
    %193 = arith.divf %191, %192 : vector<8x128xf32>
    %194 = vector.extract_strided_slice %181 {offsets = [0, 256], sizes = [8, 128], strides = [1, 1]} : vector<8x512xf32> to vector<8x128xf32>
    %195 = math.tanh %194 : vector<8x128xf32>
    %196 = vector.extract_strided_slice %181 {offsets = [0, 384], sizes = [8, 128], strides = [1, 1]} : vector<8x512xf32> to vector<8x128xf32>
    %197 = arith.negf %196 : vector<8x128xf32>
    %198 = math.exp %197 : vector<8x128xf32>
    %cst_57 = arith.constant 1.000000e+00 : f32
    %199 = vector.broadcast %cst_57 : f32 to vector<8x128xf32>
    %200 = arith.addf %199, %198 : vector<8x128xf32>
    %201 = arith.divf %199, %200 : vector<8x128xf32>
    %202 = arith.mulf %193, %170 : vector<8x128xf32>
    %203 = arith.mulf %187, %195 : vector<8x128xf32>
    %204 = arith.addf %202, %203 : vector<8x128xf32>
    %205 = math.tanh %204 : vector<8x128xf32>
    %206 = arith.mulf %201, %205 : vector<8x128xf32>
    %207 = arith.truncf %206 : vector<8x128xf32> to vector<8x128xbf16>
    %c40 = arith.constant 40 : index
    %c0_58 = arith.constant 0 : index
    %208 = vector.load %arg10[%c40, %c0_58] : memref<64x128xbf16, #tpu.memory_space<vmem>>, vector<8x128xbf16>
    tpu.vector_store %arg10[%c40, %c0_58], %207 {strides = array<i32>} : memref<64x128xbf16, #tpu.memory_space<vmem>>, vector<8x128xbf16>,
    %c6 = arith.constant 6 : index
    %c0_59 = arith.constant 0 : index
    %c0_60 = arith.constant 0 : index
    %209 = vector.load %arg1[%c6, %c0_59, %c0_60] : memref<8x8x512xbf16, #tpu.memory_space<vmem>>, vector<1x8x512xbf16>
    %210 = vector.shape_cast %209 : vector<1x8x512xbf16> to vector<8x512xbf16>
    %211 = arith.extf %210 : vector<8x512xbf16> to vector<8x512xf32>
    %212 = arith.truncf %206 : vector<8x128xf32> to vector<8x128xbf16>
    %c0_61 = arith.constant 0 : index
    %c0_62 = arith.constant 0 : index
    %213 = vector.load %arg2[%c0_61, %c0_62] : memref<128x512xbf16, #tpu.memory_space<vmem>>, vector<128x512xbf16>
    %cst_63 = arith.constant dense<0.000000e+00> : vector<8x512xf32>
    %214 = tpu.matmul %212, %213, %cst_63 {dimension_numbers = #tpu.dot_dimension_numbers<[1], [0], [0], [1], [0, 0, 1, 1], [], []>} : vector<8x128xbf16>, vector<128x512xbf16>, vector<8x512xf32> -> vector<8x512xf32>
    %215 = arith.addf %211, %214 : vector<8x512xf32>
    %216 = vector.extract_strided_slice %215 {offsets = [0, 0], sizes = [8, 128], strides = [1, 1]} : vector<8x512xf32> to vector<8x128xf32>
    %217 = arith.negf %216 : vector<8x128xf32>
    %218 = math.exp %217 : vector<8x128xf32>
    %cst_64 = arith.constant 1.000000e+00 : f32
    %219 = vector.broadcast %cst_64 : f32 to vector<8x128xf32>
    %220 = arith.addf %219, %218 : vector<8x128xf32>
    %221 = arith.divf %219, %220 : vector<8x128xf32>
    %222 = vector.extract_strided_slice %215 {offsets = [0, 128], sizes = [8, 128], strides = [1, 1]} : vector<8x512xf32> to vector<8x128xf32>
    %223 = arith.negf %222 : vector<8x128xf32>
    %224 = math.exp %223 : vector<8x128xf32>
    %cst_65 = arith.constant 1.000000e+00 : f32
    %225 = vector.broadcast %cst_65 : f32 to vector<8x128xf32>
    %226 = arith.addf %225, %224 : vector<8x128xf32>
    %227 = arith.divf %225, %226 : vector<8x128xf32>
    %228 = vector.extract_strided_slice %215 {offsets = [0, 256], sizes = [8, 128], strides = [1, 1]} : vector<8x512xf32> to vector<8x128xf32>
    %229 = math.tanh %228 : vector<8x128xf32>
    %230 = vector.extract_strided_slice %215 {offsets = [0, 384], sizes = [8, 128], strides = [1, 1]} : vector<8x512xf32> to vector<8x128xf32>
    %231 = arith.negf %230 : vector<8x128xf32>
    %232 = math.exp %231 : vector<8x128xf32>
    %cst_66 = arith.constant 1.000000e+00 : f32
    %233 = vector.broadcast %cst_66 : f32 to vector<8x128xf32>
    %234 = arith.addf %233, %232 : vector<8x128xf32>
    %235 = arith.divf %233, %234 : vector<8x128xf32>
    %236 = arith.mulf %227, %204 : vector<8x128xf32>
    %237 = arith.mulf %221, %229 : vector<8x128xf32>
    %238 = arith.addf %236, %237 : vector<8x128xf32>
    %239 = math.tanh %238 : vector<8x128xf32>
    %240 = arith.mulf %235, %239 : vector<8x128xf32>
    %241 = arith.truncf %240 : vector<8x128xf32> to vector<8x128xbf16>
    %c48 = arith.constant 48 : index
    %c0_67 = arith.constant 0 : index
    %242 = vector.load %arg10[%c48, %c0_67] : memref<64x128xbf16, #tpu.memory_space<vmem>>, vector<8x128xbf16>
    tpu.vector_store %arg10[%c48, %c0_67], %241 {strides = array<i32>} : memref<64x128xbf16, #tpu.memory_space<vmem>>, vector<8x128xbf16>,
    %c7 = arith.constant 7 : index
    %c0_68 = arith.constant 0 : index
    %c0_69 = arith.constant 0 : index
    %243 = vector.load %arg1[%c7, %c0_68, %c0_69] : memref<8x8x512xbf16, #tpu.memory_space<vmem>>, vector<1x8x512xbf16>
    %244 = vector.shape_cast %243 : vector<1x8x512xbf16> to vector<8x512xbf16>
    %245 = arith.extf %244 : vector<8x512xbf16> to vector<8x512xf32>
    %246 = arith.truncf %240 : vector<8x128xf32> to vector<8x128xbf16>
    %c0_70 = arith.constant 0 : index
    %c0_71 = arith.constant 0 : index
    %247 = vector.load %arg2[%c0_70, %c0_71] : memref<128x512xbf16, #tpu.memory_space<vmem>>, vector<128x512xbf16>
    %cst_72 = arith.constant dense<0.000000e+00> : vector<8x512xf32>
    %248 = tpu.matmul %246, %247, %cst_72 {dimension_numbers = #tpu.dot_dimension_numbers<[1], [0], [0], [1], [0, 0, 1, 1], [], []>} : vector<8x128xbf16>, vector<128x512xbf16>, vector<8x512xf32> -> vector<8x512xf32>
    %249 = arith.addf %245, %248 : vector<8x512xf32>
    %250 = vector.extract_strided_slice %249 {offsets = [0, 0], sizes = [8, 128], strides = [1, 1]} : vector<8x512xf32> to vector<8x128xf32>
    %251 = arith.negf %250 : vector<8x128xf32>
    %252 = math.exp %251 : vector<8x128xf32>
    %cst_73 = arith.constant 1.000000e+00 : f32
    %253 = vector.broadcast %cst_73 : f32 to vector<8x128xf32>
    %254 = arith.addf %253, %252 : vector<8x128xf32>
    %255 = arith.divf %253, %254 : vector<8x128xf32>
    %256 = vector.extract_strided_slice %249 {offsets = [0, 128], sizes = [8, 128], strides = [1, 1]} : vector<8x512xf32> to vector<8x128xf32>
    %257 = arith.negf %256 : vector<8x128xf32>
    %258 = math.exp %257 : vector<8x128xf32>
    %cst_74 = arith.constant 1.000000e+00 : f32
    %259 = vector.broadcast %cst_74 : f32 to vector<8x128xf32>
    %260 = arith.addf %259, %258 : vector<8x128xf32>
    %261 = arith.divf %259, %260 : vector<8x128xf32>
    %262 = vector.extract_strided_slice %249 {offsets = [0, 256], sizes = [8, 128], strides = [1, 1]} : vector<8x512xf32> to vector<8x128xf32>
    %263 = math.tanh %262 : vector<8x128xf32>
    %264 = vector.extract_strided_slice %249 {offsets = [0, 384], sizes = [8, 128], strides = [1, 1]} : vector<8x512xf32> to vector<8x128xf32>
    %265 = arith.negf %264 : vector<8x128xf32>
    %266 = math.exp %265 : vector<8x128xf32>
    %cst_75 = arith.constant 1.000000e+00 : f32
    %267 = vector.broadcast %cst_75 : f32 to vector<8x128xf32>
    %268 = arith.addf %267, %266 : vector<8x128xf32>
    %269 = arith.divf %267, %268 : vector<8x128xf32>
    %270 = arith.mulf %261, %238 : vector<8x128xf32>
    %271 = arith.mulf %255, %263 : vector<8x128xf32>
    %272 = arith.addf %270, %271 : vector<8x128xf32>
    %273 = math.tanh %272 : vector<8x128xf32>
    %274 = arith.mulf %269, %273 : vector<8x128xf32>
    %275 = arith.truncf %274 : vector<8x128xf32> to vector<8x128xbf16>
    %c56 = arith.constant 56 : index
    %c0_76 = arith.constant 0 : index
    %276 = vector.load %arg10[%c56, %c0_76] : memref<64x128xbf16, #tpu.memory_space<vmem>>, vector<8x128xbf16>
    tpu.vector_store %arg10[%c56, %c0_76], %275 {strides = array<i32>} : memref<64x128xbf16, #tpu.memory_space<vmem>>, vector<8x128xbf16>,
    %c0_77 = arith.constant 0 : index
    %c0_78 = arith.constant 0 : index
    %277 = vector.load %arg8[%c0_77, %c0_78] : memref<8x128xf32, #tpu.memory_space<vmem>>, vector<8x128xf32>
    tpu.vector_store %arg8[%c0_77, %c0_78], %274 {strides = array<i32>} : memref<8x128xf32, #tpu.memory_space<vmem>>, vector<8x128xf32>,
    %c0_79 = arith.constant 0 : index
    %c0_80 = arith.constant 0 : index
    %278 = vector.load %arg9[%c0_79, %c0_80] : memref<8x128xf32, #tpu.memory_space<vmem>>, vector<8x128xf32>
    tpu.vector_store %arg9[%c0_79, %c0_80], %272 {strides = array<i32>} : memref<8x128xf32, #tpu.memory_space<vmem>>, vector<8x128xf32>,
    %c0_81 = arith.constant 0 : index
    %c0_82 = arith.constant 0 : index
    %279 = vector.load %arg10[%c0_81, %c0_82] : memref<64x128xbf16, #tpu.memory_space<vmem>>, vector<64x128xbf16>
    %c0_83 = arith.constant 0 : index
    %c0_84 = arith.constant 0 : index
    %280 = vector.load %arg5[%c0_83, %c0_84] : memref<128x128xbf16, #tpu.memory_space<vmem>>, vector<128x128xbf16>
    %cst_85 = arith.constant dense<0.000000e+00> : vector<64x128xf32>
    %281 = tpu.matmul %279, %280, %cst_85 {dimension_numbers = #tpu.dot_dimension_numbers<[1], [0], [0], [1], [0, 0, 1, 1], [], []>} : vector<64x128xbf16>, vector<128x128xbf16>, vector<64x128xf32> -> vector<64x128xf32>
    %c0_86 = arith.constant 0 : index
    %c0_87 = arith.constant 0 : index
    %282 = vector.load %arg6[%c0_86, %c0_87] : memref<1x128xf32, #tpu.memory_space<vmem>>, vector<1x128xf32>
    %283 = vector.broadcast %282 : vector<1x128xf32> to vector<64x128xf32>
    %284 = arith.addf %281, %283 : vector<64x128xf32>
    %c0_88 = arith.constant 0 : index
    %c0_89 = arith.constant 0 : index
    %285 = vector.load %arg7[%c0_88, %c0_89] : memref<64x128xf32, #tpu.memory_space<vmem>>, vector<64x128xf32>
    tpu.vector_store %arg7[%c0_88, %c0_89], %284 {strides = array<i32>} : memref<64x128xf32, #tpu.memory_space<vmem>>, vector<64x128xf32>,
    return
  }
  func.func @transform_0(%arg0: i32) -> (i32, i32, i32) {
    %c0_i32 = arith.constant 0 : i32
    %c0_i32_0 = arith.constant 0 : i32
    %c0_i32_1 = arith.constant 0 : i32
    return %arg0, %c0_i32, %c0_i32_0 : i32, i32, i32
  }
  func.func @transform_1(%arg0: i32) -> (i32, i32) {
    %c0_i32 = arith.constant 0 : i32
    %c0_i32_0 = arith.constant 0 : i32
    %c0_i32_1 = arith.constant 0 : i32
    return %c0_i32, %c0_i32_0 : i32, i32
  }
  func.func @transform_2(%arg0: i32) -> (i32, i32) {
    %c0_i32 = arith.constant 0 : i32
    %c0_i32_0 = arith.constant 0 : i32
    %c0_i32_1 = arith.constant 0 : i32
    return %c0_i32, %c0_i32_0 : i32, i32
  }
  func.func @transform_3(%arg0: i32) -> (i32, i32) {
    %c0_i32 = arith.constant 0 : i32
    %c0_i32_0 = arith.constant 0 : i32
    %c0_i32_1 = arith.constant 0 : i32
    return %c0_i32, %c0_i32_0 : i32, i32
  }
  func.func @transform_4(%arg0: i32) -> (i32, i32) {
    %c0_i32 = arith.constant 0 : i32
    %c0_i32_0 = arith.constant 0 : i32
    %c0_i32_1 = arith.constant 0 : i32
    return %c0_i32, %c0_i32_0 : i32, i32
  }
  func.func @transform_5(%arg0: i32) -> (i32, i32) {
    %c0_i32 = arith.constant 0 : i32
    %c0_i32_0 = arith.constant 0 : i32
    %c0_i32_1 = arith.constant 0 : i32
    return %c0_i32, %c0_i32_0 : i32, i32
  }
  func.func @transform_6(%arg0: i32) -> (i32, i32) {
    %c0_i32 = arith.constant 0 : i32
    %c0_i32_0 = arith.constant 0 : i32
    return %arg0, %c0_i32 : i32, i32
  }
}

</mosaic_0001>

<bundles_post_ra>
// kernel: text_rnn_forward.3
= control target key start
LH: loop header
LB: loop body
LE: loop exit
PB: predicated region body
PF: predicated region fallthrough
CT: control target
= control target key end

     0   :  { %s918_s18 = smov 0   ;;  %s920_s19 = smov 0   ;;  %s1061_s0 = inlined_call_operand.vmem [shape: bf16[2,64,16], index: 0, kind: input, shape index: {}]   ;;  %s1062_s1 = inlined_call_operand.vmem [shape: bf16[16,32], index: 1, kind: input, shape index: {}]   ;;  %s1063_s2 = inlined_call_operand.vmem [shape: f32[1,32], index: 2, kind: input, shape index: {}]   ;;  %s1064_s3 = inlined_call_operand.vmem [shape: bf16[2,32,512], index: 3, kind: input, shape index: {}]   ;;  %s1065_s4 = inlined_call_operand.vmem [shape: f32[2,1,512], index: 4, kind: input, shape index: {}]   ;;  %s1066_s5 = inlined_call_operand.vmem [shape: bf16[2,64,512], index: 5, kind: output, shape index: {}]  }
   0x1   :  { %s922_s20 = smov 0  }
   0x2 LB: > { %s27_s21 = sadd.s32 1, %s882_s19  ;;  %p738_p0 = scmp.ge.s32.totalorder %s886_s20, 1  ;;  %s886_s20 = sphi %s922_s20, %s15_s20   ;;  %s882_s19 = sphi %s920_s19, %s1068_s19   ;;  %s878_s18 = sphi %s918_s18, %s1067_s18  }
   0x3   : > { %p29_p1 = scmp.ge.s32.totalorder %s27_s21, 2  ;;  %p227_p2 = scmp.lt.s32.totalorder %s886_s20, 3 }
   0x5   : > { %s1070_s21 = smov (%p29_p1, %s27_s21), 0  ;;  %p228_p3 = pnand %p738_p0, %p227_p2 }
   0x6   : > { %p274_p4 = scmp.lt.s32.totalorder (!%p228_p3), %s878_s18, 1 }
   0x7   : > { %231 = sbr.rel (%p228_p3) target bundleno = 350 (0x15e), region = 40 }
   0xc   : > { %v827_v0 = vld [vmem:[%s1062_s1] sm:$0xff]  ;;  %s1072_s18 = smov (!%p274_p4, %s878_s18), 1  ;;  %vm344_vm0 = vcmask 130048   ;;  %vm456_vm1 = vcmask 261120  }
   0xd   : > { %364 = vmatpush.bf16.msra.mxu0 %v827_v0  ;;  %836 = vmatpush.bf16.msra.mxu1 %v827_v0  ;;  %s820_s24 = sshll.u32 %s1072_s18, 5  ;;  %s821_s25 = sshll.u32 %s1072_s18, 6  ;;  %v863_v30 = vld [vmem:[%s1063_s2] ss:$0 sm:$0xff] }
   0xe   : > { %837 = vmatpush.bf16.msra.mxu2 %v827_v0  ;;  %838 = vmatpush.bf16.msra.mxu3 %v827_v0  ;;  %s281_s28 = scalar_lea.vmem %s1061_s0, %s820_s24  ;;  %s949_s6 = scalar_lea.vmem %s1064_s3, %s821_s25 }
   0xf   : > { %v823_v1 = vld [vmem:[%s281_s28] sm:$0xff]  ;;  %v824_v2 = vld [vmem:[%s281_s28 + $0x8] sm:$0xff]  ;;  %v825_v3 = vld [vmem:[%s281_s28 + $0x10] sm:$0xff]  ;;  %s743_s9 = sshll.u32 %s1072_s18, 2  ;;  %s822_s13 = sshll.u32 %s1072_s18, 7 }
  0x10   : > { %v826_v4 = vld [vmem:[%s281_s28 + $0x18] sm:$0xff]  ;;  %v832_v5 = vld [vmem:[%s949_s6 + $0x24] sm:$0xf]  ;;  %v790_v6 = vld [vmem:[%s949_s6 + $0x30] sm:$0xf0]  ;;  %766 = vmatmul.msk.bf16.vlgmr.msra.gmra.mxu0 %vm344_vm0, %v823_v1  ;;  %767 = vmatmul.msk.bf16.vlgmr.msra.gmra.mxu1 %vm344_vm0, %v824_v2  ;;  %s291_s12 = scalar_lea.vmem %s1065_s4, %s743_s9  ;;  %s1004_s16 = scalar_lea.vmem %s1066_s5, %s822_s13 }
  0x11   : > { %v793_v7 = vor.u32 %v832_v5, %v790_v6  ;;  %v796_v8 = vld [vmem:[%s949_s6 + $0x28] sm:$0xf]  ;;  %v835_v9 = vld [vmem:[%s949_s6 + $0x34] sm:$0xf0]  ;;  %768 = vmatmul.msk.bf16.vlgmr.msra.gmra.mxu2 %vm344_vm0, %v825_v3  ;;  %769 = vmatmul.msk.bf16.vlgmr.msra.gmra.mxu3 %vm344_vm0, %v826_v4  ;;  %v788_v11 = vld [vmem:[%s949_s6 + $0x20] sm:$0xf] }
  0x12   : > { %v797_v10 = vor.u32 %v835_v9, %v796_v8  ;;  %v834_v12 = vld [vmem:[%s949_s6 + $0x2c] sm:$0xf0]  ;;  %v833_v13 = vld [vmem:[%s949_s6 + $0x2c] sm:$0xf]  ;;  %v798_v15 = vld [vmem:[%s949_s6 + $0x38] sm:$0xf0] }
  0x13   : > { %504 = vmatpush.bf16.msrb.mxu2 %v793_v7  ;;  %v789_v14 = vor.u32 %v834_v12, %v788_v11  ;;  %v828_v16 = vld [vmem:[%s949_s6 + $0x4] sm:$0xf]  ;;  %v774_v17 = vld [vmem:[%s949_s6 + $0x10] sm:$0xf0]  ;;  %v801_v18 = vor.u32 %v833_v13, %v798_v15  ;;  %v780_v20 = vld [vmem:[%s949_s6 + $0x8] sm:$0xf] }
  0x14   : > { %533 = vmatpush.bf16.msrb.mxu3 %v797_v10  ;;  %v777_v19 = vor.u32 %v828_v16, %v774_v17  ;;  %v831_v21 = vld [vmem:[%s949_s6 + $0x14] sm:$0xf0]  ;;  %v772_v23 = vld [vmem:[%s949_s6] sm:$0xf]  ;;  %v830_v24 = vld [vmem:[%s949_s6 + $0xc] sm:$0xf0] }
  0x15   : > { %475 = vmatpush.bf16.msrb.mxu1 %v789_v14  ;;  %v781_v22 = vor.u32 %v831_v21, %v780_v20  ;;  %562 = vmatpush.bf16.msrb.mxu0 %v801_v18  ;;  %v829_v25 = vld [vmem:[%s949_s6 + $0xc] sm:$0xf]  ;;  %v773_v26 = vor.u32 %v830_v24, %v772_v23  ;;  %v782_v27 = vld [vmem:[%s949_s6 + $0x18] sm:$0xf0]  ;;  %v406_v58 = vld [vmem:[%s291_s12] sm:$0xf] }
  0x16   : > { %v785_v28 = vor.u32 %v829_v25, %v782_v27  ;;  %v990_v61 = vperm.slane %v406_v58, 0  ;;  %v992_v62 = vperm.slane %v406_v58, 1  ;;  %v994_v63 = vperm.slane %v406_v58, 3 }
  0x17   : > { %505 = vmatpush.bf16.msrb.mxu2 %v777_v19  ;;  %v996_v0 = vperm.slane %v406_v58, 2 }
  0x18   : > { %534 = vmatpush.bf16.msrb.mxu3 %v781_v22 }
  0x19   : > { %476 = vmatpush.bf16.msrb.mxu1 %v773_v26  ;;  %563 = vmatpush.bf16.msrb.mxu0 %v785_v28 }
  0x8d   : > { %v366_v29 = vpop.f32.mrf.mxu0  ;;  %v371_v33 = vpop.f32.mrf.mxu1 }
  0x8e   : > { %v367_v31 = vadd.f32 %v863_v30, %v366_v29  ;;  %v372_v39 = vadd.f32 %v863_v30, %v371_v33 }
  0x90   : > { %v386_v35 = vmax.f32 %v367_v31, 0.0  ;;  %v388_v42 = vmax.f32 %v372_v39, 0.0 }
  0x94   : > { %v376_v41 = vpop.f32.mrf.mxu2  ;;  %v381_v48 = vpop.f32.mrf.mxu3 }
  0x95   : > { %v368_v32 = vpop.f32.mrf.mxu0  ;;  %v373_v38 = vpop.f32.mrf.mxu1  ;;  %v377_v46 = vadd.f32 %v863_v30, %v376_v41  ;;  %v382_v53 = vadd.f32 %v863_v30, %v381_v48 }
  0x96   : > { %v369_v34 = vadd.f32 %v863_v30, %v368_v32  ;;  %v374_v40 = vadd.f32 %v863_v30, %v373_v38 }
  0x97   : > { %v390_v49 = vmax.f32 %v377_v46, 0.0  ;;  %v392_v55 = vmax.f32 %v382_v53, 0.0 }
  0x98   : > { %v387_v36 = vmax.f32 %v369_v34, 0.0  ;;  %v389_v43 = vmax.f32 %v374_v40, 0.0 }
  0x9a   : > { %v394_v37 = vpack.c.bf16 %v387_v36, %v386_v35  ;;  %v395_v44 = vpack.c.bf16 %v389_v43, %v388_v42 }
  0x9c   : > { %802 = vmatmul.msk.bf16.vlgmr.msrb.gmra.mxu1 %vm456_vm1, %v394_v37  ;;  %806 = vmatmul.msk.bf16.vlgmr.msrb.gmra.mxu2 %vm456_vm1, %v394_v37  ;;  %v378_v45 = vpop.f32.mrf.mxu2  ;;  %v383_v52 = vpop.f32.mrf.mxu3 }
  0x9d   : > { %810 = vmatmul.msk.bf16.vlgmr.msrb.gmra.mxu3 %vm456_vm1, %v394_v37  ;;  %814 = vmatmul.msk.bf16.vlgmr.msrb.gmra.mxu0 %vm456_vm1, %v394_v37  ;;  %v379_v47 = vadd.f32 %v863_v30, %v378_v45  ;;  %v384_v54 = vadd.f32 %v863_v30, %v383_v52 }
  0x9f   : > { %v391_v50 = vmax.f32 %v379_v47, 0.0  ;;  %v393_v56 = vmax.f32 %v384_v54, 0.0 }
  0xa1   : > { %v396_v51 = vpack.c.bf16 %v391_v50, %v390_v49  ;;  %v397_v57 = vpack.c.bf16 %v393_v56, %v392_v55 }
  0xac   : > { %803 = vmatmul.msk.bf16.gmra.mxu1 %vm456_vm1, %v395_v44  ;;  %807 = vmatmul.msk.bf16.gmra.mxu2 %vm456_vm1, %v395_v44 }
  0xad   : > { %811 = vmatmul.msk.bf16.gmra.mxu3 %vm456_vm1, %v395_v44  ;;  %815 = vmatmul.msk.bf16.gmra.mxu0 %vm456_vm1, %v395_v44 }
  0xbc   : > { %804 = vmatmul.msk.bf16.gmra.mxu1 %vm456_vm1, %v396_v51  ;;  %808 = vmatmul.msk.bf16.gmra.mxu2 %vm456_vm1, %v396_v51 }
  0xbd   : > { %812 = vmatmul.msk.bf16.gmra.mxu3 %vm456_vm1, %v396_v51  ;;  %816 = vmatmul.msk.bf16.gmra.mxu0 %vm456_vm1, %v396_v51 }
  0xcc   : > { %805 = vmatmul.msk.bf16.gmra.mxu1 %vm456_vm1, %v397_v57  ;;  %809 = vmatmul.msk.bf16.gmra.mxu2 %vm456_vm1, %v397_v57 }
  0xcd   : > { %813 = vmatmul.msk.bf16.gmra.mxu3 %vm456_vm1, %v397_v57  ;;  %817 = vmatmul.msk.bf16.gmra.mxu0 %vm456_vm1, %v397_v57 }
 0x119   : > { %v478_v59 = vpop.f32.mrf.mxu1 }
 0x11a   : > { %v565_v60 = vpop.f32.mrf.mxu0  ;;  %v479_v2 = vadd.f32 %v478_v59, %v990_v61 }
 0x11b   : > { %v566_v5 = vadd.f32 %v565_v60, %v994_v63 }
 0x11f   : > { %v507_v1 = vpop.f32.mrf.mxu2 }
 0x120   : > { %v508_v3 = vadd.f32 %v507_v1, %v992_v62  ;;  %v536_v4 = vpop.f32.mrf.mxu3 }
 0x121   : > { %v537_v6 = vadd.f32 %v536_v4, %v996_v0  ;;  %v480_v7 = vpop.f32.mrf.mxu1 }
 0x122   : > { %v585_v8 = vpack.c.bf16 %v508_v3, %v479_v2  ;;  %v567_v9 = vpop.f32.mrf.mxu0  ;;  %v481_v12 = vadd.f32 %v480_v7, %v990_v61 }
 0x123   : > { %v586_v10 = vpack.c.bf16 %v566_v5, %v537_v6  ;;  %v568_v15 = vadd.f32 %v567_v9, %v994_v63 }
 0x124   : > { %601 = vst [vmem:[%s1004_s16] sm:$0xff] %v585_v8 }
 0x125   : > { %602 = vst [vmem:[%s1004_s16 + $0x8] sm:$0xff] %v586_v10 }
 0x127   : > { %v509_v11 = vpop.f32.mrf.mxu2 }
 0x128   : > { %v510_v13 = vadd.f32 %v509_v11, %v992_v62  ;;  %v538_v14 = vpop.f32.mrf.mxu3 }
 0x129   : > { %v539_v16 = vadd.f32 %v538_v14, %v996_v0  ;;  %v483_v17 = vpop.f32.mrf.mxu1 }
 0x12a   : > { %v587_v18 = vpack.c.bf16 %v510_v13, %v481_v12  ;;  %v570_v19 = vpop.f32.mrf.mxu0  ;;  %v484_v22 = vadd.f32 %v483_v17, %v990_v61 }
 0x12b   : > { %v588_v20 = vpack.c.bf16 %v568_v15, %v539_v16  ;;  %v571_v25 = vadd.f32 %v570_v19, %v994_v63 }
 0x12c   : > { %603 = vst [vmem:[%s1004_s16 + $0x10] sm:$0xff] %v587_v18 }
 0x12d   : > { %604 = vst [vmem:[%s1004_s16 + $0x18] sm:$0xff] %v588_v20 }
 0x12f   : > { %v512_v21 = vpop.f32.mrf.mxu2 }
 0x130   : > { %v513_v23 = vadd.f32 %v512_v21, %v992_v62  ;;  %v541_v24 = vpop.f32.mrf.mxu3 }
 0x131   : > { %v542_v26 = vadd.f32 %v541_v24, %v996_v0  ;;  %v485_v27 = vpop.f32.mrf.mxu1 }
 0x132   : > { %v589_v28 = vpack.c.bf16 %v513_v23, %v484_v22  ;;  %v572_v29 = vpop.f32.mrf.mxu0  ;;  %v486_v32 = vadd.f32 %v485_v27, %v990_v61 }
 0x133   : > { %v590_v30 = vpack.c.bf16 %v571_v25, %v542_v26  ;;  %v573_v35 = vadd.f32 %v572_v29, %v994_v63 }
 0x134   : > { %605 = vst [vmem:[%s1004_s16 + $0x20] sm:$0xff] %v589_v28 }
 0x135   : > { %606 = vst [vmem:[%s1004_s16 + $0x28] sm:$0xff] %v590_v30 }
 0x137   : > { %v514_v31 = vpop.f32.mrf.mxu2 }
 0x138   : > { %v515_v33 = vadd.f32 %v514_v31, %v992_v62  ;;  %v543_v34 = vpop.f32.mrf.mxu3 }
 0x139   : > { %v544_v36 = vadd.f32 %v543_v34, %v996_v0  ;;  %v488_v37 = vpop.f32.mrf.mxu1 }
 0x13a   : > { %v591_v38 = vpack.c.bf16 %v515_v33, %v486_v32  ;;  %v575_v39 = vpop.f32.mrf.mxu0  ;;  %v489_v42 = vadd.f32 %v488_v37, %v990_v61 }
 0x13b   : > { %v592_v40 = vpack.c.bf16 %v573_v35, %v544_v36  ;;  %v576_v45 = vadd.f32 %v575_v39, %v994_v63 }
 0x13c   : > { %607 = vst [vmem:[%s1004_s16 + $0x30] sm:$0xff] %v591_v38 }
 0x13d   : > { %608 = vst [vmem:[%s1004_s16 + $0x38] sm:$0xff] %v592_v40 }
 0x13f   : > { %v517_v41 = vpop.f32.mrf.mxu2 }
 0x140   : > { %v518_v43 = vadd.f32 %v517_v41, %v992_v62  ;;  %v546_v44 = vpop.f32.mrf.mxu3 }
 0x141   : > { %v547_v46 = vadd.f32 %v546_v44, %v996_v0  ;;  %v490_v47 = vpop.f32.mrf.mxu1 }
 0x142   : > { %v593_v48 = vpack.c.bf16 %v518_v43, %v489_v42  ;;  %v577_v49 = vpop.f32.mrf.mxu0  ;;  %v491_v52 = vadd.f32 %v490_v47, %v990_v61 }
 0x143   : > { %v594_v50 = vpack.c.bf16 %v576_v45, %v547_v46  ;;  %v578_v55 = vadd.f32 %v577_v49, %v994_v63 }
 0x144   : > { %609 = vst [vmem:[%s1004_s16 + $0x40] sm:$0xff] %v593_v48 }
 0x145   : > { %610 = vst [vmem:[%s1004_s16 + $0x48] sm:$0xff] %v594_v50 }
 0x147   : > { %v519_v51 = vpop.f32.mrf.mxu2 }
 0x148   : > { %v520_v53 = vadd.f32 %v519_v51, %v992_v62  ;;  %v548_v54 = vpop.f32.mrf.mxu3 }
 0x149   : > { %v549_v56 = vadd.f32 %v548_v54, %v996_v0  ;;  %v493_v59 = vpop.f32.mrf.mxu1 }
 0x14a   : > { %v595_v57 = vpack.c.bf16 %v520_v53, %v491_v52  ;;  %v580_v60 = vpop.f32.mrf.mxu0  ;;  %v494_v2 = vadd.f32 %v493_v59, %v990_v61 }
 0x14b   : > { %v596_v58 = vpack.c.bf16 %v578_v55, %v549_v56  ;;  %v581_v5 = vadd.f32 %v580_v60, %v994_v63 }
 0x14c   : > { %611 = vst [vmem:[%s1004_s16 + $0x50] sm:$0xff] %v595_v57 }
 0x14d   : > { %612 = vst [vmem:[%s1004_s16 + $0x58] sm:$0xff] %v596_v58 }
 0x14f   : > { %v522_v1 = vpop.f32.mrf.mxu2 }
 0x150   : > { %v523_v3 = vadd.f32 %v522_v1, %v992_v62  ;;  %v551_v4 = vpop.f32.mrf.mxu3 }
 0x151   : > { %v552_v6 = vadd.f32 %v551_v4, %v996_v0  ;;  %v495_v9 = vpop.f32.mrf.mxu1 }
 0x152   : > { %v597_v7 = vpack.c.bf16 %v523_v3, %v494_v2  ;;  %v582_v10 = vpop.f32.mrf.mxu0  ;;  %v496_v12 = vadd.f32 %v495_v9, %v990_v61 }
 0x153   : > { %v598_v8 = vpack.c.bf16 %v581_v5, %v552_v6  ;;  %v583_v15 = vadd.f32 %v582_v10, %v994_v63 }
 0x154   : > { %613 = vst [vmem:[%s1004_s16 + $0x60] sm:$0xff] %v597_v7 }
 0x155   : > { %614 = vst [vmem:[%s1004_s16 + $0x68] sm:$0xff] %v598_v8 }
 0x157   : > { %v524_v11 = vpop.f32.mrf.mxu2 }
 0x158   : > { %v525_v13 = vadd.f32 %v524_v11, %v992_v62  ;;  %v553_v14 = vpop.f32.mrf.mxu3 }
 0x159   : > { %v554_v16 = vadd.f32 %v553_v14, %v996_v0 }
 0x15a   : > { %v599_v17 = vpack.c.bf16 %v525_v13, %v496_v12 }
 0x15b   : > { %v600_v18 = vpack.c.bf16 %v583_v15, %v554_v16 }
 0x15c   : > { %615 = vst [vmem:[%s1004_s16 + $0x70] sm:$0xff] %v599_v17 }
 0x15d   : > { %616 = vst [vmem:[%s1004_s16 + $0x78] sm:$0xff] %v600_v18 }
 0x15e PF: > { %s15_s20 = sadd.s32 1, %s886_s20   ;;  %s1067_s18 = smov %s882_s19 }
 0x15f   : > { %p12_p5 = scmp.ge.s32.totalorder %s15_s20, 4   ;;  %s1068_s19 = smov %s1070_s21 }
 0x161   :  { %14 = sbr.rel (!%p12_p5) target bundleno = 2 (0x2), region = 76 }

// kernel: text_rnn_forward.4
= control target key start
LH: loop header
LB: loop body
LE: loop exit
PB: predicated region body
PF: predicated region fallthrough
CT: control target
= control target key end

     0   :  { %s2365_s1 = inlined_call_operand.vmem [shape: bf16[128,512], index: 1, kind: input, shape index: {}]   ;;  %s2366_s2 = inlined_call_operand.vmem [shape: s32[8,1], index: 2, kind: input, shape index: {}]   ;;  %s2367_s0 = inlined_call_operand.vmem [shape: bf16[8,8,512], index: 0, kind: input, shape index: {}]   ;;  %s2368_s4 = inlined_call_operand.vmem [shape: f32[8,128], index: 4, kind: output, shape index: {1}]   ;;  %s2369_s3 = inlined_call_operand.vmem [shape: f32[8,128], index: 3, kind: output, shape index: {0}]  }
   0x1   :  { %v1436_v0 = vld [vmem:[%s2365_s1 + $0xe0] sm:$0xf]  ;;  %v1526_v1 = vld [vmem:[%s2365_s1 + $0xec] sm:$0xf0]  ;;  %v1524_v2 = vld [vmem:[%s2365_s1 + $0xe4] sm:$0xf] }
   0x2   :  { %v1710_v3 = vor.u32 %v1526_v1, %v1436_v0  ;;  %v1438_v4 = vld [vmem:[%s2365_s1 + $0xf0] sm:$0xf0]  ;;  %v1525_v5 = vld [vmem:[%s2365_s1 + $0xec] sm:$0xf]  ;;  %v1446_v6 = vld [vmem:[%s2365_s1 + $0xf8] sm:$0xf0] }
   0x3   :  { %v1721_v7 = vor.u32 %v1524_v2, %v1438_v4  ;;  %v1723_v8 = vor.u32 %v1525_v5, %v1446_v6  ;;  %v1420_v9 = vld [vmem:[%s2365_s1 + $0xc0] sm:$0xf]  ;;  %v1522_v10 = vld [vmem:[%s2365_s1 + $0xcc] sm:$0xf0]  ;;  %v1520_v11 = vld [vmem:[%s2365_s1 + $0xc4] sm:$0xf] }
   0x4   :  { %223 = vmatpush.bf16.msra.mxu0 %v1710_v3  ;;  %v1735_v12 = vor.u32 %v1522_v10, %v1420_v9  ;;  %v1422_v13 = vld [vmem:[%s2365_s1 + $0xd0] sm:$0xf0]  ;;  %v1521_v14 = vld [vmem:[%s2365_s1 + $0xcc] sm:$0xf]  ;;  %v1430_v15 = vld [vmem:[%s2365_s1 + $0xd8] sm:$0xf0] }
   0x5   :  { %236 = vmatpush.bf16.msra.mxu1 %v1721_v7  ;;  %262 = vmatpush.bf16.msra.mxu3 %v1723_v8  ;;  %v1748_v16 = vor.u32 %v1520_v11, %v1422_v13  ;;  %v1750_v17 = vor.u32 %v1521_v14, %v1430_v15  ;;  %v1444_v18 = vld [vmem:[%s2365_s1 + $0xe8] sm:$0xf]  ;;  %v1527_v19 = vld [vmem:[%s2365_s1 + $0xf4] sm:$0xf0]  ;;  %v1404_v20 = vld [vmem:[%s2365_s1 + $0xa0] sm:$0xf] }
   0x6   :  { %v1761_v21 = vor.u32 %v1527_v19, %v1444_v18  ;;  %v1518_v22 = vld [vmem:[%s2365_s1 + $0xac] sm:$0xf0]  ;;  %v1516_v23 = vld [vmem:[%s2365_s1 + $0xa4] sm:$0xf]  ;;  %v1406_v24 = vld [vmem:[%s2365_s1 + $0xb0] sm:$0xf0] }
   0x7   :  { %v1517_v25 = vld [vmem:[%s2365_s1 + $0xac] sm:$0xf]  ;;  %v1414_v26 = vld [vmem:[%s2365_s1 + $0xb8] sm:$0xf0]  ;;  %v1428_v27 = vld [vmem:[%s2365_s1 + $0xc8] sm:$0xf]  ;;  %v1783_v28 = vor.u32 %v1518_v22, %v1404_v20  ;;  %v1796_v32 = vor.u32 %v1516_v23, %v1406_v24 }
   0x8   :  { %224 = vmatpush.bf16.msra.mxu0 %v1735_v12  ;;  %249 = vmatpush.bf16.msra.mxu2 %v1761_v21  ;;  %v1523_v29 = vld [vmem:[%s2365_s1 + $0xd4] sm:$0xf0]  ;;  %v1388_v30 = vld [vmem:[%s2365_s1 + $0x80] sm:$0xf]  ;;  %v1514_v31 = vld [vmem:[%s2365_s1 + $0x8c] sm:$0xf0]  ;;  %v1798_v33 = vor.u32 %v1517_v25, %v1414_v26 }
   0x9   :  { %237 = vmatpush.bf16.msra.mxu1 %v1748_v16  ;;  %263 = vmatpush.bf16.msra.mxu3 %v1750_v17  ;;  %v1800_v34 = vor.u32 %v1523_v29, %v1428_v27  ;;  %v1512_v35 = vld [vmem:[%s2365_s1 + $0x84] sm:$0xf]  ;;  %v1390_v36 = vld [vmem:[%s2365_s1 + $0x90] sm:$0xf0]  ;;  %v1513_v37 = vld [vmem:[%s2365_s1 + $0x8c] sm:$0xf]  ;;  %v1822_v41 = vor.u32 %v1514_v31, %v1388_v30 }
   0xa   :  { %v1398_v38 = vld [vmem:[%s2365_s1 + $0x98] sm:$0xf0]  ;;  %v1412_v39 = vld [vmem:[%s2365_s1 + $0xa8] sm:$0xf]  ;;  %v1519_v40 = vld [vmem:[%s2365_s1 + $0xb4] sm:$0xf0]  ;;  %v1834_v45 = vor.u32 %v1512_v35, %v1390_v36 }
   0xb   :  { %v1824_v42 = vor.u32 %v1519_v40, %v1412_v39  ;;  %v1372_v43 = vld [vmem:[%s2365_s1 + $0x60] sm:$0xf]  ;;  %v1510_v44 = vld [vmem:[%s2365_s1 + $0x6c] sm:$0xf0]  ;;  %v1836_v46 = vor.u32 %v1513_v37, %v1398_v38  ;;  %v1508_v47 = vld [vmem:[%s2365_s1 + $0x64] sm:$0xf] }
   0xc   :  { %225 = vmatpush.bf16.msra.mxu0 %v1783_v28  ;;  %250 = vmatpush.bf16.msra.mxu2 %v1800_v34  ;;  %v1396_v48 = vld [vmem:[%s2365_s1 + $0x88] sm:$0xf]  ;;  %v1515_v49 = vld [vmem:[%s2365_s1 + $0x94] sm:$0xf0]  ;;  %v1374_v50 = vld [vmem:[%s2365_s1 + $0x70] sm:$0xf0]  ;;  %v1858_v53 = vor.u32 %v1510_v44, %v1372_v43 }
   0xd   :  { %238 = vmatpush.bf16.msra.mxu1 %v1796_v32  ;;  %264 = vmatpush.bf16.msra.mxu3 %v1798_v33  ;;  %v1509_v51 = vld [vmem:[%s2365_s1 + $0x6c] sm:$0xf]  ;;  %v1382_v52 = vld [vmem:[%s2365_s1 + $0x78] sm:$0xf0]  ;;  %v1860_v54 = vor.u32 %v1515_v49, %v1396_v48  ;;  %v1356_v55 = vld [vmem:[%s2365_s1 + $0x40] sm:$0xf]  ;;  %v1870_v57 = vor.u32 %v1508_v47, %v1374_v50 }
   0xe   :  { %v1506_v56 = vld [vmem:[%s2365_s1 + $0x4c] sm:$0xf0]  ;;  %v1872_v58 = vor.u32 %v1509_v51, %v1382_v52  ;;  %v1504_v59 = vld [vmem:[%s2365_s1 + $0x44] sm:$0xf]  ;;  %v1380_v60 = vld [vmem:[%s2365_s1 + $0x68] sm:$0xf] }
   0xf   :  { %v1511_v61 = vld [vmem:[%s2365_s1 + $0x74] sm:$0xf0]  ;;  %v1358_v62 = vld [vmem:[%s2365_s1 + $0x50] sm:$0xf0]  ;;  %v1505_v63 = vld [vmem:[%s2365_s1 + $0x4c] sm:$0xf]  ;;  %v1897_v2 = vor.u32 %v1506_v56, %v1356_v55 }
  0x10   :  { %226 = vmatpush.bf16.msra.mxu0 %v1822_v41  ;;  %251 = vmatpush.bf16.msra.mxu2 %v1824_v42  ;;  %v1366_v0 = vld [vmem:[%s2365_s1 + $0x58] sm:$0xf0]  ;;  %v1340_v1 = vld [vmem:[%s2365_s1 + $0x20] sm:$0xf]  ;;  %v1899_v4 = vor.u32 %v1511_v61, %v1380_v60  ;;  %v1502_v5 = vld [vmem:[%s2365_s1 + $0x2c] sm:$0xf0]  ;;  %v1912_v10 = vor.u32 %v1504_v59, %v1358_v62 }
  0x11   :  { %239 = vmatpush.bf16.msra.mxu1 %v1834_v45  ;;  %265 = vmatpush.bf16.msra.mxu3 %v1836_v46  ;;  %v1500_v6 = vld [vmem:[%s2365_s1 + $0x24] sm:$0xf]  ;;  %v1342_v9 = vld [vmem:[%s2365_s1 + $0x30] sm:$0xf0]  ;;  %v1914_v11 = vor.u32 %v1505_v63, %v1366_v0  ;;  %v1364_v13 = vld [vmem:[%s2365_s1 + $0x48] sm:$0xf]  ;;  %v1939_v22 = vor.u32 %v1502_v5, %v1340_v1 }
  0x12   :  { %v1507_v14 = vld [vmem:[%s2365_s1 + $0x54] sm:$0xf0]  ;;  %v1501_v15 = vld [vmem:[%s2365_s1 + $0x2c] sm:$0xf]  ;;  %v1350_v18 = vld [vmem:[%s2365_s1 + $0x38] sm:$0xf0]  ;;  %v1952_v27 = vor.u32 %v1500_v6, %v1342_v9 }
  0x13   :  { %v1674_v19 = vmov 0   ;;  %v1932_v20 = vld [vmem:[%s2366_s2] sm:$0xff]  ;;  %v1941_v23 = vor.u32 %v1507_v14, %v1364_v13  ;;  %v1498_v25 = vld [vmem:[%s2365_s1 + $0xc] sm:$0xf0]  ;;  %v1954_v29 = vor.u32 %v1501_v15, %v1350_v18  ;;  %v1348_v31 = vld [vmem:[%s2365_s1 + $0x28] sm:$0xf] }
  0x14   :  { %227 = vmatpush.bf16.msra.mxu0 %v1858_v53  ;;  %252 = vmatpush.bf16.msra.mxu2 %v1860_v54  ;;  %vm1453_vm0 = vcmp.gt.s32.totalorder %v1932_v20, 0  ;;  %v1324_v24 = vld [vmem:[%s2365_s1] sm:$0xf]  ;;  %v1496_v30 = vld [vmem:[%s2365_s1 + $0x4] sm:$0xf]  ;;  %vm1459_vm1 = vcmp.gt.s32.totalorder %v1932_v20, 1 }
  0x15   :  { %240 = vmatpush.bf16.msra.mxu1 %v1870_v57  ;;  %266 = vmatpush.bf16.msra.mxu3 %v1872_v58  ;;  %v346_v26 = vsel %vm1453_vm0, 1, %v1674_v19  ;;  %v1503_v35 = vld [vmem:[%s2365_s1 + $0x34] sm:$0xf0]  ;;  %v1326_v36 = vld [vmem:[%s2365_s1 + $0x10] sm:$0xf0]  ;;  %v1976_v39 = vor.u32 %v1498_v25, %v1324_v24  ;;  %v483_v49 = vsel %vm1459_vm1, 1, %v1674_v19 }
  0x16   :  { %1530 = vset.pattern.permute.xlu0 %v1674_v19  ;;  %1531 = vset.pattern.permute.xlu1 %v1674_v19  ;;  %v1497_v37 = vld [vmem:[%s2365_s1 + $0xc] sm:$0xf]  ;;  %v1334_v38 = vld [vmem:[%s2365_s1 + $0x18] sm:$0xf0]  ;;  %v1978_v40 = vor.u32 %v1503_v35, %v1348_v31  ;;  %v1983_v43 = vor.u32 %v1496_v30, %v1326_v36  ;;  %v1332_v47 = vld [vmem:[%s2365_s1 + $0x8] sm:$0xf] }
  0x17   :  { %1532 = vset.pattern.permute.xlu2 %v1674_v19  ;;  %348 = vperm.xlu0 %1530, %v346_v26   ;;  %v1985_v44 = vor.u32 %v1497_v37, %v1334_v38  ;;  %v1499_v48 = vld [vmem:[%s2365_s1 + $0x14] sm:$0xf0]  ;;  %v1675_v51 = vmov 0.0|0.0   ;;  %vm1489_vm2 = vcmp.gt.s32.totalorder %v1932_v20, 6  ;;  %v24_v55 = vld [vmem:[%s2367_s0] sm:$0xff]  ;;  %v25_v63 = vld [vmem:[%s2367_s0 + $0x8] sm:$0xff] }
  0x18   :  { %228 = vmatpush.bf16.msra.mxu0 %v1897_v2  ;;  %253 = vmatpush.bf16.msra.mxu2 %v1899_v4  ;;  %v1998_v50 = vor.u32 %v1499_v48, %v1332_v47  ;;  %v1168_v52 = vsel %vm1489_vm2, 1, %v1674_v19  ;;  %v26_v56 = vunpack.c.l.bf16 %v24_v55  ;;  %v27_v59 = vunpack.c.h.bf16 %v24_v55 }
  0x19   :  { %241 = vmatpush.bf16.msra.mxu1 %v1912_v10  ;;  %267 = vmatpush.bf16.msra.mxu3 %v1914_v11  ;;  %v29_v6 = vunpack.c.h.bf16 %v25_v63  ;;  %v28_v35 = vunpack.c.l.bf16 %v25_v63  ;;  %vm1465_vm1 = vcmp.gt.s32.totalorder %v1932_v20, 2  ;;  %vm1471_vm2 = vcmp.gt.s32.totalorder %v1932_v20, 3 }
  0x1c   :  { %229 = vmatpush.bf16.msra.mxu0 %v1939_v22  ;;  %254 = vmatpush.bf16.msra.mxu2 %v1941_v23 }
  0x1d   :  { %242 = vmatpush.bf16.msra.mxu1 %v1952_v27  ;;  %268 = vmatpush.bf16.msra.mxu3 %v1954_v29 }
  0x1f   :  { %485 = vperm.xlu0 %1530, %v483_v49  }
  0x20   :  { %230 = vmatpush.bf16.msra.mxu0 %v1976_v39  ;;  %255 = vmatpush.bf16.msra.mxu2 %v1978_v40 }
  0x21   :  { %243 = vmatpush.bf16.msra.mxu1 %v1983_v43  ;;  %269 = vmatpush.bf16.msra.mxu3 %v1985_v44 }
  0x23   :  { %231 = vmatmul.bf16.vlgmr.msra.gmra.mxu0 %v1675_v51 }
  0x24   :  { %361 = vmatpush.bf16.msrb.mxu0 %v1710_v3  ;;  %244 = vmatmul.bf16.vlgmr.msra.gmra.mxu1 %v1675_v51 }
  0x25   :  { %374 = vmatpush.bf16.msrb.mxu1 %v1721_v7  ;;  %270 = vmatmul.bf16.vlgmr.msra.gmra.mxu3 %v1675_v51 }
  0x26   :  { %256 = vmatpush.bf16.msra.mxu2 %v1998_v50  ;;  %400 = vmatpush.bf16.msrb.mxu3 %v1723_v8 }
  0x27   :  { %1170 = vperm.xlu0 %1530, %v1168_v52  }
  0x28   :  { %362 = vmatpush.bf16.msrb.mxu0 %v1735_v12 }
  0x29   :  { %375 = vmatpush.bf16.msrb.mxu1 %v1748_v16  ;;  %257 = vmatmul.bf16.vlgmr.msra.gmra.mxu2 %v1675_v51 }
  0x2a   :  { %387 = vmatpush.bf16.msrb.mxu2 %v1761_v21  ;;  %401 = vmatpush.bf16.msrb.mxu3 %v1750_v17 }
  0x2c   :  { %363 = vmatpush.bf16.msrb.mxu0 %v1783_v28 }
  0x2d   :  { %376 = vmatpush.bf16.msrb.mxu1 %v1796_v32 }
  0x2e   :  { %388 = vmatpush.bf16.msrb.mxu2 %v1800_v34  ;;  %402 = vmatpush.bf16.msrb.mxu3 %v1798_v33 }
  0x30   :  { %364 = vmatpush.bf16.msrb.mxu0 %v1822_v41 }
  0x31   :  { %377 = vmatpush.bf16.msrb.mxu1 %v1834_v45 }
  0x32   :  { %389 = vmatpush.bf16.msrb.mxu2 %v1824_v42  ;;  %403 = vmatpush.bf16.msrb.mxu3 %v1836_v46 }
  0x34   :  { %365 = vmatpush.bf16.msrb.mxu0 %v1858_v53 }
  0x35   :  { %378 = vmatpush.bf16.msrb.mxu1 %v1870_v57 }
  0x36   :  { %390 = vmatpush.bf16.msrb.mxu2 %v1860_v54  ;;  %404 = vmatpush.bf16.msrb.mxu3 %v1872_v58 }
  0x38   :  { %366 = vmatpush.bf16.msrb.mxu0 %v1897_v2 }
  0x39   :  { %379 = vmatpush.bf16.msrb.mxu1 %v1912_v10 }
  0x3a   :  { %391 = vmatpush.bf16.msrb.mxu2 %v1899_v4  ;;  %405 = vmatpush.bf16.msrb.mxu3 %v1914_v11 }
  0x3c   :  { %367 = vmatpush.bf16.msrb.mxu0 %v1939_v22 }
  0x3d   :  { %380 = vmatpush.bf16.msrb.mxu1 %v1952_v27 }
  0x3e   :  { %392 = vmatpush.bf16.msrb.mxu2 %v1941_v23  ;;  %406 = vmatpush.bf16.msrb.mxu3 %v1954_v29 }
  0x40   :  { %368 = vmatpush.bf16.msrb.mxu0 %v1976_v39 }
  0x41   :  { %381 = vmatpush.bf16.msrb.mxu1 %v1983_v43 }
  0x42   :  { %393 = vmatpush.bf16.msrb.mxu2 %v1978_v40  ;;  %407 = vmatpush.bf16.msrb.mxu3 %v1985_v44 }
  0x44   :  { %498 = vmatpush.bf16.msra.mxu0 %v1710_v3 }
  0x45   :  { %511 = vmatpush.bf16.msra.mxu1 %v1721_v7 }
  0x46   :  { %394 = vmatpush.bf16.msrb.mxu2 %v1998_v50  ;;  %537 = vmatpush.bf16.msra.mxu3 %v1723_v8 }
  0x48   :  { %499 = vmatpush.bf16.msra.mxu0 %v1735_v12 }
  0x49   :  { %512 = vmatpush.bf16.msra.mxu1 %v1748_v16 }
  0x4a   :  { %524 = vmatpush.bf16.msra.mxu2 %v1761_v21  ;;  %538 = vmatpush.bf16.msra.mxu3 %v1750_v17 }
  0x4c   :  { %500 = vmatpush.bf16.msra.mxu0 %v1783_v28 }
  0x4d   :  { %513 = vmatpush.bf16.msra.mxu1 %v1796_v32 }
  0x4e   :  { %525 = vmatpush.bf16.msra.mxu2 %v1800_v34  ;;  %539 = vmatpush.bf16.msra.mxu3 %v1798_v33 }
  0x50   :  { %501 = vmatpush.bf16.msra.mxu0 %v1822_v41 }
  0x51   :  { %514 = vmatpush.bf16.msra.mxu1 %v1834_v45 }
  0x52   :  { %526 = vmatpush.bf16.msra.mxu2 %v1824_v42  ;;  %540 = vmatpush.bf16.msra.mxu3 %v1836_v46 }
  0x54   :  { %502 = vmatpush.bf16.msra.mxu0 %v1858_v53 }
  0x55   :  { %515 = vmatpush.bf16.msra.mxu1 %v1870_v57 }
  0x56   :  { %527 = vmatpush.bf16.msra.mxu2 %v1860_v54  ;;  %541 = vmatpush.bf16.msra.mxu3 %v1872_v58 }
  0x58   :  { %503 = vmatpush.bf16.msra.mxu0 %v1897_v2 }
  0x59   :  { %516 = vmatpush.bf16.msra.mxu1 %v1912_v10 }
  0x5a   :  { %528 = vmatpush.bf16.msra.mxu2 %v1899_v4  ;;  %542 = vmatpush.bf16.msra.mxu3 %v1914_v11 }
  0x5c   :  { %504 = vmatpush.bf16.msra.mxu0 %v1939_v22 }
  0x5d   :  { %517 = vmatpush.bf16.msra.mxu1 %v1952_v27 }
  0x5e   :  { %529 = vmatpush.bf16.msra.mxu2 %v1941_v23  ;;  %543 = vmatpush.bf16.msra.mxu3 %v1954_v29 }
  0x60   :  { %505 = vmatpush.bf16.msra.mxu0 %v1976_v39 }
  0x61   :  { %518 = vmatpush.bf16.msra.mxu1 %v1983_v43 }
  0x62   :  { %530 = vmatpush.bf16.msra.mxu2 %v1978_v40  ;;  %544 = vmatpush.bf16.msra.mxu3 %v1985_v44 }
  0x66   :  { %531 = vmatpush.bf16.msra.mxu2 %v1998_v50 }
  0xa0   :  { %v232_v60 = vpop.f32.mrf.mxu0 }
  0xa1   :  { %v275_v61 = vadd.f32 %v232_v60, %v26_v56  ;;  %v245_v62 = vpop.f32.mrf.mxu1 }
  0xa2   :  { %v276_v0 = vadd.f32 %v245_v62, %v27_v59 }
  0xa3   :  { %v1450_v1 = vmul.f32 -1.442695, %v275_v61 }
  0xa4   :  { %v1451_v5 = vmul.f32 -1.442695, %v276_v0 }
  0xa5   :  { %1533 = vpow2.f32 %v1450_v1 }
  0xa6   :  { %1535 = vpow2.f32 %v1451_v5 }
  0xa8   :  { %v271_v9 = vpop.f32.mrf.mxu3  ;;  %v234_v14 = vpop.f32.mrf.mxu0 }
  0xa9   :  { %v278_v13 = vadd.f32 %v271_v9, %v29_v6  ;;  %v247_v15 = vpop.f32.mrf.mxu1 }
  0xab   :  { %v1452_v18 = vmul.f32 -1.442695, %v278_v13  ;;  %v1534_v24 = vpop.eup %1533 }
  0xac   :  { %v258_v25 = vpop.f32.mrf.mxu2  ;;  %v1536_v26 = vpop.eup %1535  ;;  %v282_v30 = vadd.f32 1.0, %v1534_v24 }
  0xad   :  { %1537 = vpow2.f32 %v1452_v18  ;;  %v301_v31 = vadd.f32 1.0, %v1536_v26  ;;  %v277_v38 = vadd.f32 %v258_v25, %v28_v35 }
  0xae   :  { %1539 = vrcp.f32 %v282_v30  ;;  %v294_v60 = vand.u32 2147483648, %v282_v30  ;;  %v292_v62 = vand.u32 2147483647, %v282_v30  ;;  %vm288_vm5 = vweird.f32 %v282_v30 }
  0xaf   :  { %1541 = vrcp.f32 %v301_v31  ;;  %v313_v0 = vand.u32 2147483648, %v301_v31  ;;  %v311_v1 = vand.u32 2147483647, %v301_v31  ;;  %vm307_vm7 = vweird.f32 %v301_v31 }
  0xb0   :  { %v273_v36 = vpop.f32.mrf.mxu3  ;;  %v295_v14 = vor.u32 1.1754944e-38, %v294_v60  ;;  %vm293_vm8 = vcmp.eq.f32.partialorder %v292_v62, 8.507059e+37 }
  0xb1   :  { %v314_v24 = vor.u32 1.1754944e-38, %v313_v0  ;;  %vm312_vm10 = vcmp.eq.f32.partialorder %v311_v1, 8.507059e+37 }
  0xb3   :  { %v1538_v37 = vpop.eup %1537 }
  0xb4   :  { %v321_v47 = vadd.f32 1.0, %v1538_v37  ;;  %v260_v48 = vpop.f32.mrf.mxu2  ;;  %v1540_v49 = vpop.eup %1539 }
  0xb5   :  { %v1542_v51 = vpop.eup %1541  ;;  %v284_v52 = vmul.f32 %v1540_v49, %v282_v30  ;;  %vm289_vm3 = vweird.f32 %v1540_v49 }
  0xb6   :  { %1543 = vrcp.f32 %v321_v47  ;;  %v303_v55 = vmul.f32 %v1542_v51, %v301_v31  ;;  %vm308_vm4 = vweird.f32 %v1542_v51  ;;  %vm290_vm6 = vmor %vm288_vm5, %vm289_vm3  ;;  %vm327_vm13 = vweird.f32 %v321_v47 }
  0xb7   :  { %1545 = vtanh.f32 %v277_v38  ;;  %v285_v56 = vsub.f32 1.0, %v284_v52  ;;  %vm309_vm9 = vmor %vm307_vm7, %vm308_vm4  ;;  %v349_v38 = vpop.permute.xlu0 %348 }
  0xb8   :  { %v304_v59 = vsub.f32 1.0, %v303_v55  ;;  %vm350_vm11 = vcmp.eq.s32.totalorder %v349_v38, 1 }
  0xb9   :  { %v286_v61 = vmul.f32 %v1540_v49, %v285_v56  ;;  %v333_v56 = vand.u32 2147483648, %v321_v47  ;;  %vm1662_vm0 = vmpackc.low %vm350_vm11, %vm350_vm11 }
  0xba   :  { %v305_v63 = vmul.f32 %v1542_v51, %v304_v59 }
  0xbb   :  { %v287_v6 = vadd.f32 %v1540_v49, %v286_v61 }
  0xbc   :  { %v1544_v5 = vpop.eup %1543  ;;  %v306_v15 = vadd.f32 %v1542_v51, %v305_v63 }
  0xbd   :  { %v1546_v9 = vpop.eup %1545  ;;  %v323_v13 = vmul.f32 %v1544_v5, %v321_v47  ;;  %v291_v18 = vsel %vm290_vm6, %v1540_v49, %v287_v6  ;;  %vm328_vm12 = vweird.f32 %v1544_v5  ;;  %v331_v49 = vand.u32 2147483647, %v321_v47  ;;  %v1454_v47 = vld [vmem:[%s2367_s0 + $0x10] sm:$0xff] }
  0xbe   :  { %v296_v26 = vsel %vm293_vm8, %v295_v14, %v291_v18  ;;  %v310_v35 = vsel %vm309_vm9, %v1542_v51, %v306_v15  ;;  %vm329_vm14 = vmor %vm327_vm13, %vm328_vm12  ;;  %v334_v51 = vor.u32 1.1754944e-38, %v333_v56  ;;  %v356_v1 = vunpack.c.l.bf16 %v1454_v47  ;;  %v1455_v15 = vld [vmem:[%s2367_s0 + $0x18] sm:$0xff] }
  0xbf   :  { %v324_v25 = vsub.f32 1.0, %v323_v13  ;;  %v338_v36 = vmul.f32 %v1546_v9, %v296_v26  ;;  %v315_v37 = vsel %vm312_vm10, %v314_v24, %v310_v35  ;;  %vm332_vm15 = vcmp.eq.f32.partialorder %v331_v49, 8.507059e+37 }
  0xc0   :  { %v337_v52 = vmul.f32 0.0, %v315_v37  ;;  %vm1495_vm10 = vcmp.gt.s32.totalorder %v1932_v20, 7 }
  0xc1   :  { %v325_v48 = vmul.f32 %v1544_v5, %v324_v25  ;;  %v359_v25 = vunpack.c.h.bf16 %v1455_v15 }
  0xc2   :  { %v339_v30 = vadd.f32 %v338_v36, %v337_v52 }
  0xc3   :  { %v326_v55 = vadd.f32 %v1544_v5, %v325_v48 }
  0xc4   :  { %1547 = vtanh.f32 %v339_v30  ;;  %v2074_v31 = vsel %vm350_vm11, %v339_v30, 0.0 }
  0xc5   :  { %v330_v59 = vsel %vm329_vm14, %v1544_v5, %v326_v55  ;;  %v357_v5 = vunpack.c.h.bf16 %v1454_v47 }
  0xc6   :  { %v335_v61 = vsel %vm332_vm15, %v334_v51, %v330_v59  ;;  %v358_v51 = vunpack.c.l.bf16 %v1455_v15  ;;  %v757_v15 = vsel %vm1471_vm2, 1, %v1674_v19 }
  0xca   :  { %v1548_v60 = vpop.eup %1547 }
  0xcb   :  { %v341_v62 = vmul.f32 %v1548_v60, %v335_v61  ;;  %v620_v61 = vsel %vm1465_vm1, 1, %v1674_v19 }
  0xcc   :  { %622 = vperm.xlu1 %1531, %v620_v61  }
  0xcd   :  { %v2077_v0 = vsel %vm350_vm11, %v341_v62, 0.0  ;;  %v1663_v63 = vpack.c.bf16 %v341_v62, %v341_v62 }
  0xcf   :  { %1664 = vmatmul.msk.bf16.vlgmr.msrb.gmra.mxu0 %vm1662_vm0, %v1663_v63  ;;  %1667 = vmatmul.msk.bf16.vlgmr.msrb.gmra.mxu1 %vm1662_vm0, %v1663_v63 }
  0xd0   :  { %1670 = vmatmul.msk.bf16.vlgmr.msrb.gmra.mxu2 %vm1662_vm0, %v1663_v63  ;;  %1673 = vmatmul.msk.bf16.vlgmr.msrb.gmra.mxu3 %vm1662_vm0, %v1663_v63 }
  0xd1   :  { %635 = vmatpush.bf16.msrb.mxu0 %v1710_v3  ;;  %648 = vmatpush.bf16.msrb.mxu1 %v1721_v7 }
  0xd2   :  { %661 = vmatpush.bf16.msrb.mxu2 %v1761_v21  ;;  %674 = vmatpush.bf16.msrb.mxu3 %v1723_v8 }
  0xd4   :  { %759 = vperm.xlu1 %1531, %v757_v15  }
  0xd5   :  { %636 = vmatpush.bf16.msrb.mxu0 %v1735_v12  ;;  %649 = vmatpush.bf16.msrb.mxu1 %v1748_v16 }
  0xd6   :  { %662 = vmatpush.bf16.msrb.mxu2 %v1800_v34  ;;  %675 = vmatpush.bf16.msrb.mxu3 %v1750_v17 }
  0xd9   :  { %637 = vmatpush.bf16.msrb.mxu0 %v1783_v28  ;;  %650 = vmatpush.bf16.msrb.mxu1 %v1796_v32 }
  0xda   :  { %663 = vmatpush.bf16.msrb.mxu2 %v1824_v42  ;;  %676 = vmatpush.bf16.msrb.mxu3 %v1798_v33 }
  0xdd   :  { %638 = vmatpush.bf16.msrb.mxu0 %v1822_v41  ;;  %651 = vmatpush.bf16.msrb.mxu1 %v1834_v45 }
  0xde   :  { %664 = vmatpush.bf16.msrb.mxu2 %v1860_v54  ;;  %677 = vmatpush.bf16.msrb.mxu3 %v1836_v46 }
  0xe1   :  { %639 = vmatpush.bf16.msrb.mxu0 %v1858_v53  ;;  %652 = vmatpush.bf16.msrb.mxu1 %v1870_v57 }
  0xe2   :  { %665 = vmatpush.bf16.msrb.mxu2 %v1899_v4  ;;  %678 = vmatpush.bf16.msrb.mxu3 %v1872_v58 }
  0xe5   :  { %640 = vmatpush.bf16.msrb.mxu0 %v1897_v2  ;;  %653 = vmatpush.bf16.msrb.mxu1 %v1912_v10 }
  0xe6   :  { %666 = vmatpush.bf16.msrb.mxu2 %v1941_v23  ;;  %679 = vmatpush.bf16.msrb.mxu3 %v1914_v11 }
  0xe9   :  { %641 = vmatpush.bf16.msrb.mxu0 %v1939_v22  ;;  %654 = vmatpush.bf16.msrb.mxu1 %v1952_v27 }
  0xea   :  { %667 = vmatpush.bf16.msrb.mxu2 %v1978_v40  ;;  %680 = vmatpush.bf16.msrb.mxu3 %v1954_v29 }
  0xed   :  { %642 = vmatpush.bf16.msrb.mxu0 %v1976_v39  ;;  %655 = vmatpush.bf16.msrb.mxu1 %v1983_v43 }
  0xee   :  { %668 = vmatpush.bf16.msrb.mxu2 %v1998_v50  ;;  %681 = vmatpush.bf16.msrb.mxu3 %v1985_v44 }
 0x14c   :  { %v370_v6 = vpop.f32.mrf.mxu0  ;;  %v383_v9 = vpop.f32.mrf.mxu1 }
 0x14d   :  { %v413_v13 = vadd.f32 %v370_v6, %v356_v1  ;;  %v414_v14 = vadd.f32 %v383_v9, %v357_v5 }
 0x14f   :  { %v1456_v18 = vmul.f32 -1.442695, %v413_v13  ;;  %v1457_v24 = vmul.f32 -1.442695, %v414_v14 }
 0x151   :  { %1549 = vpow2.f32 %v1456_v18 }
 0x152   :  { %1551 = vpow2.f32 %v1457_v24 }
 0x153   :  { %v396_v26 = vpop.f32.mrf.mxu2  ;;  %v409_v35 = vpop.f32.mrf.mxu3 }
 0x154   :  { %v416_v36 = vadd.f32 %v409_v35, %v359_v25  ;;  %v372_v37 = vpop.f32.mrf.mxu0  ;;  %v385_v38 = vpop.f32.mrf.mxu1  ;;  %v415_v47 = vadd.f32 %v396_v26, %v358_v51 }
 0x156   :  { %v1458_v48 = vmul.f32 -1.442695, %v416_v36 }
 0x157   :  { %v1550_v52 = vpop.eup %1549 }
 0x158   :  { %v1552_v30 = vpop.eup %1551  ;;  %v420_v55 = vadd.f32 1.0, %v1550_v52  ;;  %1553 = vpow2.f32 %v1458_v48 }
 0x159   :  { %v439_v56 = vadd.f32 1.0, %v1552_v30 }
 0x15a   :  { %1555 = vrcp.f32 %v420_v55  ;;  %v432_v14 = vand.u32 2147483648, %v420_v55  ;;  %v430_v25 = vand.u32 2147483647, %v420_v55  ;;  %vm426_vm5 = vweird.f32 %v420_v55 }
 0x15b   :  { %1557 = vrcp.f32 %v439_v56  ;;  %v398_v49 = vpop.f32.mrf.mxu2  ;;  %v411_v59 = vpop.f32.mrf.mxu3  ;;  %v451_v18 = vand.u32 2147483648, %v439_v56  ;;  %v449_v36 = vand.u32 2147483647, %v439_v56  ;;  %vm445_vm6 = vweird.f32 %v439_v56 }
 0x15c   :  { %v433_v38 = vor.u32 1.1754944e-38, %v432_v14  ;;  %vm431_vm9 = vcmp.eq.f32.partialorder %v430_v25, 8.507059e+37 }
 0x15d   :  { %v452_v30 = vor.u32 1.1754944e-38, %v451_v18  ;;  %vm450_vm11 = vcmp.eq.f32.partialorder %v449_v36, 8.507059e+37 }
 0x15e   :  { %v1554_v60 = vpop.eup %1553 }
 0x15f   :  { %v459_v62 = vadd.f32 1.0, %v1554_v60 }
 0x160   :  { %v1556_v63 = vpop.eup %1555 }
 0x161   :  { %v1558_v1 = vpop.eup %1557  ;;  %v422_v5 = vmul.f32 %v1556_v63, %v420_v55  ;;  %1559 = vrcp.f32 %v459_v62  ;;  %vm427_vm3 = vweird.f32 %v1556_v63  ;;  %v471_v20 = vand.u32 2147483648, %v459_v62 }
 0x162   :  { %v441_v6 = vmul.f32 %v1558_v1, %v439_v56  ;;  %1561 = vtanh.f32 %v415_v47  ;;  %vm446_vm4 = vweird.f32 %v1558_v1  ;;  %vm428_vm7 = vmor %vm426_vm5, %vm427_vm3  ;;  %vm465_vm14 = vweird.f32 %v459_v62 }
 0x163   :  { %v423_v9 = vsub.f32 1.0, %v422_v5  ;;  %vm447_vm8 = vmor %vm445_vm6, %vm446_vm4  ;;  %v472_v18 = vor.u32 1.1754944e-38, %v471_v20 }
 0x164   :  { %v442_v13 = vsub.f32 1.0, %v441_v6  ;;  %v1305_v6 = vsel %vm1495_vm10, 1, %v1674_v19 }
 0x165   :  { %v424_v24 = vmul.f32 %v1556_v63, %v423_v9  ;;  %v486_v9 = vpop.permute.xlu0 %485  ;;  %1307 = vperm.xlu1 %1531, %v1305_v6  }
 0x166   :  { %v443_v35 = vmul.f32 %v1558_v1, %v442_v13  ;;  %vm487_vm12 = vcmp.eq.s32.totalorder %v486_v9, 1 }
 0x167   :  { %v1560_v26 = vpop.eup %1559  ;;  %v425_v37 = vadd.f32 %v1556_v63, %v424_v24 }
 0x168   :  { %v444_v48 = vadd.f32 %v1558_v1, %v443_v35  ;;  %v461_v52 = vmul.f32 %v1560_v26, %v459_v62  ;;  %v1562_v59 = vpop.eup %1561  ;;  %vm466_vm13 = vweird.f32 %v1560_v26 }
 0x169   :  { %v429_v49 = vsel %vm428_vm7, %v1556_v63, %v425_v37  ;;  %vm467_vm15 = vmor %vm465_vm14, %vm466_vm13 }
 0x16a   :  { %v434_v51 = vsel %vm431_vm9, %v433_v38, %v429_v49  ;;  %v448_v60 = vsel %vm447_vm8, %v1558_v1, %v444_v48  ;;  %v462_v61 = vsub.f32 1.0, %v461_v52  ;;  %v469_v1 = vand.u32 2147483647, %v459_v62 }
 0x16b   :  { %v453_v47 = vsel %vm450_vm11, %v452_v30, %v448_v60  ;;  %v476_v5 = vmul.f32 %v1562_v59, %v434_v51  ;;  %v1461_v30 = vld [vmem:[%s2367_s0 + $0x28] sm:$0xff] }
 0x16c   :  { %v475_v55 = vmul.f32 %v453_v47, %v2074_v31  ;;  %v463_v56 = vmul.f32 %v1560_v26, %v462_v61  ;;  %vm470_vm0 = vcmp.eq.f32.partialorder %v469_v1, 8.507059e+37  ;;  %v496_v51 = vunpack.c.h.bf16 %v1461_v30 }
 0x16e   :  { %v477_v13 = vadd.f32 %v476_v5, %v475_v55  ;;  %v464_v14 = vadd.f32 %v1560_v26, %v463_v56 }
 0x170   :  { %1563 = vtanh.f32 %v477_v13  ;;  %v2128_v63 = vsel %vm487_vm12, %v477_v13, %v2074_v31  ;;  %v468_v15 = vsel %vm467_vm15, %v1560_v26, %v464_v14  ;;  %v1460_v31 = vld [vmem:[%s2367_s0 + $0x20] sm:$0xff] }
 0x171   :  { %v473_v25 = vsel %vm470_vm0, %v472_v18, %v468_v15  ;;  %v494_v62 = vunpack.c.h.bf16 %v1460_v31  ;;  %v495_v15 = vunpack.c.l.bf16 %v1461_v30 }
 0x176   :  { %v1564_v24 = vpop.eup %1563 }
 0x177   :  { %v479_v35 = vmul.f32 %v1564_v24, %v473_v25 }
 0x179   :  { %v2132_v36 = vsel %vm487_vm12, %v479_v35, %v2077_v0  ;;  %v493_v0 = vunpack.c.l.bf16 %v1460_v31 }
 0x17a   :  { %v497_v37 = vpack.c.bf16 %v2132_v36, %v2132_v36 }
 0x17c   :  { %506 = vmatmul.bf16.vlgmr.msra.gmra.mxu0 %v497_v37  ;;  %519 = vmatmul.bf16.vlgmr.msra.gmra.mxu1 %v497_v37 }
 0x17d   :  { %532 = vmatmul.bf16.vlgmr.msra.gmra.mxu2 %v497_v37  ;;  %545 = vmatmul.bf16.vlgmr.msra.gmra.mxu3 %v497_v37 }
 0x17e   :  { %772 = vmatpush.bf16.msra.mxu0 %v1710_v3  ;;  %785 = vmatpush.bf16.msra.mxu1 %v1721_v7 }
 0x17f   :  { %798 = vmatpush.bf16.msra.mxu2 %v1761_v21  ;;  %811 = vmatpush.bf16.msra.mxu3 %v1723_v8 }
 0x182   :  { %773 = vmatpush.bf16.msra.mxu0 %v1735_v12  ;;  %786 = vmatpush.bf16.msra.mxu1 %v1748_v16 }
 0x183   :  { %799 = vmatpush.bf16.msra.mxu2 %v1800_v34  ;;  %812 = vmatpush.bf16.msra.mxu3 %v1750_v17 }
 0x186   :  { %774 = vmatpush.bf16.msra.mxu0 %v1783_v28  ;;  %787 = vmatpush.bf16.msra.mxu1 %v1796_v32 }
 0x187   :  { %800 = vmatpush.bf16.msra.mxu2 %v1824_v42  ;;  %813 = vmatpush.bf16.msra.mxu3 %v1798_v33 }
 0x18a   :  { %775 = vmatpush.bf16.msra.mxu0 %v1822_v41  ;;  %788 = vmatpush.bf16.msra.mxu1 %v1834_v45 }
 0x18b   :  { %801 = vmatpush.bf16.msra.mxu2 %v1860_v54  ;;  %814 = vmatpush.bf16.msra.mxu3 %v1836_v46 }
 0x18e   :  { %776 = vmatpush.bf16.msra.mxu0 %v1858_v53  ;;  %789 = vmatpush.bf16.msra.mxu1 %v1870_v57 }
 0x18f   :  { %802 = vmatpush.bf16.msra.mxu2 %v1899_v4  ;;  %815 = vmatpush.bf16.msra.mxu3 %v1872_v58 }
 0x192   :  { %777 = vmatpush.bf16.msra.mxu0 %v1897_v2  ;;  %790 = vmatpush.bf16.msra.mxu1 %v1912_v10 }
 0x193   :  { %803 = vmatpush.bf16.msra.mxu2 %v1941_v23  ;;  %816 = vmatpush.bf16.msra.mxu3 %v1914_v11 }
 0x196   :  { %778 = vmatpush.bf16.msra.mxu0 %v1939_v22  ;;  %791 = vmatpush.bf16.msra.mxu1 %v1952_v27 }
 0x197   :  { %804 = vmatpush.bf16.msra.mxu2 %v1978_v40  ;;  %817 = vmatpush.bf16.msra.mxu3 %v1954_v29 }
 0x19a   :  { %779 = vmatpush.bf16.msra.mxu0 %v1976_v39  ;;  %792 = vmatpush.bf16.msra.mxu1 %v1983_v43 }
 0x19b   :  { %805 = vmatpush.bf16.msra.mxu2 %v1998_v50  ;;  %818 = vmatpush.bf16.msra.mxu3 %v1985_v44 }
 0x1f9   :  { %v507_v26 = vpop.f32.mrf.mxu0  ;;  %v520_v38 = vpop.f32.mrf.mxu1 }
 0x1fa   :  { %v550_v48 = vadd.f32 %v507_v26, %v493_v0  ;;  %v551_v52 = vadd.f32 %v520_v38, %v494_v62 }
 0x1fc   :  { %v1462_v49 = vmul.f32 -1.442695, %v550_v48  ;;  %v1463_v59 = vmul.f32 -1.442695, %v551_v52 }
 0x1fe   :  { %1565 = vpow2.f32 %v1462_v49 }
 0x1ff   :  { %1567 = vpow2.f32 %v1463_v59 }
 0x200   :  { %v533_v60 = vpop.f32.mrf.mxu2  ;;  %v546_v61 = vpop.f32.mrf.mxu3 }
 0x201   :  { %v553_v47 = vadd.f32 %v546_v61, %v496_v51  ;;  %v509_v5 = vpop.f32.mrf.mxu0  ;;  %v522_v55 = vpop.f32.mrf.mxu1  ;;  %v552_v35 = vadd.f32 %v533_v60, %v495_v15 }
 0x203   :  { %v1464_v56 = vmul.f32 -1.442695, %v553_v47 }
 0x204   :  { %v1566_v6 = vpop.eup %1565 }
 0x205   :  { %v1568_v9 = vpop.eup %1567  ;;  %v557_v13 = vadd.f32 1.0, %v1566_v6  ;;  %1569 = vpow2.f32 %v1464_v56 }
 0x206   :  { %v576_v14 = vadd.f32 1.0, %v1568_v9 }
 0x207   :  { %1571 = vrcp.f32 %v557_v13  ;;  %v569_v38 = vand.u32 2147483648, %v557_v13  ;;  %v567_v52 = vand.u32 2147483647, %v557_v13  ;;  %vm563_vm3 = vweird.f32 %v557_v13 }
 0x208   :  { %1573 = vrcp.f32 %v576_v14  ;;  %v535_v20 = vpop.f32.mrf.mxu2  ;;  %v548_v1 = vpop.f32.mrf.mxu3  ;;  %v588_v49 = vand.u32 2147483648, %v576_v14  ;;  %v586_v51 = vand.u32 2147483647, %v576_v14  ;;  %vm582_vm5 = vweird.f32 %v576_v14 }
 0x209   :  { %v570_v60 = vor.u32 1.1754944e-38, %v569_v38  ;;  %vm568_vm6 = vcmp.eq.f32.partialorder %v567_v52, 8.507059e+37 }
 0x20a   :  { %v589_v56 = vor.u32 1.1754944e-38, %v588_v49  ;;  %vm587_vm8 = vcmp.eq.f32.partialorder %v586_v51, 8.507059e+37 }
 0x20b   :  { %v1570_v18 = vpop.eup %1569 }
 0x20c   :  { %v596_v24 = vadd.f32 1.0, %v1570_v18 }
 0x20d   :  { %v1572_v25 = vpop.eup %1571 }
 0x20e   :  { %v1574_v37 = vpop.eup %1573  ;;  %v559_v31 = vmul.f32 %v1572_v25, %v557_v13  ;;  %1575 = vrcp.f32 %v596_v24  ;;  %vm564_vm1 = vweird.f32 %v1572_v25  ;;  %vm602_vm11 = vweird.f32 %v596_v24 }
 0x20f   :  { %v578_v0 = vmul.f32 %v1574_v37, %v576_v14  ;;  %1577 = vtanh.f32 %v552_v35  ;;  %vm583_vm2 = vweird.f32 %v1574_v37  ;;  %vm565_vm4 = vmor %vm563_vm3, %vm564_vm1  ;;  %v623_v35 = vpop.permute.xlu1 %622  ;;  %v608_v14 = vand.u32 2147483648, %v596_v24 }
 0x210   :  { %v560_v62 = vsub.f32 1.0, %v559_v31  ;;  %vm584_vm7 = vmor %vm582_vm5, %vm583_vm2  ;;  %vm624_vm9 = vcmp.eq.s32.totalorder %v623_v35, 1 }
 0x211   :  { %v579_v26 = vsub.f32 1.0, %v578_v0  ;;  %v609_v38 = vor.u32 1.1754944e-38, %v608_v14 }
 0x212   :  { %v561_v48 = vmul.f32 %v1572_v25, %v560_v62 }
 0x213   :  { %v580_v59 = vmul.f32 %v1574_v37, %v579_v26  ;;  %v606_v26 = vand.u32 2147483647, %v596_v24 }
 0x214   :  { %v1576_v30 = vpop.eup %1575  ;;  %v562_v61 = vadd.f32 %v1572_v25, %v561_v48 }
 0x215   :  { %v598_v47 = vmul.f32 %v1576_v30, %v596_v24  ;;  %v581_v5 = vadd.f32 %v1574_v37, %v580_v59  ;;  %v1578_v6 = vpop.eup %1577  ;;  %vm603_vm10 = vweird.f32 %v1576_v30  ;;  %vm607_vm13 = vcmp.eq.f32.partialorder %v606_v26, 8.507059e+37 }
 0x216   :  { %v566_v55 = vsel %vm565_vm4, %v1572_v25, %v562_v61  ;;  %vm604_vm12 = vmor %vm602_vm11, %vm603_vm10 }
 0x217   :  { %v571_v9 = vsel %vm568_vm6, %v570_v60, %v566_v55  ;;  %v599_v20 = vsub.f32 1.0, %v598_v47  ;;  %v585_v1 = vsel %vm584_vm7, %v1574_v37, %v581_v5  ;;  %v1467_v5 = vld [vmem:[%s2367_s0 + $0x38] sm:$0xff] }
 0x218   :  { %v613_v15 = vmul.f32 %v1578_v6, %v571_v9  ;;  %v590_v18 = vsel %vm587_vm8, %v589_v56, %v585_v1  ;;  %v633_v6 = vunpack.c.h.bf16 %v1467_v5 }
 0x219   :  { %v600_v31 = vmul.f32 %v1576_v30, %v599_v20  ;;  %v612_v13 = vmul.f32 %v590_v18, %v2128_v63 }
 0x21b   :  { %v614_v0 = vadd.f32 %v613_v15, %v612_v13  ;;  %v601_v62 = vadd.f32 %v1576_v30, %v600_v31 }
 0x21d   :  { %1579 = vtanh.f32 %v614_v0  ;;  %v2177_v25 = vsel %vm624_vm9, %v614_v0, %v2128_v63  ;;  %v605_v37 = vsel %vm604_vm12, %v1576_v30, %v601_v62  ;;  %v1466_v63 = vld [vmem:[%s2367_s0 + $0x30] sm:$0xff] }
 0x21e   :  { %v610_v52 = vsel %vm607_vm13, %v609_v38, %v605_v37  ;;  %v631_v24 = vunpack.c.h.bf16 %v1466_v63  ;;  %v632_v37 = vunpack.c.l.bf16 %v1467_v5  ;;  %v1661_v38 = vld [vmem:[%s2366_s2] sm:$0xff] }
 0x21f   :  { %vm1477_vm14 = vcmp.gt.s32.totalorder %v1661_v38, 4  ;;  %vm1483_vm15 = vcmp.gt.s32.totalorder %v1661_v38, 5 }
 0x220   :  { %v1031_v5 = vsel %vm1483_vm15, 1, %v1674_v19 }
 0x223   :  { %v1580_v48 = vpop.eup %1579 }
 0x224   :  { %v616_v49 = vmul.f32 %v1580_v48, %v610_v52  ;;  %v894_v52 = vsel %vm1477_vm14, 1, %v1674_v19 }
 0x225   :  { %896 = vperm.xlu2 %1532, %v894_v52  }
 0x226   :  { %v2181_v59 = vsel %vm624_vm9, %v616_v49, %v2132_v36  ;;  %v630_v36 = vunpack.c.l.bf16 %v1466_v63 }
 0x227   :  { %v634_v51 = vpack.c.bf16 %v2181_v59, %v2181_v59 }
 0x229   :  { %643 = vmatmul.bf16.vlgmr.msrb.gmra.mxu0 %v634_v51  ;;  %656 = vmatmul.bf16.vlgmr.msrb.gmra.mxu1 %v634_v51 }
 0x22a   :  { %669 = vmatmul.bf16.vlgmr.msrb.gmra.mxu2 %v634_v51  ;;  %682 = vmatmul.bf16.vlgmr.msrb.gmra.mxu3 %v634_v51 }
 0x22b   :  { %909 = vmatpush.bf16.msrb.mxu0 %v1710_v3  ;;  %922 = vmatpush.bf16.msrb.mxu1 %v1721_v7 }
 0x22c   :  { %935 = vmatpush.bf16.msrb.mxu2 %v1761_v21  ;;  %948 = vmatpush.bf16.msrb.mxu3 %v1723_v8 }
 0x22d   :  { %1033 = vperm.xlu2 %1532, %v1031_v5  }
 0x22f   :  { %910 = vmatpush.bf16.msrb.mxu0 %v1735_v12  ;;  %923 = vmatpush.bf16.msrb.mxu1 %v1748_v16 }
 0x230   :  { %936 = vmatpush.bf16.msrb.mxu2 %v1800_v34  ;;  %949 = vmatpush.bf16.msrb.mxu3 %v1750_v17 }
 0x233   :  { %911 = vmatpush.bf16.msrb.mxu0 %v1783_v28  ;;  %924 = vmatpush.bf16.msrb.mxu1 %v1796_v32 }
 0x234   :  { %937 = vmatpush.bf16.msrb.mxu2 %v1824_v42  ;;  %950 = vmatpush.bf16.msrb.mxu3 %v1798_v33 }
 0x237   :  { %912 = vmatpush.bf16.msrb.mxu0 %v1822_v41  ;;  %925 = vmatpush.bf16.msrb.mxu1 %v1834_v45 }
 0x238   :  { %938 = vmatpush.bf16.msrb.mxu2 %v1860_v54  ;;  %951 = vmatpush.bf16.msrb.mxu3 %v1836_v46 }
 0x23b   :  { %913 = vmatpush.bf16.msrb.mxu0 %v1858_v53  ;;  %926 = vmatpush.bf16.msrb.mxu1 %v1870_v57 }
 0x23c   :  { %939 = vmatpush.bf16.msrb.mxu2 %v1899_v4  ;;  %952 = vmatpush.bf16.msrb.mxu3 %v1872_v58 }
 0x23f   :  { %914 = vmatpush.bf16.msrb.mxu0 %v1897_v2  ;;  %927 = vmatpush.bf16.msrb.mxu1 %v1912_v10 }
 0x240   :  { %940 = vmatpush.bf16.msrb.mxu2 %v1941_v23  ;;  %953 = vmatpush.bf16.msrb.mxu3 %v1914_v11 }
 0x243   :  { %915 = vmatpush.bf16.msrb.mxu0 %v1939_v22  ;;  %928 = vmatpush.bf16.msrb.mxu1 %v1952_v27 }
 0x244   :  { %941 = vmatpush.bf16.msrb.mxu2 %v1978_v40  ;;  %954 = vmatpush.bf16.msrb.mxu3 %v1954_v29 }
 0x247   :  { %916 = vmatpush.bf16.msrb.mxu0 %v1976_v39  ;;  %929 = vmatpush.bf16.msrb.mxu1 %v1983_v43 }
 0x248   :  { %942 = vmatpush.bf16.msrb.mxu2 %v1998_v50  ;;  %955 = vmatpush.bf16.msrb.mxu3 %v1985_v44 }
 0x2a6   :  { %v644_v30 = vpop.f32.mrf.mxu0  ;;  %v657_v61 = vpop.f32.mrf.mxu1 }
 0x2a7   :  { %v687_v60 = vadd.f32 %v644_v30, %v630_v36  ;;  %v688_v47 = vadd.f32 %v657_v61, %v631_v24 }
 0x2a9   :  { %v1468_v55 = vmul.f32 -1.442695, %v687_v60  ;;  %v1469_v56 = vmul.f32 -1.442695, %v688_v47 }
 0x2ab   :  { %1581 = vpow2.f32 %v1468_v55 }
 0x2ac   :  { %1583 = vpow2.f32 %v1469_v56 }
 0x2ad   :  { %v670_v9 = vpop.f32.mrf.mxu2  ;;  %v683_v20 = vpop.f32.mrf.mxu3 }
 0x2ae   :  { %v690_v1 = vadd.f32 %v683_v20, %v633_v6  ;;  %v646_v15 = vpop.f32.mrf.mxu0  ;;  %v659_v18 = vpop.f32.mrf.mxu1  ;;  %v689_v63 = vadd.f32 %v670_v9, %v632_v37 }
 0x2b0   :  { %v1470_v35 = vmul.f32 -1.442695, %v690_v1 }
 0x2b1   :  { %v1582_v31 = vpop.eup %1581 }
 0x2b2   :  { %v1584_v13 = vpop.eup %1583  ;;  %v694_v0 = vadd.f32 1.0, %v1582_v31  ;;  %1585 = vpow2.f32 %v1470_v35 }
 0x2b3   :  { %v713_v62 = vadd.f32 1.0, %v1584_v13 }
 0x2b4   :  { %1587 = vrcp.f32 %v694_v0  ;;  %v706_v47 = vand.u32 2147483648, %v694_v0  ;;  %v704_v6 = vand.u32 2147483647, %v694_v0  ;;  %vm700_vm2 = vweird.f32 %v694_v0 }
 0x2b5   :  { %1589 = vrcp.f32 %v713_v62  ;;  %v672_v14 = vpop.f32.mrf.mxu2  ;;  %v685_v26 = vpop.f32.mrf.mxu3  ;;  %v725_v55 = vand.u32 2147483648, %v713_v62  ;;  %v723_v1 = vand.u32 2147483647, %v713_v62  ;;  %vm719_vm3 = vweird.f32 %v713_v62 }
 0x2b6   :  { %v707_v18 = vor.u32 1.1754944e-38, %v706_v47  ;;  %vm705_vm6 = vcmp.eq.f32.partialorder %v704_v6, 8.507059e+37 }
 0x2b7   :  { %v726_v13 = vor.u32 1.1754944e-38, %v725_v55  ;;  %vm724_vm7 = vcmp.eq.f32.partialorder %v723_v1, 8.507059e+37 }
 0x2b8   :  { %v1586_v48 = vpop.eup %1585 }
 0x2b9   :  { %v733_v49 = vadd.f32 1.0, %v1586_v48 }
 0x2ba   :  { %v1588_v51 = vpop.eup %1587 }
 0x2bb   :  { %v1590_v36 = vpop.eup %1589  ;;  %v696_v24 = vmul.f32 %v1588_v51, %v694_v0  ;;  %1591 = vrcp.f32 %v733_v49  ;;  %vm701_vm0 = vweird.f32 %v1588_v51  ;;  %vm739_vm10 = vweird.f32 %v733_v49 }
 0x2bc   :  { %v715_v30 = vmul.f32 %v1590_v36, %v713_v62  ;;  %1593 = vtanh.f32 %v689_v63  ;;  %vm720_vm1 = vweird.f32 %v1590_v36  ;;  %vm702_vm4 = vmor %vm700_vm2, %vm701_vm0 }
 0x2bd   :  { %v697_v61 = vsub.f32 1.0, %v696_v24  ;;  %vm721_vm5 = vmor %vm719_vm3, %vm720_vm1  ;;  %v760_v24 = vpop.permute.xlu1 %759 }
 0x2be   :  { %v716_v60 = vsub.f32 1.0, %v715_v30  ;;  %vm761_vm8 = vcmp.eq.s32.totalorder %v760_v24, 1 }
 0x2bf   :  { %v698_v56 = vmul.f32 %v1588_v51, %v697_v61  ;;  %v745_v61 = vand.u32 2147483648, %v733_v49 }
 0x2c0   :  { %v717_v20 = vmul.f32 %v1590_v36, %v716_v60  ;;  %v743_v60 = vand.u32 2147483647, %v733_v49 }
 0x2c1   :  { %v1592_v15 = vpop.eup %1591  ;;  %v699_v9 = vadd.f32 %v1588_v51, %v698_v56  ;;  %v746_v47 = vor.u32 1.1754944e-38, %v745_v61 }
 0x2c2   :  { %v718_v35 = vadd.f32 %v1590_v36, %v717_v20  ;;  %v735_v31 = vmul.f32 %v1592_v15, %v733_v49  ;;  %v1594_v19 = vpop.eup %1593  ;;  %vm740_vm9 = vweird.f32 %v1592_v15  ;;  %vm744_vm12 = vcmp.eq.f32.partialorder %v743_v60, 8.507059e+37 }
 0x2c3   :  { %v703_v14 = vsel %vm702_vm4, %v1588_v51, %v699_v9  ;;  %vm741_vm11 = vmor %vm739_vm10, %vm740_vm9 }
 0x2c4   :  { %v708_v26 = vsel %vm705_vm6, %v707_v18, %v703_v14  ;;  %v722_v37 = vsel %vm721_vm5, %v1590_v36, %v718_v35  ;;  %v736_v38 = vsub.f32 1.0, %v735_v31  ;;  %v1473_v35 = vld [vmem:[%s2367_s0 + $0x48] sm:$0xff] }
 0x2c5   :  { %v727_v48 = vsel %vm724_vm7, %v726_v13, %v722_v37  ;;  %v750_v52 = vmul.f32 %v1594_v19, %v708_v26  ;;  %v770_v14 = vunpack.c.h.bf16 %v1473_v35  ;;  %v769_v60 = vunpack.c.l.bf16 %v1473_v35 }
 0x2c6   :  { %v749_v63 = vmul.f32 %v727_v48, %v2177_v25  ;;  %v737_v0 = vmul.f32 %v1592_v15, %v736_v38 }
 0x2c8   :  { %v751_v62 = vadd.f32 %v750_v52, %v749_v63  ;;  %v738_v30 = vadd.f32 %v1592_v15, %v737_v0 }
 0x2ca   :  { %1595 = vtanh.f32 %v751_v62  ;;  %v2230_v51 = vsel %vm761_vm8, %v751_v62, %v2177_v25  ;;  %v742_v36 = vsel %vm741_vm11, %v1592_v15, %v738_v30  ;;  %v1472_v25 = vld [vmem:[%s2367_s0 + $0x40] sm:$0xff] }
 0x2cb   :  { %v747_v55 = vsel %vm744_vm12, %v746_v47, %v742_v36  ;;  %v768_v49 = vunpack.c.h.bf16 %v1472_v25 }
 0x2d0   :  { %v1596_v5 = vpop.eup %1595 }
 0x2d1   :  { %v753_v56 = vmul.f32 %v1596_v5, %v747_v55 }
 0x2d3   :  { %v2233_v6 = vsel %vm761_vm8, %v753_v56, %v2181_v59  ;;  %v767_v59 = vunpack.c.l.bf16 %v1472_v25 }
 0x2d4   :  { %v771_v20 = vpack.c.bf16 %v2233_v6, %v2233_v6 }
 0x2d6   :  { %780 = vmatmul.bf16.vlgmr.msra.gmra.mxu0 %v771_v20  ;;  %793 = vmatmul.bf16.vlgmr.msra.gmra.mxu1 %v771_v20 }
 0x2d7   :  { %806 = vmatmul.bf16.vlgmr.msra.gmra.mxu2 %v771_v20  ;;  %819 = vmatmul.bf16.vlgmr.msra.gmra.mxu3 %v771_v20 }
 0x2d8   :  { %1046 = vmatpush.bf16.msra.mxu0 %v1710_v3  ;;  %1059 = vmatpush.bf16.msra.mxu1 %v1721_v7 }
 0x2d9   :  { %1072 = vmatpush.bf16.msra.mxu2 %v1761_v21  ;;  %1085 = vmatpush.bf16.msra.mxu3 %v1723_v8 }
 0x2dc   :  { %1047 = vmatpush.bf16.msra.mxu0 %v1735_v12  ;;  %1060 = vmatpush.bf16.msra.mxu1 %v1748_v16 }
 0x2dd   :  { %1073 = vmatpush.bf16.msra.mxu2 %v1800_v34  ;;  %1086 = vmatpush.bf16.msra.mxu3 %v1750_v17 }
 0x2e0   :  { %1048 = vmatpush.bf16.msra.mxu0 %v1783_v28  ;;  %1061 = vmatpush.bf16.msra.mxu1 %v1796_v32 }
 0x2e1   :  { %1074 = vmatpush.bf16.msra.mxu2 %v1824_v42  ;;  %1087 = vmatpush.bf16.msra.mxu3 %v1798_v33 }
 0x2e4   :  { %1049 = vmatpush.bf16.msra.mxu0 %v1822_v41  ;;  %1062 = vmatpush.bf16.msra.mxu1 %v1834_v45 }
 0x2e5   :  { %1075 = vmatpush.bf16.msra.mxu2 %v1860_v54  ;;  %1088 = vmatpush.bf16.msra.mxu3 %v1836_v46 }
 0x2e8   :  { %1050 = vmatpush.bf16.msra.mxu0 %v1858_v53  ;;  %1063 = vmatpush.bf16.msra.mxu1 %v1870_v57 }
 0x2e9   :  { %1076 = vmatpush.bf16.msra.mxu2 %v1899_v4  ;;  %1089 = vmatpush.bf16.msra.mxu3 %v1872_v58 }
 0x2ec   :  { %1051 = vmatpush.bf16.msra.mxu0 %v1897_v2  ;;  %1064 = vmatpush.bf16.msra.mxu1 %v1912_v10 }
 0x2ed   :  { %1077 = vmatpush.bf16.msra.mxu2 %v1941_v23  ;;  %1090 = vmatpush.bf16.msra.mxu3 %v1914_v11 }
 0x2f0   :  { %1052 = vmatpush.bf16.msra.mxu0 %v1939_v22  ;;  %1065 = vmatpush.bf16.msra.mxu1 %v1952_v27 }
 0x2f1   :  { %1078 = vmatpush.bf16.msra.mxu2 %v1978_v40  ;;  %1091 = vmatpush.bf16.msra.mxu3 %v1954_v29 }
 0x2f4   :  { %1053 = vmatpush.bf16.msra.mxu0 %v1976_v39  ;;  %1066 = vmatpush.bf16.msra.mxu1 %v1983_v43 }
 0x2f5   :  { %1079 = vmatpush.bf16.msra.mxu2 %v1998_v50  ;;  %1092 = vmatpush.bf16.msra.mxu3 %v1985_v44 }
 0x353   :  { %v781_v1 = vpop.f32.mrf.mxu0  ;;  %v794_v15 = vpop.f32.mrf.mxu1 }
 0x354   :  { %v824_v9 = vadd.f32 %v781_v1, %v767_v59  ;;  %v825_v18 = vadd.f32 %v794_v15, %v768_v49 }
 0x356   :  { %v1474_v31 = vmul.f32 -1.442695, %v824_v9  ;;  %v1475_v13 = vmul.f32 -1.442695, %v825_v18 }
 0x358   :  { %1597 = vpow2.f32 %v1474_v31 }
 0x359   :  { %1599 = vpow2.f32 %v1475_v13 }
 0x35a   :  { %v807_v19 = vpop.f32.mrf.mxu2  ;;  %v820_v26 = vpop.f32.mrf.mxu3 }
 0x35b   :  { %v827_v37 = vadd.f32 %v820_v26, %v770_v14  ;;  %v783_v38 = vpop.f32.mrf.mxu0  ;;  %v796_v48 = vpop.f32.mrf.mxu1  ;;  %v826_v55 = vadd.f32 %v807_v19, %v769_v60 }
 0x35d   :  { %v1476_v52 = vmul.f32 -1.442695, %v827_v37 }
 0x35e   :  { %v1598_v63 = vpop.eup %1597 }
 0x35f   :  { %v1600_v0 = vpop.eup %1599  ;;  %v831_v24 = vadd.f32 1.0, %v1598_v63  ;;  %1601 = vpow2.f32 %v1476_v52 }
 0x360   :  { %v850_v62 = vadd.f32 1.0, %v1600_v0 }
 0x361   :  { %1603 = vrcp.f32 %v831_v24  ;;  %v843_v1 = vand.u32 2147483648, %v831_v24  ;;  %v841_v9 = vand.u32 2147483647, %v831_v24  ;;  %vm837_vm15 = vweird.f32 %v831_v24 }
 0x362   :  { %1605 = vrcp.f32 %v850_v62  ;;  %v809_v30 = vpop.f32.mrf.mxu2  ;;  %v822_v61 = vpop.f32.mrf.mxu3  ;;  %v862_v18 = vand.u32 2147483648, %v850_v62  ;;  %v860_v13 = vand.u32 2147483647, %v850_v62  ;;  %vm856_vm1 = vweird.f32 %v850_v62 }
 0x363   :  { %v844_v19 = vor.u32 1.1754944e-38, %v843_v1  ;;  %vm842_vm2 = vcmp.eq.f32.partialorder %v841_v9, 8.507059e+37  ;;  %v897_v30 = vpop.permute.xlu2 %896 }
 0x364   :  { %v863_v48 = vor.u32 1.1754944e-38, %v862_v18  ;;  %vm861_vm4 = vcmp.eq.f32.partialorder %v860_v13, 8.507059e+37  ;;  %vm898_vm5 = vcmp.eq.s32.totalorder %v897_v30, 1 }
 0x365   :  { %v1602_v36 = vpop.eup %1601 }
 0x366   :  { %v870_v47 = vadd.f32 1.0, %v1602_v36 }
 0x367   :  { %v1604_v5 = vpop.eup %1603 }
 0x368   :  { %v1606_v56 = vpop.eup %1605  ;;  %v833_v20 = vmul.f32 %v1604_v5, %v831_v24  ;;  %1607 = vrcp.f32 %v870_v47  ;;  %vm838_vm13 = vweird.f32 %v1604_v5  ;;  %vm876_vm7 = vweird.f32 %v870_v47 }
 0x369   :  { %v852_v25 = vmul.f32 %v1606_v56, %v850_v62  ;;  %1609 = vtanh.f32 %v826_v55  ;;  %vm857_vm14 = vweird.f32 %v1606_v56  ;;  %vm839_vm0 = vmor %vm837_vm15, %vm838_vm13  ;;  %v882_v62 = vand.u32 2147483648, %v870_v47 }
 0x36a   :  { %v834_v59 = vsub.f32 1.0, %v833_v20  ;;  %vm858_vm3 = vmor %vm856_vm1, %vm857_vm14 }
 0x36b   :  { %v853_v49 = vsub.f32 1.0, %v852_v25 }
 0x36c   :  { %v835_v15 = vmul.f32 %v1604_v5, %v834_v59  ;;  %v880_v59 = vand.u32 2147483647, %v870_v47 }
 0x36d   :  { %v854_v31 = vmul.f32 %v1606_v56, %v853_v49  ;;  %v883_v49 = vor.u32 1.1754944e-38, %v882_v62 }
 0x36e   :  { %v1608_v35 = vpop.eup %1607  ;;  %v836_v14 = vadd.f32 %v1604_v5, %v835_v15  ;;  %vm881_vm9 = vcmp.eq.f32.partialorder %v880_v59, 8.507059e+37 }
 0x36f   :  { %v872_v26 = vmul.f32 %v1608_v35, %v870_v47  ;;  %v855_v37 = vadd.f32 %v1606_v56, %v854_v31  ;;  %v1610_v52 = vpop.eup %1609  ;;  %vm877_vm6 = vweird.f32 %v1608_v35 }
 0x370   :  { %v840_v38 = vsel %vm839_vm0, %v1604_v5, %v836_v14  ;;  %vm878_vm8 = vmor %vm876_vm7, %vm877_vm6 }
 0x371   :  { %v845_v63 = vsel %vm842_vm2, %v844_v19, %v840_v38  ;;  %v873_v0 = vsub.f32 1.0, %v872_v26  ;;  %v859_v61 = vsel %vm858_vm3, %v1606_v56, %v855_v37 }
 0x372   :  { %v887_v60 = vmul.f32 %v1610_v52, %v845_v63  ;;  %v864_v36 = vsel %vm861_vm4, %v863_v48, %v859_v61 }
 0x373   :  { %v874_v55 = vmul.f32 %v1608_v35, %v873_v0  ;;  %v886_v24 = vmul.f32 %v864_v36, %v2230_v51 }
 0x375   :  { %v888_v20 = vadd.f32 %v887_v60, %v886_v24  ;;  %v875_v25 = vadd.f32 %v1608_v35, %v874_v55 }
 0x377   :  { %1611 = vtanh.f32 %v888_v20  ;;  %v2278_v5 = vsel %vm898_vm5, %v888_v20, %v2230_v51  ;;  %v879_v56 = vsel %vm878_vm8, %v1608_v35, %v875_v25  ;;  %v1034_v20 = vpop.permute.xlu2 %1033 }
 0x378   :  { %v884_v15 = vsel %vm881_vm9, %v883_v49, %v879_v56  ;;  %vm1035_vm2 = vcmp.eq.s32.totalorder %v1034_v20, 1 }
 0x37d   :  { %v1612_v1 = vpop.eup %1611 }
 0x37e   :  { %v890_v9 = vmul.f32 %v1612_v1, %v884_v15 }
 0x380   :  { %v2282_v18 = vsel %vm898_vm5, %v890_v9, %v2233_v6 }
 0x381   :  { %v908_v31 = vpack.c.bf16 %v2282_v18, %v2282_v18 }
 0x383   :  { %917 = vmatmul.bf16.vlgmr.msrb.gmra.mxu0 %v908_v31  ;;  %930 = vmatmul.bf16.vlgmr.msrb.gmra.mxu1 %v908_v31 }
 0x384   :  { %943 = vmatmul.bf16.vlgmr.msrb.gmra.mxu2 %v908_v31  ;;  %956 = vmatmul.bf16.vlgmr.msrb.gmra.mxu3 %v908_v31 }
 0x385   :  { %1183 = vmatpush.bf16.msrb.mxu0 %v1710_v3  ;;  %1196 = vmatpush.bf16.msrb.mxu1 %v1721_v7  ;;  %v1478_v3 = vld [vmem:[%s2367_s0 + $0x50] sm:$0xff] }
 0x386   :  { %1209 = vmatpush.bf16.msrb.mxu2 %v1761_v21  ;;  %1222 = vmatpush.bf16.msrb.mxu3 %v1723_v8  ;;  %v904_v7 = vunpack.c.l.bf16 %v1478_v3  ;;  %v905_v8 = vunpack.c.h.bf16 %v1478_v3 }
 0x389   :  { %1184 = vmatpush.bf16.msrb.mxu0 %v1735_v12  ;;  %1197 = vmatpush.bf16.msrb.mxu1 %v1748_v16 }
 0x38a   :  { %1210 = vmatpush.bf16.msrb.mxu2 %v1800_v34  ;;  %1223 = vmatpush.bf16.msrb.mxu3 %v1750_v17 }
 0x38d   :  { %1185 = vmatpush.bf16.msrb.mxu0 %v1783_v28  ;;  %1198 = vmatpush.bf16.msrb.mxu1 %v1796_v32  ;;  %v1479_v28 = vld [vmem:[%s2367_s0 + $0x58] sm:$0xff] }
 0x38e   :  { %1211 = vmatpush.bf16.msrb.mxu2 %v1824_v42  ;;  %1224 = vmatpush.bf16.msrb.mxu3 %v1798_v33  ;;  %v907_v34 = vunpack.c.h.bf16 %v1479_v28 }
 0x391   :  { %1186 = vmatpush.bf16.msrb.mxu0 %v1822_v41  ;;  %1199 = vmatpush.bf16.msrb.mxu1 %v1834_v45 }
 0x392   :  { %1212 = vmatpush.bf16.msrb.mxu2 %v1860_v54  ;;  %1225 = vmatpush.bf16.msrb.mxu3 %v1836_v46 }
 0x395   :  { %1187 = vmatpush.bf16.msrb.mxu0 %v1858_v53  ;;  %1200 = vmatpush.bf16.msrb.mxu1 %v1870_v57 }
 0x396   :  { %1213 = vmatpush.bf16.msrb.mxu2 %v1899_v4  ;;  %1226 = vmatpush.bf16.msrb.mxu3 %v1872_v58 }
 0x399   :  { %1188 = vmatpush.bf16.msrb.mxu0 %v1897_v2  ;;  %1201 = vmatpush.bf16.msrb.mxu1 %v1912_v10 }
 0x39a   :  { %1214 = vmatpush.bf16.msrb.mxu2 %v1941_v23  ;;  %1227 = vmatpush.bf16.msrb.mxu3 %v1914_v11 }
 0x39d   :  { %1189 = vmatpush.bf16.msrb.mxu0 %v1939_v22  ;;  %1202 = vmatpush.bf16.msrb.mxu1 %v1952_v27  ;;  %v906_v22 = vunpack.c.l.bf16 %v1479_v28 }
 0x39e   :  { %1215 = vmatpush.bf16.msrb.mxu2 %v1978_v40  ;;  %1228 = vmatpush.bf16.msrb.mxu3 %v1954_v29 }
 0x3a1   :  { %1190 = vmatpush.bf16.msrb.mxu0 %v1976_v39  ;;  %1203 = vmatpush.bf16.msrb.mxu1 %v1983_v43 }
 0x3a2   :  { %1216 = vmatpush.bf16.msrb.mxu2 %v1998_v50  ;;  %1229 = vmatpush.bf16.msrb.mxu3 %v1985_v44 }
 0x400   :  { %v918_v12 = vpop.f32.mrf.mxu0  ;;  %v931_v16 = vpop.f32.mrf.mxu1 }
 0x401   :  { %v961_v17 = vadd.f32 %v918_v12, %v904_v7  ;;  %v962_v21 = vadd.f32 %v931_v16, %v905_v8 }
 0x403   :  { %v1480_v32 = vmul.f32 -1.442695, %v961_v17  ;;  %v1481_v33 = vmul.f32 -1.442695, %v962_v21 }
 0x405   :  { %1613 = vpow2.f32 %v1480_v32 }
 0x406   :  { %1615 = vpow2.f32 %v1481_v33 }
 0x407   :  { %v944_v41 = vpop.f32.mrf.mxu2  ;;  %v957_v42 = vpop.f32.mrf.mxu3 }
 0x408   :  { %v964_v45 = vadd.f32 %v957_v42, %v907_v34  ;;  %v920_v46 = vpop.f32.mrf.mxu0  ;;  %v933_v53 = vpop.f32.mrf.mxu1  ;;  %v963_v39 = vadd.f32 %v944_v41, %v906_v22 }
 0x40a   :  { %v1482_v54 = vmul.f32 -1.442695, %v964_v45 }
 0x40b   :  { %v1614_v57 = vpop.eup %1613 }
 0x40c   :  { %v1616_v58 = vpop.eup %1615  ;;  %v968_v2 = vadd.f32 1.0, %v1614_v57  ;;  %1617 = vpow2.f32 %v1482_v54 }
 0x40d   :  { %v987_v4 = vadd.f32 1.0, %v1616_v58 }
 0x40e   :  { %1619 = vrcp.f32 %v968_v2  ;;  %v980_v6 = vand.u32 2147483648, %v968_v2  ;;  %v978_v35 = vand.u32 2147483647, %v968_v2  ;;  %vm974_vm12 = vweird.f32 %v968_v2 }
 0x40f   :  { %1621 = vrcp.f32 %v987_v4  ;;  %v946_v10 = vpop.f32.mrf.mxu2  ;;  %v959_v11 = vpop.f32.mrf.mxu3  ;;  %v999_v47 = vand.u32 2147483648, %v987_v4  ;;  %v997_v19 = vand.u32 2147483647, %v987_v4  ;;  %vm993_vm13 = vweird.f32 %v987_v4 }
 0x410   :  { %v981_v38 = vor.u32 1.1754944e-38, %v980_v6  ;;  %vm979_vm0 = vcmp.eq.f32.partialorder %v978_v35, 8.507059e+37 }
 0x411   :  { %v1000_v63 = vor.u32 1.1754944e-38, %v999_v47  ;;  %vm998_vm1 = vcmp.eq.f32.partialorder %v997_v19, 8.507059e+37 }
 0x412   :  { %v1618_v23 = vpop.eup %1617 }
 0x413   :  { %v1007_v27 = vadd.f32 1.0, %v1618_v23 }
 0x414   :  { %v1620_v29 = vpop.eup %1619 }
 0x415   :  { %v1622_v40 = vpop.eup %1621  ;;  %v970_v43 = vmul.f32 %v1620_v29, %v968_v2  ;;  %1623 = vrcp.f32 %v1007_v27  ;;  %vm975_vm10 = vweird.f32 %v1620_v29  ;;  %v1019_v49 = vand.u32 2147483648, %v1007_v27 }
 0x416   :  { %v989_v44 = vmul.f32 %v1622_v40, %v987_v4  ;;  %1625 = vtanh.f32 %v963_v39  ;;  %vm994_vm11 = vweird.f32 %v1622_v40  ;;  %vm976_vm14 = vmor %vm974_vm12, %vm975_vm10  ;;  %vm1013_vm4 = vweird.f32 %v1007_v27 }
 0x417   :  { %v971_v50 = vsub.f32 1.0, %v970_v43  ;;  %vm995_vm15 = vmor %vm993_vm13, %vm994_vm11  ;;  %v1017_v15 = vand.u32 2147483647, %v1007_v27  ;;  %v1020_v31 = vor.u32 1.1754944e-38, %v1019_v49 }
 0x418   :  { %v990_v51 = vsub.f32 1.0, %v989_v44 }
 0x419   :  { %v972_v13 = vmul.f32 %v1620_v29, %v971_v50  ;;  %vm1018_vm6 = vcmp.eq.f32.partialorder %v1017_v15, 8.507059e+37 }
 0x41a   :  { %v991_v14 = vmul.f32 %v1622_v40, %v990_v51 }
 0x41b   :  { %v1624_v26 = vpop.eup %1623  ;;  %v973_v37 = vadd.f32 %v1620_v29, %v972_v13 }
 0x41c   :  { %v992_v48 = vadd.f32 %v1622_v40, %v991_v14  ;;  %v1009_v52 = vmul.f32 %v1624_v26, %v1007_v27  ;;  %v1626_v30 = vpop.eup %1625  ;;  %vm1014_vm3 = vweird.f32 %v1624_v26 }
 0x41d   :  { %v977_v0 = vsel %vm976_vm14, %v1620_v29, %v973_v37  ;;  %vm1015_vm5 = vmor %vm1013_vm4, %vm1014_vm3 }
 0x41e   :  { %v982_v61 = vsel %vm979_vm0, %v981_v38, %v977_v0  ;;  %v996_v60 = vsel %vm995_vm15, %v1622_v40, %v992_v48  ;;  %v1010_v36 = vsub.f32 1.0, %v1009_v52 }
 0x41f   :  { %v1001_v55 = vsel %vm998_vm1, %v1000_v63, %v996_v60  ;;  %v1024_v24 = vmul.f32 %v1626_v30, %v982_v61 }
 0x420   :  { %v1023_v25 = vmul.f32 %v1001_v55, %v2278_v5  ;;  %v1011_v62 = vmul.f32 %v1624_v26, %v1010_v36 }
 0x422   :  { %v1025_v59 = vadd.f32 %v1024_v24, %v1023_v25  ;;  %v1012_v56 = vadd.f32 %v1624_v26, %v1011_v62 }
 0x424   :  { %1627 = vtanh.f32 %v1025_v59  ;;  %v2326_v1 = vsel %vm1035_vm2, %v1025_v59, %v2278_v5  ;;  %v1016_v9 = vsel %vm1015_vm5, %v1624_v26, %v1012_v56  ;;  %v1484_v5 = vld [vmem:[%s2367_s0 + $0x60] sm:$0xff]  ;;  %v1171_v59 = vpop.permute.xlu0 %1170 }
 0x425   :  { %v1021_v7 = vsel %vm1018_vm6, %v1020_v31, %v1016_v9  ;;  %v1041_v17 = vunpack.c.l.bf16 %v1484_v5  ;;  %v1042_v21 = vunpack.c.h.bf16 %v1484_v5  ;;  %vm1172_vm15 = vcmp.eq.s32.totalorder %v1171_v59, 1 }
 0x42a   :  { %v1628_v3 = vpop.eup %1627 }
 0x42b   :  { %v1027_v8 = vmul.f32 %v1628_v3, %v1021_v7 }
 0x42d   :  { %v2329_v12 = vsel %vm1035_vm2, %v1027_v8, %v2282_v18  ;;  %v1485_v18 = vld [vmem:[%s2367_s0 + $0x68] sm:$0xff] }
 0x42e   :  { %v1045_v16 = vpack.c.bf16 %v2329_v12, %v2329_v12  ;;  %v1044_v45 = vunpack.c.h.bf16 %v1485_v18  ;;  %v1043_v29 = vunpack.c.l.bf16 %v1485_v18 }
 0x430   :  { %1054 = vmatmul.bf16.vlgmr.msra.gmra.mxu0 %v1045_v16  ;;  %1067 = vmatmul.bf16.vlgmr.msra.gmra.mxu1 %v1045_v16 }
 0x431   :  { %1080 = vmatmul.bf16.vlgmr.msra.gmra.mxu2 %v1045_v16  ;;  %1093 = vmatmul.bf16.vlgmr.msra.gmra.mxu3 %v1045_v16 }
 0x4ad   :  { %v1055_v28 = vpop.f32.mrf.mxu0  ;;  %v1068_v32 = vpop.f32.mrf.mxu1 }
 0x4ae   :  { %v1098_v33 = vadd.f32 %v1055_v28, %v1041_v17  ;;  %v1099_v34 = vadd.f32 %v1068_v32, %v1042_v21 }
 0x4b0   :  { %v1486_v41 = vmul.f32 -1.442695, %v1098_v33  ;;  %v1487_v42 = vmul.f32 -1.442695, %v1099_v34 }
 0x4b2   :  { %1629 = vpow2.f32 %v1486_v41 }
 0x4b3   :  { %1631 = vpow2.f32 %v1487_v42 }
 0x4b4   :  { %v1081_v46 = vpop.f32.mrf.mxu2  ;;  %v1094_v53 = vpop.f32.mrf.mxu3 }
 0x4b5   :  { %v1101_v54 = vadd.f32 %v1094_v53, %v1044_v45  ;;  %v1057_v57 = vpop.f32.mrf.mxu0  ;;  %v1070_v58 = vpop.f32.mrf.mxu1  ;;  %v1100_v44 = vadd.f32 %v1081_v46, %v1043_v29 }
 0x4b7   :  { %v1488_v2 = vmul.f32 -1.442695, %v1101_v54 }
 0x4b8   :  { %v1630_v4 = vpop.eup %1629 }
 0x4b9   :  { %v1632_v10 = vpop.eup %1631  ;;  %v1105_v11 = vadd.f32 1.0, %v1630_v4  ;;  %1633 = vpow2.f32 %v1488_v2 }
 0x4ba   :  { %v1124_v22 = vadd.f32 1.0, %v1632_v10 }
 0x4bb   :  { %1635 = vrcp.f32 %v1105_v11  ;;  %v1117_v35 = vand.u32 2147483648, %v1105_v11  ;;  %v1115_v26 = vand.u32 2147483647, %v1105_v11  ;;  %vm1111_vm9 = vweird.f32 %v1105_v11 }
 0x4bc   :  { %1637 = vrcp.f32 %v1124_v22  ;;  %v1083_v23 = vpop.f32.mrf.mxu2  ;;  %v1096_v27 = vpop.f32.mrf.mxu3  ;;  %v1136_v14 = vand.u32 2147483648, %v1124_v22  ;;  %v1134_v38 = vand.u32 2147483647, %v1124_v22  ;;  %vm1130_vm10 = vweird.f32 %v1124_v22 }
 0x4bd   :  { %v1118_v63 = vor.u32 1.1754944e-38, %v1117_v35  ;;  %vm1116_vm13 = vcmp.eq.f32.partialorder %v1115_v26, 8.507059e+37 }
 0x4be   :  { %v1137_v61 = vor.u32 1.1754944e-38, %v1136_v14  ;;  %vm1135_vm14 = vcmp.eq.f32.partialorder %v1134_v38, 8.507059e+37 }
 0x4bf   :  { %v1634_v39 = vpop.eup %1633 }
 0x4c0   :  { %v1144_v40 = vadd.f32 1.0, %v1634_v39 }
 0x4c1   :  { %v1636_v43 = vpop.eup %1635 }
 0x4c2   :  { %v1638_v50 = vpop.eup %1637  ;;  %v1107_v51 = vmul.f32 %v1636_v43, %v1105_v11  ;;  %1639 = vrcp.f32 %v1144_v40  ;;  %vm1112_vm7 = vweird.f32 %v1636_v43  ;;  %v1156_v31 = vand.u32 2147483648, %v1144_v40 }
 0x4c3   :  { %v1126_v6 = vmul.f32 %v1638_v50, %v1124_v22  ;;  %1641 = vtanh.f32 %v1100_v44  ;;  %vm1131_vm8 = vweird.f32 %v1638_v50  ;;  %vm1113_vm11 = vmor %vm1111_vm9, %vm1112_vm7  ;;  %vm1150_vm1 = vweird.f32 %v1144_v40 }
 0x4c4   :  { %v1108_v47 = vsub.f32 1.0, %v1107_v51  ;;  %vm1132_vm12 = vmor %vm1130_vm10, %vm1131_vm8  ;;  %v1154_v7 = vand.u32 2147483647, %v1144_v40  ;;  %v1157_v16 = vor.u32 1.1754944e-38, %v1156_v31 }
 0x4c5   :  { %v1127_v13 = vsub.f32 1.0, %v1126_v6 }
 0x4c6   :  { %v1109_v19 = vmul.f32 %v1636_v43, %v1108_v47  ;;  %vm1155_vm3 = vcmp.eq.f32.partialorder %v1154_v7, 8.507059e+37 }
 0x4c7   :  { %v1128_v37 = vmul.f32 %v1638_v50, %v1127_v13 }
 0x4c8   :  { %v1640_v48 = vpop.eup %1639  ;;  %v1110_v52 = vadd.f32 %v1636_v43, %v1109_v19 }
 0x4c9   :  { %v1129_v0 = vadd.f32 %v1638_v50, %v1128_v37  ;;  %v1146_v30 = vmul.f32 %v1640_v48, %v1144_v40  ;;  %v1642_v36 = vpop.eup %1641  ;;  %vm1151_vm0 = vweird.f32 %v1640_v48 }
 0x4ca   :  { %v1114_v60 = vsel %vm1113_vm11, %v1636_v43, %v1110_v52  ;;  %vm1152_vm2 = vmor %vm1150_vm1, %vm1151_vm0 }
 0x4cb   :  { %v1119_v55 = vsel %vm1116_vm13, %v1118_v63, %v1114_v60  ;;  %v1133_v24 = vsel %vm1132_vm12, %v1638_v50, %v1129_v0  ;;  %v1147_v20 = vsub.f32 1.0, %v1146_v30 }
 0x4cc   :  { %v1138_v25 = vsel %vm1135_vm14, %v1137_v61, %v1133_v24  ;;  %v1161_v62 = vmul.f32 %v1642_v36, %v1119_v55 }
 0x4cd   :  { %v1160_v56 = vmul.f32 %v1138_v25, %v2326_v1  ;;  %v1148_v49 = vmul.f32 %v1640_v48, %v1147_v20 }
 0x4cf   :  { %v1162_v15 = vadd.f32 %v1161_v62, %v1160_v56  ;;  %v1149_v9 = vadd.f32 %v1640_v48, %v1148_v49 }
 0x4d1   :  { %1643 = vtanh.f32 %v1162_v15  ;;  %v2341_v3 = vsel %vm1172_vm15, %v1162_v15, %v2326_v1  ;;  %v1153_v8 = vsel %vm1152_vm2, %v1640_v48, %v1149_v9  ;;  %v1490_v1 = vld [vmem:[%s2367_s0 + $0x70] sm:$0xff]  ;;  %v1308_v15 = vpop.permute.xlu1 %1307 }
 0x4d2   :  { %v1158_v17 = vsel %vm1155_vm3, %v1157_v16, %v1153_v8  ;;  %v1178_v33 = vunpack.c.l.bf16 %v1490_v1  ;;  %v1179_v34 = vunpack.c.h.bf16 %v1490_v1  ;;  %vm1309_vm12 = vcmp.eq.s32.totalorder %v1308_v15, 1 }
 0x4d7   :  { %v1644_v5 = vpop.eup %1643 }
 0x4d8   :  { %v1164_v21 = vmul.f32 %v1644_v5, %v1158_v17 }
 0x4da   :  { %v2344_v28 = vsel %vm1172_vm15, %v1164_v21, %v2329_v12  ;;  %v1491_v12 = vld [vmem:[%s2367_s0 + $0x78] sm:$0xff] }
 0x4db   :  { %v1182_v32 = vpack.c.bf16 %v2344_v28, %v2344_v28  ;;  %v1181_v54 = vunpack.c.h.bf16 %v1491_v12  ;;  %v1180_v43 = vunpack.c.l.bf16 %v1491_v12 }
 0x4dd   :  { %1191 = vmatmul.bf16.vlgmr.msrb.gmra.mxu0 %v1182_v32  ;;  %1204 = vmatmul.bf16.vlgmr.msrb.gmra.mxu1 %v1182_v32 }
 0x4de   :  { %1217 = vmatmul.bf16.vlgmr.msrb.gmra.mxu2 %v1182_v32  ;;  %1230 = vmatmul.bf16.vlgmr.msrb.gmra.mxu3 %v1182_v32 }
 0x55a   :  { %v1192_v18 = vpop.f32.mrf.mxu0  ;;  %v1205_v41 = vpop.f32.mrf.mxu1 }
 0x55b   :  { %v1235_v42 = vadd.f32 %v1192_v18, %v1178_v33  ;;  %v1236_v45 = vadd.f32 %v1205_v41, %v1179_v34 }
 0x55d   :  { %v1492_v46 = vmul.f32 -1.442695, %v1235_v42  ;;  %v1493_v53 = vmul.f32 -1.442695, %v1236_v45 }
 0x55f   :  { %1645 = vpow2.f32 %v1492_v46 }
 0x560   :  { %1647 = vpow2.f32 %v1493_v53 }
 0x561   :  { %v1218_v57 = vpop.f32.mrf.mxu2  ;;  %v1231_v58 = vpop.f32.mrf.mxu3 }
 0x562   :  { %v1238_v2 = vadd.f32 %v1231_v58, %v1181_v54  ;;  %v1194_v4 = vpop.f32.mrf.mxu0  ;;  %v1207_v10 = vpop.f32.mrf.mxu1  ;;  %v1237_v6 = vadd.f32 %v1218_v57, %v1180_v43 }
 0x564   :  { %v1494_v11 = vmul.f32 -1.442695, %v1238_v2 }
 0x565   :  { %v1646_v22 = vpop.eup %1645 }
 0x566   :  { %v1648_v23 = vpop.eup %1647  ;;  %v1242_v27 = vadd.f32 1.0, %v1646_v22  ;;  %1649 = vpow2.f32 %v1494_v11 }
 0x567   :  { %v1261_v29 = vadd.f32 1.0, %v1648_v23 }
 0x568   :  { %1651 = vrcp.f32 %v1242_v27  ;;  %v1254_v26 = vand.u32 2147483648, %v1242_v27  ;;  %v1252_v48 = vand.u32 2147483647, %v1242_v27  ;;  %vm1248_vm6 = vweird.f32 %v1242_v27 }
 0x569   :  { %1653 = vrcp.f32 %v1261_v29  ;;  %v1220_v39 = vpop.f32.mrf.mxu2  ;;  %v1233_v40 = vpop.f32.mrf.mxu3  ;;  %v1273_v37 = vand.u32 2147483648, %v1261_v29  ;;  %v1271_v63 = vand.u32 2147483647, %v1261_v29  ;;  %vm1267_vm7 = vweird.f32 %v1261_v29 }
 0x56a   :  { %v1255_v61 = vor.u32 1.1754944e-38, %v1254_v26  ;;  %vm1253_vm10 = vcmp.eq.f32.partialorder %v1252_v48, 8.507059e+37 }
 0x56b   :  { %v1274_v55 = vor.u32 1.1754944e-38, %v1273_v37  ;;  %vm1272_vm11 = vcmp.eq.f32.partialorder %v1271_v63, 8.507059e+37 }
 0x56c   :  { %v1650_v44 = vpop.eup %1649 }
 0x56d   :  { %v1281_v50 = vadd.f32 1.0, %v1650_v44 }
 0x56e   :  { %v1652_v51 = vpop.eup %1651 }
 0x56f   :  { %v1654_v47 = vpop.eup %1653  ;;  %v1244_v13 = vmul.f32 %v1652_v51, %v1242_v27  ;;  %1655 = vrcp.f32 %v1281_v50  ;;  %vm1249_vm4 = vweird.f32 %v1652_v51  ;;  %v1293_v5 = vand.u32 2147483648, %v1281_v50 }
 0x570   :  { %v1263_v35 = vmul.f32 %v1654_v47, %v1261_v29  ;;  %1657 = vtanh.f32 %v1237_v6  ;;  %vm1268_vm5 = vweird.f32 %v1654_v47  ;;  %vm1250_vm8 = vmor %vm1248_vm6, %vm1249_vm4  ;;  %vm1287_vm14 = vweird.f32 %v1281_v50 }
 0x571   :  { %v1245_v14 = vsub.f32 1.0, %v1244_v13  ;;  %vm1269_vm9 = vmor %vm1267_vm7, %vm1268_vm5  ;;  %v1291_v17 = vand.u32 2147483647, %v1281_v50  ;;  %v1294_v32 = vor.u32 1.1754944e-38, %v1293_v5 }
 0x572   :  { %v1264_v19 = vsub.f32 1.0, %v1263_v35 }
 0x573   :  { %v1246_v38 = vmul.f32 %v1652_v51, %v1245_v14  ;;  %vm1292_vm0 = vcmp.eq.f32.partialorder %v1291_v17, 8.507059e+37 }
 0x574   :  { %v1265_v52 = vmul.f32 %v1654_v47, %v1264_v19 }
 0x575   :  { %v1656_v0 = vpop.eup %1655  ;;  %v1247_v30 = vadd.f32 %v1652_v51, %v1246_v38 }
 0x576   :  { %v1266_v60 = vadd.f32 %v1654_v47, %v1265_v52  ;;  %v1283_v36 = vmul.f32 %v1656_v0, %v1281_v50  ;;  %v1658_v20 = vpop.eup %1657  ;;  %vm1288_vm13 = vweird.f32 %v1656_v0 }
 0x577   :  { %v1251_v24 = vsel %vm1250_vm8, %v1652_v51, %v1247_v30  ;;  %vm1289_vm15 = vmor %vm1287_vm14, %vm1288_vm13 }
 0x578   :  { %v1256_v25 = vsel %vm1253_vm10, %v1255_v61, %v1251_v24  ;;  %v1270_v62 = vsel %vm1269_vm9, %v1654_v47, %v1266_v60  ;;  %v1284_v59 = vsub.f32 1.0, %v1283_v36 }
 0x579   :  { %v1275_v56 = vsel %vm1272_vm11, %v1274_v55, %v1270_v62  ;;  %v1298_v49 = vmul.f32 %v1658_v20, %v1256_v25 }
 0x57a   :  { %v1297_v9 = vmul.f32 %v1275_v56, %v2341_v3  ;;  %v1285_v31 = vmul.f32 %v1656_v0, %v1284_v59 }
 0x57c   :  { %v1299_v7 = vadd.f32 %v1298_v49, %v1297_v9  ;;  %v1286_v8 = vadd.f32 %v1656_v0, %v1285_v31 }
 0x57e   :  { %1659 = vtanh.f32 %v1299_v7  ;;  %v1311_v16 = vsel %vm1309_vm12, %v1299_v7, %v2341_v3  ;;  %v1290_v21 = vsel %vm1289_vm15, %v1656_v0, %v1286_v8 }
 0x57f   :  { %1313 = vst [vmem:[%s2368_s4] sm:$0xff] %v1311_v16  ;;  %v1295_v33 = vsel %vm1292_vm0, %v1294_v32, %v1290_v21 }
 0x584   :  { %v1660_v1 = vpop.eup %1659 }
 0x585   :  { %v1301_v34 = vmul.f32 %v1660_v1, %v1295_v33 }
 0x587   :  { %v1310_v18 = vsel %vm1309_vm12, %v1301_v34, %v2344_v28 }
 0x588   :  { %1312 = vst [vmem:[%s2369_s3] sm:$0xff] %v1310_v18 }

// kernel: text_rnn_forward.5
= control target key start
LH: loop header
LB: loop body
LE: loop exit
PB: predicated region body
PF: predicated region fallthrough
CT: control target
= control target key end

     0   :  { %s6036_s1 = inlined_call_operand.vmem [shape: bf16[128,512], index: 1, kind: input, shape index: {}]   ;;  %s6037_s2 = inlined_call_operand.vmem [shape: f32[8,128], index: 2, kind: input, shape index: {}]   ;;  %s6038_s0 = inlined_call_operand.vmem [shape: bf16[8,8,512], index: 0, kind: input, shape index: {}]   ;;  %s6039_s3 = inlined_call_operand.vmem [shape: f32[8,128], index: 3, kind: input, shape index: {}]   ;;  %s6040_s4 = inlined_call_operand.vmem [shape: bf16[128,128], index: 4, kind: input, shape index: {}]   ;;  %s6041_s5 = inlined_call_operand.vmem [shape: f32[1,128], index: 5, kind: input, shape index: {}]   ;;  %s6042_s6 = inlined_call_operand.vmem [shape: f32[64,128], index: 6, kind: output, shape index: {}]  }
   0x1   :  { %v2850_v0 = vld [vmem:[%s6036_s1 + $0xe0] sm:$0xf]  ;;  %v3876_v1 = vld [vmem:[%s6036_s1 + $0xec] sm:$0xf0]  ;;  %v2858_v5 = vld [vmem:[%s6036_s1 + $0xe8] sm:$0xf] }
   0x2   :  { %v2834_v2 = vld [vmem:[%s6036_s1 + $0xc0] sm:$0xf]  ;;  %v2851_v3 = vor.u32 %v3876_v1, %v2850_v0  ;;  %v3872_v4 = vld [vmem:[%s6036_s1 + $0xcc] sm:$0xf0]  ;;  %v3877_v8 = vld [vmem:[%s6036_s1 + $0xf4] sm:$0xf0] }
   0x3   :  { %v2835_v6 = vor.u32 %v3872_v4, %v2834_v2  ;;  %v2818_v7 = vld [vmem:[%s6036_s1 + $0xa0] sm:$0xf]  ;;  %v3868_v9 = vld [vmem:[%s6036_s1 + $0xac] sm:$0xf0]  ;;  %v2859_v10 = vor.u32 %v3877_v8, %v2858_v5  ;;  %v2842_v11 = vld [vmem:[%s6036_s1 + $0xc8] sm:$0xf] }
   0x4   :  { %232 = vmatpush.bf16.msra.mxu1 %v2851_v3  ;;  %v3873_v12 = vld [vmem:[%s6036_s1 + $0xd4] sm:$0xf0]  ;;  %v3875_v13 = vld [vmem:[%s6036_s1 + $0xec] sm:$0xf]  ;;  %v2860_v14 = vld [vmem:[%s6036_s1 + $0xf8] sm:$0xf0]  ;;  %v2819_v18 = vor.u32 %v3868_v9, %v2818_v7 }
   0x5   :  { %258 = vmatpush.bf16.msra.mxu2 %v2859_v10  ;;  %v2843_v15 = vor.u32 %v3873_v12, %v2842_v11  ;;  %v2863_v16 = vor.u32 %v3875_v13, %v2860_v14  ;;  %v2826_v17 = vld [vmem:[%s6036_s1 + $0xa8] sm:$0xf]  ;;  %v3869_v19 = vld [vmem:[%s6036_s1 + $0xb4] sm:$0xf0]  ;;  %v3871_v20 = vld [vmem:[%s6036_s1 + $0xcc] sm:$0xf] }
   0x6   :  { %v2844_v21 = vld [vmem:[%s6036_s1 + $0xd8] sm:$0xf0]  ;;  %v2802_v22 = vld [vmem:[%s6036_s1 + $0x80] sm:$0xf]  ;;  %v3864_v23 = vld [vmem:[%s6036_s1 + $0x8c] sm:$0xf0]  ;;  %v2827_v25 = vor.u32 %v3869_v19, %v2826_v17 }
   0x7   :  { %271 = vmatpush.bf16.msra.mxu3 %v2863_v16  ;;  %v2847_v24 = vor.u32 %v3871_v20, %v2844_v21  ;;  %v3867_v26 = vld [vmem:[%s6036_s1 + $0xac] sm:$0xf]  ;;  %v2828_v27 = vld [vmem:[%s6036_s1 + $0xb8] sm:$0xf0]  ;;  %v2803_v28 = vor.u32 %v3864_v23, %v2802_v22  ;;  %v2810_v29 = vld [vmem:[%s6036_s1 + $0x88] sm:$0xf] }
   0x8   :  { %233 = vmatpush.bf16.msra.mxu1 %v2835_v6  ;;  %v3865_v30 = vld [vmem:[%s6036_s1 + $0x94] sm:$0xf0]  ;;  %v2786_v31 = vld [vmem:[%s6036_s1 + $0x60] sm:$0xf]  ;;  %v3860_v32 = vld [vmem:[%s6036_s1 + $0x6c] sm:$0xf0]  ;;  %v2831_v33 = vor.u32 %v3867_v26, %v2828_v27 }
   0x9   :  { %259 = vmatpush.bf16.msra.mxu2 %v2843_v15  ;;  %v3863_v34 = vld [vmem:[%s6036_s1 + $0x8c] sm:$0xf]  ;;  %v2812_v35 = vld [vmem:[%s6036_s1 + $0x98] sm:$0xf0]  ;;  %v2811_v36 = vor.u32 %v3865_v30, %v2810_v29  ;;  %v2787_v37 = vor.u32 %v3860_v32, %v2786_v31  ;;  %v2794_v38 = vld [vmem:[%s6036_s1 + $0x68] sm:$0xf] }
   0xa   :  { %v3861_v39 = vld [vmem:[%s6036_s1 + $0x74] sm:$0xf0]  ;;  %v2770_v40 = vld [vmem:[%s6036_s1 + $0x40] sm:$0xf]  ;;  %v3856_v41 = vld [vmem:[%s6036_s1 + $0x4c] sm:$0xf0]  ;;  %v2815_v42 = vor.u32 %v3863_v34, %v2812_v35 }
   0xb   :  { %272 = vmatpush.bf16.msra.mxu3 %v2847_v24  ;;  %v3859_v43 = vld [vmem:[%s6036_s1 + $0x6c] sm:$0xf]  ;;  %v2796_v44 = vld [vmem:[%s6036_s1 + $0x78] sm:$0xf0]  ;;  %v2795_v45 = vor.u32 %v3861_v39, %v2794_v38  ;;  %v2771_v46 = vor.u32 %v3856_v41, %v2770_v40  ;;  %v2778_v47 = vld [vmem:[%s6036_s1 + $0x48] sm:$0xf] }
   0xc   :  { %234 = vmatpush.bf16.msra.mxu1 %v2819_v18  ;;  %v3857_v48 = vld [vmem:[%s6036_s1 + $0x54] sm:$0xf0]  ;;  %v2754_v49 = vld [vmem:[%s6036_s1 + $0x20] sm:$0xf]  ;;  %v3852_v50 = vld [vmem:[%s6036_s1 + $0x2c] sm:$0xf0]  ;;  %v2799_v51 = vor.u32 %v3859_v43, %v2796_v44 }
   0xd   :  { %260 = vmatpush.bf16.msra.mxu2 %v2827_v25  ;;  %v3855_v52 = vld [vmem:[%s6036_s1 + $0x4c] sm:$0xf]  ;;  %v2780_v53 = vld [vmem:[%s6036_s1 + $0x58] sm:$0xf0]  ;;  %v2779_v54 = vor.u32 %v3857_v48, %v2778_v47  ;;  %v2755_v55 = vor.u32 %v3852_v50, %v2754_v49  ;;  %v2762_v56 = vld [vmem:[%s6036_s1 + $0x28] sm:$0xf] }
   0xe   :  { %v3853_v57 = vld [vmem:[%s6036_s1 + $0x34] sm:$0xf0]  ;;  %v2738_v58 = vld [vmem:[%s6036_s1] sm:$0xf]  ;;  %v3848_v59 = vld [vmem:[%s6036_s1 + $0xc] sm:$0xf0]  ;;  %v2783_v61 = vor.u32 %v3855_v52, %v2780_v53 }
   0xf   :  { %273 = vmatpush.bf16.msra.mxu3 %v2831_v33  ;;  %v3874_v60 = vld [vmem:[%s6036_s1 + $0xe4] sm:$0xf]  ;;  %v2852_v62 = vld [vmem:[%s6036_s1 + $0xf0] sm:$0xf0]  ;;  %v3851_v63 = vld [vmem:[%s6036_s1 + $0x2c] sm:$0xf]  ;;  %v2763_v1 = vor.u32 %v3853_v57, %v2762_v56  ;;  %v2739_v2 = vor.u32 %v3848_v59, %v2738_v58 }
  0x10   :  { %235 = vmatpush.bf16.msra.mxu1 %v2803_v28  ;;  %v2764_v0 = vld [vmem:[%s6036_s1 + $0x38] sm:$0xf0]  ;;  %v27_v3 = vld [vmem:[%s6037_s2] sm:$0xff]  ;;  %v2746_v4 = vld [vmem:[%s6036_s1 + $0x8] sm:$0xf]  ;;  %v2855_v6 = vor.u32 %v3874_v60, %v2852_v62 }
  0x11   :  { %261 = vmatpush.bf16.msra.mxu2 %v2811_v36  ;;  %v3849_v5 = vld [vmem:[%s6036_s1 + $0x14] sm:$0xf0]  ;;  %v3870_v7 = vld [vmem:[%s6036_s1 + $0xc4] sm:$0xf]  ;;  %v2767_v8 = vor.u32 %v3851_v63, %v2764_v0  ;;  %v2836_v9 = vld [vmem:[%s6036_s1 + $0xd0] sm:$0xf0]  ;;  %v39_v12 = vpack.c.bf16 %v27_v3, %v27_v3 }
  0x12   :  { %v3847_v10 = vld [vmem:[%s6036_s1 + $0xc] sm:$0xf]  ;;  %v2748_v11 = vld [vmem:[%s6036_s1 + $0x18] sm:$0xf0]  ;;  %v2747_v13 = vor.u32 %v3849_v5, %v2746_v4  ;;  %v2839_v14 = vor.u32 %v3870_v7, %v2836_v9  ;;  %v3866_v16 = vld [vmem:[%s6036_s1 + $0xa4] sm:$0xf] }
  0x13   :  { %274 = vmatpush.bf16.msra.mxu3 %v2815_v42  ;;  %v2751_v15 = vor.u32 %v3847_v10, %v2748_v11  ;;  %v2820_v17 = vld [vmem:[%s6036_s1 + $0xb0] sm:$0xf0]  ;;  %v3862_v19 = vld [vmem:[%s6036_s1 + $0x84] sm:$0xf]  ;;  %v2983_v34 = vld [vmem:[%s6036_s1 + $0xe0] sm:$0xf] }
  0x14   :  { %236 = vmatpush.bf16.msra.mxu1 %v2787_v37  ;;  %v2823_v18 = vor.u32 %v3866_v16, %v2820_v17  ;;  %v2804_v20 = vld [vmem:[%s6036_s1 + $0x90] sm:$0xf0]  ;;  %v3858_v22 = vld [vmem:[%s6036_s1 + $0x64] sm:$0xf]  ;;  %v3908_v35 = vld [vmem:[%s6036_s1 + $0xec] sm:$0xf0] }
  0x15   :  { %262 = vmatpush.bf16.msra.mxu2 %v2795_v45  ;;  %v2807_v21 = vor.u32 %v3862_v19, %v2804_v20  ;;  %v2788_v23 = vld [vmem:[%s6036_s1 + $0x70] sm:$0xf0]  ;;  %v3854_v25 = vld [vmem:[%s6036_s1 + $0x44] sm:$0xf]  ;;  %v2984_v36 = vor.u32 %v3908_v35, %v2983_v34  ;;  %v2967_v39 = vld [vmem:[%s6036_s1 + $0xc0] sm:$0xf] }
  0x16   :  { %v2791_v24 = vor.u32 %v3858_v22, %v2788_v23  ;;  %v2772_v26 = vld [vmem:[%s6036_s1 + $0x50] sm:$0xf0]  ;;  %v3850_v28 = vld [vmem:[%s6036_s1 + $0x24] sm:$0xf]  ;;  %v3904_v40 = vld [vmem:[%s6036_s1 + $0xcc] sm:$0xf0] }
  0x17   :  { %275 = vmatpush.bf16.msra.mxu3 %v2799_v51  ;;  %v2775_v27 = vor.u32 %v3854_v25, %v2772_v26  ;;  %v2756_v29 = vld [vmem:[%s6036_s1 + $0x30] sm:$0xf0]  ;;  %v3846_v31 = vld [vmem:[%s6036_s1 + $0x4] sm:$0xf]  ;;  %v2968_v41 = vor.u32 %v3904_v40, %v2967_v39  ;;  %v2951_v43 = vld [vmem:[%s6036_s1 + $0xa0] sm:$0xf] }
  0x18   :  { %237 = vmatpush.bf16.msra.mxu1 %v2771_v46  ;;  %v2759_v30 = vor.u32 %v3850_v28, %v2756_v29  ;;  %v2740_v32 = vld [vmem:[%s6036_s1 + $0x10] sm:$0xf0]  ;;  %v4482_v37 = vld [vmem:[%s6038_s0] sm:$0xff]  ;;  %v3900_v44 = vld [vmem:[%s6036_s1 + $0xac] sm:$0xf0] }
  0x19   :  { %263 = vmatpush.bf16.msra.mxu2 %v2779_v54  ;;  %v2743_v33 = vor.u32 %v3846_v31, %v2740_v32  ;;  %v35_v42 = vunpack.c.l.bf16 %v4482_v37  ;;  %v2952_v45 = vor.u32 %v3900_v44, %v2951_v43  ;;  %v2935_v48 = vld [vmem:[%s6036_s1 + $0x80] sm:$0xf]  ;;  %v3896_v49 = vld [vmem:[%s6036_s1 + $0x8c] sm:$0xf0]  ;;  %v3906_v52 = vld [vmem:[%s6036_s1 + $0xe4] sm:$0xf] }
  0x1a   :  { %v2936_v51 = vor.u32 %v3896_v49, %v2935_v48  ;;  %v2985_v53 = vld [vmem:[%s6036_s1 + $0xf0] sm:$0xf0]  ;;  %v3907_v54 = vld [vmem:[%s6036_s1 + $0xec] sm:$0xf]  ;;  %v2993_v57 = vld [vmem:[%s6036_s1 + $0xf8] sm:$0xf0] }
  0x1b   :  { %276 = vmatpush.bf16.msra.mxu3 %v2783_v61  ;;  %v2988_v56 = vor.u32 %v3906_v52, %v2985_v53  ;;  %v2996_v59 = vor.u32 %v3907_v54, %v2993_v57  ;;  %v2919_v60 = vld [vmem:[%s6036_s1 + $0x60] sm:$0xf]  ;;  %v3892_v61 = vld [vmem:[%s6036_s1 + $0x6c] sm:$0xf0]  ;;  %v3902_v63 = vld [vmem:[%s6036_s1 + $0xc4] sm:$0xf] }
  0x1c   :  { %238 = vmatpush.bf16.msra.mxu1 %v2755_v55  ;;  %v2920_v62 = vor.u32 %v3892_v61, %v2919_v60  ;;  %v2969_v0 = vld [vmem:[%s6036_s1 + $0xd0] sm:$0xf0]  ;;  %v4538_v3 = vld [vmem:[%s6038_s0 + $0x8] sm:$0xff]  ;;  %v2903_v7 = vld [vmem:[%s6036_s1 + $0x40] sm:$0xf] }
  0x1d   :  { %264 = vmatpush.bf16.msra.mxu2 %v2763_v1  ;;  %v3903_v1 = vld [vmem:[%s6036_s1 + $0xcc] sm:$0xf]  ;;  %v2972_v4 = vor.u32 %v3902_v63, %v2969_v0  ;;  %v3898_v11 = vld [vmem:[%s6036_s1 + $0xa4] sm:$0xf]  ;;  %v2887_v20 = vld [vmem:[%s6036_s1 + $0x20] sm:$0xf] }
  0x1e   :  { %v3894_v23 = vld [vmem:[%s6036_s1 + $0x84] sm:$0xf]  ;;  %v3895_v25 = vld [vmem:[%s6036_s1 + $0x8c] sm:$0xf]  ;;  %v2871_v31 = vld [vmem:[%s6036_s1] sm:$0xf] }
  0x1f   :  { %277 = vmatpush.bf16.msra.mxu3 %v2767_v8  ;;  %v3888_v8 = vld [vmem:[%s6036_s1 + $0x4c] sm:$0xf0]  ;;  %v3890_v34 = vld [vmem:[%s6036_s1 + $0x64] sm:$0xf]  ;;  %v2921_v35 = vld [vmem:[%s6036_s1 + $0x70] sm:$0xf0] }
  0x20   :  { %239 = vmatpush.bf16.msra.mxu1 %v2739_v2  ;;  %v2977_v2 = vld [vmem:[%s6036_s1 + $0xd8] sm:$0xf0]  ;;  %v2904_v10 = vor.u32 %v3888_v8, %v2903_v7  ;;  %v3880_v32 = vld [vmem:[%s6036_s1 + $0xc] sm:$0xf0]  ;;  %v3909_v39 = vld [vmem:[%s6036_s1 + $0xf4] sm:$0xf0]  ;;  %v2924_v40 = vor.u32 %v3890_v34, %v2921_v35 }
  0x21   :  { %265 = vmatpush.bf16.msra.mxu2 %v2747_v13  ;;  %v2980_v5 = vor.u32 %v3903_v1, %v2977_v2  ;;  %v3899_v13 = vld [vmem:[%s6036_s1 + $0xac] sm:$0xf]  ;;  %v2929_v43 = vld [vmem:[%s6036_s1 + $0x78] sm:$0xf0]  ;;  %v2975_v48 = vld [vmem:[%s6036_s1 + $0xc8] sm:$0xf] }
  0x22   :  { %v3905_v49 = vld [vmem:[%s6036_s1 + $0xd4] sm:$0xf0]  ;;  %v2913_v54 = vld [vmem:[%s6036_s1 + $0x58] sm:$0xf0]  ;;  %v3883_v60 = vld [vmem:[%s6036_s1 + $0x2c] sm:$0xf] }
  0x23   :  { %240 = vmatmul.bf16.vlgmr.msra.gmra.mxu1 %v39_v12  ;;  %278 = vmatpush.bf16.msra.mxu3 %v2751_v15  ;;  %v2961_v15 = vld [vmem:[%s6036_s1 + $0xb8] sm:$0xf0]  ;;  %v2976_v53 = vor.u32 %v3905_v49, %v2975_v48  ;;  %v3878_v1 = vld [vmem:[%s6036_s1 + $0x4] sm:$0xf]  ;;  %v3897_v7 = vld [vmem:[%s6036_s1 + $0x94] sm:$0xf0] }
  0x24   :  { %245 = vmatpush.bf16.msrb.mxu1 %v2855_v6  ;;  %266 = vmatmul.bf16.vlgmr.msra.gmra.mxu2 %v39_v12  ;;  %v38_v6 = vunpack.c.h.bf16 %v4538_v3  ;;  %v2964_v17 = vor.u32 %v3899_v13, %v2961_v15  ;;  %v3086_v35 = vld [vmem:[%s6036_s1 + $0xb0] sm:$0xf0] }
  0x25   :  { %552 = vmatpush.bf16.msrb.mxu2 %v2984_v36  ;;  %v2991_v36 = vld [vmem:[%s6036_s1 + $0xe8] sm:$0xf] }
  0x26   :  { %279 = vmatmul.bf16.vlgmr.msra.gmra.mxu3 %v39_v12 }
  0x27   :  { %591 = vmatpush.bf16.msrb.mxu3 %v2996_v59  ;;  %v3901_v59 = vld [vmem:[%s6036_s1 + $0xb4] sm:$0xf0] }
  0x28   :  { %246 = vmatpush.bf16.msrb.mxu1 %v2839_v14 }
  0x29   :  { %553 = vmatpush.bf16.msrb.mxu2 %v2968_v41  ;;  %v2992_v41 = vor.u32 %v3909_v39, %v2991_v36 }
  0x2b   :  { %592 = vmatpush.bf16.msrb.mxu3 %v2980_v5  ;;  %v2873_v5 = vld [vmem:[%s6036_s1 + $0x10] sm:$0xf0] }
  0x2c   :  { %247 = vmatpush.bf16.msrb.mxu1 %v2823_v18  ;;  %v2876_v13 = vor.u32 %v3878_v1, %v2873_v5 }
  0x2d   :  { %554 = vmatpush.bf16.msrb.mxu2 %v2952_v45  ;;  %v2905_v45 = vld [vmem:[%s6036_s1 + $0x50] sm:$0xf0] }
  0x2f   :  { %593 = vmatpush.bf16.msrb.mxu3 %v2964_v17 }
  0x30   :  { %248 = vmatpush.bf16.msrb.mxu1 %v2807_v21  ;;  %v3884_v21 = vld [vmem:[%s6036_s1 + $0x2c] sm:$0xf0] }
  0x31   :  { %555 = vmatpush.bf16.msrb.mxu2 %v2936_v51  ;;  %v2888_v22 = vor.u32 %v3884_v21, %v2887_v20  ;;  %v3887_v51 = vld [vmem:[%s6036_s1 + $0x4c] sm:$0xf]  ;;  %v2927_v20 = vld [vmem:[%s6036_s1 + $0x68] sm:$0xf]  ;;  %v3893_v21 = vld [vmem:[%s6036_s1 + $0x74] sm:$0xf0] }
  0x32   :  { %v2916_v57 = vor.u32 %v3887_v51, %v2913_v54 }
  0x34   :  { %249 = vmatpush.bf16.msrb.mxu1 %v2791_v24  ;;  %v2937_v24 = vld [vmem:[%s6036_s1 + $0x90] sm:$0xf0] }
  0x35   :  { %556 = vmatpush.bf16.msrb.mxu2 %v2920_v62  ;;  %v2940_v26 = vor.u32 %v3894_v23, %v2937_v24  ;;  %v2897_v62 = vld [vmem:[%s6036_s1 + $0x38] sm:$0xf0]  ;;  %v2928_v23 = vor.u32 %v3893_v21, %v2927_v20  ;;  %v2911_v24 = vld [vmem:[%s6036_s1 + $0x48] sm:$0xf]  ;;  %v3934_v20 = vld [vmem:[%s6036_s1 + $0xc4] sm:$0xf] }
  0x38   :  { %250 = vmatpush.bf16.msrb.mxu1 %v2775_v27  ;;  %v2945_v27 = vld [vmem:[%s6036_s1 + $0x98] sm:$0xf0] }
  0x39   :  { %557 = vmatpush.bf16.msrb.mxu2 %v2904_v10  ;;  %v2948_v29 = vor.u32 %v3895_v25, %v2945_v27  ;;  %v2881_v10 = vld [vmem:[%s6036_s1 + $0x18] sm:$0xf0]  ;;  %v3889_v25 = vld [vmem:[%s6036_s1 + $0x54] sm:$0xf0] }
  0x3a   :  { %v2912_v27 = vor.u32 %v3889_v25, %v2911_v24  ;;  %v3937_v24 = vld [vmem:[%s6036_s1 + $0xd4] sm:$0xf0]  ;;  %v4760_v25 = vld [vmem:[%s6038_s0 + $0x10] sm:$0xff] }
  0x3b   :  { %594 = vmatpush.bf16.msrb.mxu3 %v2948_v29 }
  0x3c   :  { %251 = vmatpush.bf16.msrb.mxu1 %v2759_v30 }
  0x3d   :  { %558 = vmatpush.bf16.msrb.mxu2 %v2888_v22  ;;  %v37_v22 = vunpack.c.l.bf16 %v4538_v3  ;;  %v2895_v3 = vld [vmem:[%s6036_s1 + $0x28] sm:$0xf] }
  0x40   :  { %252 = vmatpush.bf16.msrb.mxu1 %v2743_v33  ;;  %v2872_v33 = vor.u32 %v3880_v32, %v2871_v31 }
  0x42   :  { %559 = vmatpush.bf16.msrb.mxu2 %v2872_v33 }
  0x43   :  { %253 = vmatmul.bf16.vlgmr.msrb.gmra.mxu1 %v39_v12  ;;  %v2953_v12 = vld [vmem:[%s6036_s1 + $0xb0] sm:$0xf0] }
  0x44   :  { %565 = vmatpush.bf16.msra.mxu1 %v2988_v56  ;;  %v2956_v14 = vor.u32 %v3898_v11, %v2953_v12  ;;  %v2889_v56 = vld [vmem:[%s6036_s1 + $0x30] sm:$0xf0] }
  0x46   :  { %578 = vmatpush.bf16.msra.mxu2 %v2992_v41  ;;  %v3881_v41 = vld [vmem:[%s6036_s1 + $0x14] sm:$0xf0] }
  0x48   :  { %566 = vmatpush.bf16.msra.mxu1 %v2972_v4  ;;  %v2900_v4 = vor.u32 %v3883_v60, %v2897_v62 }
  0x4a   :  { %579 = vmatpush.bf16.msra.mxu2 %v2976_v53 }
  0x4c   :  { %567 = vmatpush.bf16.msra.mxu1 %v2956_v14 }
  0x50   :  { %568 = vmatpush.bf16.msra.mxu1 %v2940_v26 }
  0x54   :  { %569 = vmatpush.bf16.msra.mxu1 %v2924_v40  ;;  %v2879_v40 = vld [vmem:[%s6036_s1 + $0x8] sm:$0xf] }
  0xa0   :  { %v241_v38 = vpop.f32.mrf.mxu1 }
  0xa1   :  { %v284_v46 = vadd.f32 %v241_v38, %v35_v42  ;;  %v36_v38 = vunpack.c.h.bf16 %v4482_v37  ;;  %v3891_v42 = vld [vmem:[%s6036_s1 + $0x6c] sm:$0xf]  ;;  %v3886_v37 = vld [vmem:[%s6036_s1 + $0x44] sm:$0xf] }
  0xa2   :  { %v2932_v44 = vor.u32 %v3891_v42, %v2929_v43 }
  0xa3   :  { %v2864_v55 = vmul.f32 -1.442695, %v284_v46 }
  0xa4   :  { %595 = vmatpush.bf16.msrb.mxu3 %v2932_v44 }
  0xa5   :  { %4115 = vpow2.f32 %v2864_v55  ;;  %v3882_v55 = vld [vmem:[%s6036_s1 + $0x24] sm:$0xf] }
  0xa6   :  { %v2892_v63 = vor.u32 %v3882_v55, %v2889_v56 }
  0xa7   :  { %v4503_v50 = vpop.f32.mrf.mxu2 }
  0xa8   :  { %v243_v47 = vpop.f32.mrf.mxu1  ;;  %596 = vmatpush.bf16.msrb.mxu3 %v2916_v57  ;;  %v286_v29 = vadd.f32 %v4503_v50, %v37_v22  ;;  %v3102_v22 = vld [vmem:[%s6036_s1 + $0xd0] sm:$0xf0] }
  0xa9   :  { %v280_v58 = vpop.f32.mrf.mxu3  ;;  %v2908_v47 = vor.u32 %v3886_v37, %v2905_v45 }
  0xaa   :  { %v287_v19 = vadd.f32 %v280_v58, %v38_v6  ;;  %v2959_v58 = vld [vmem:[%s6036_s1 + $0xa8] sm:$0xf] }
  0xab   :  { %v4116_v18 = vpop.eup %4115  ;;  %570 = vmatpush.bf16.msra.mxu1 %v2908_v47  ;;  %v2960_v0 = vor.u32 %v3901_v59, %v2959_v58  ;;  %v2943_v6 = vld [vmem:[%s6036_s1 + $0x88] sm:$0xf] }
  0xac   :  { %v4577_v28 = vadd.f32 1.0, %v4116_v18  ;;  %v2866_v30 = vmul.f32 -1.442695, %v287_v19  ;;  %v2944_v14 = vor.u32 %v3897_v7, %v2943_v6  ;;  %597 = vmatpush.bf16.msrb.mxu3 %v2900_v4  ;;  %v3116_v6 = vld [vmem:[%s6036_s1 + $0xe0] sm:$0xf] }
  0xad   :  { %580 = vmatpush.bf16.msra.mxu2 %v2960_v0  ;;  %v3940_v7 = vld [vmem:[%s6036_s1 + $0xec] sm:$0xf0] }
  0xae   :  { %4117 = vrcp.f32 %v4577_v28  ;;  %vm297_vm0 = vweird.f32 %v4577_v28  ;;  %v301_v34 = vand.u32 2147483647, %v4577_v28  ;;  %v303_v50 = vand.u32 2147483648, %v4577_v28 }
  0xaf   :  { %v269_v9 = vpop.f32.mrf.mxu2  ;;  %4119 = vpow2.f32 %v2866_v30  ;;  %571 = vmatpush.bf16.msra.mxu1 %v2892_v63  ;;  %v3885_v30 = vld [vmem:[%s6036_s1 + $0x34] sm:$0xf0] }
  0xb0   :  { %v3879_v9 = vld [vmem:[%s6036_s1 + $0xc] sm:$0xf]  ;;  %vm302_vm3 = vcmp.eq.f32.partialorder %v301_v34, 8.507059e+37  ;;  %v304_v43 = vor.u32 1.1754944e-38, %v303_v50  ;;  %v357_v34 = vunpack.c.h.bf16 %v4760_v25 }
  0xb1   :  { %v282_v16 = vpop.f32.mrf.mxu3  ;;  %581 = vmatpush.bf16.msra.mxu2 %v2944_v14 }
  0xb2   :  { %v2884_v16 = vor.u32 %v3879_v9, %v2881_v10  ;;  %v3117_v9 = vor.u32 %v3940_v7, %v3116_v6  ;;  %v3118_v10 = vld [vmem:[%s6036_s1 + $0xf0] sm:$0xf0] }
  0xb3   :  { %572 = vmatpush.bf16.msra.mxu1 %v2876_v13 }
  0xb4   :  { %v4644_v2 = vpop.eup %4117  ;;  %598 = vmatpush.bf16.msrb.mxu3 %v2884_v16  ;;  %v3126_v16 = vld [vmem:[%s6036_s1 + $0xf8] sm:$0xf0]  ;;  %872 = vmatpush.bf16.msra.mxu0 %v3117_v9  ;;  %v3923_v9 = vld [vmem:[%s6036_s1 + $0x6c] sm:$0xf] }
  0xb5   :  { %v4120_v8 = vpop.eup %4119  ;;  %v293_v11 = vmul.f32 %v4644_v2, %v4577_v28  ;;  %582 = vmatpush.bf16.msra.mxu2 %v2928_v23  ;;  %vm298_vm1 = vweird.f32 %v4644_v2  ;;  %v3108_v23 = vld [vmem:[%s6036_s1 + $0xc8] sm:$0xf] }
  0xb6   :  { %v4663_v15 = vadd.f32 1.0, %v4120_v8  ;;  %vm4692_vm2 = vmor %vm297_vm0, %vm298_vm1  ;;  %v3938_v8 = vld [vmem:[%s6036_s1 + $0xe4] sm:$0xf] }
  0xb7   :  { %v294_v18 = vsub.f32 1.0, %v293_v11  ;;  %v3124_v11 = vld [vmem:[%s6036_s1 + $0xe8] sm:$0xf]  ;;  %v3121_v13 = vor.u32 %v3938_v8, %v3118_v10  ;;  %v3062_v10 = vld [vmem:[%s6036_s1 + $0x78] sm:$0xf0] }
  0xb8   :  { %vm336_vm8 = vweird.f32 %v4663_v15  ;;  %v342_v59 = vand.u32 2147483648, %v4663_v15 }
  0xb9   :  { %v295_v26 = vmul.f32 %v4644_v2, %v294_v18  ;;  %583 = vmatpush.bf16.msra.mxu2 %v2912_v27  ;;  %885 = vmatpush.bf16.msrb.mxu1 %v3121_v13  ;;  %v3100_v18 = vld [vmem:[%s6036_s1 + $0xc0] sm:$0xf]  ;;  %v3109_v27 = vor.u32 %v3937_v24, %v3108_v23  ;;  %v3065_v13 = vor.u32 %v3923_v9, %v3062_v10 }
  0xba   :  { %v343_v63 = vor.u32 1.1754944e-38, %v342_v59 }
  0xbb   :  { %v296_v33 = vadd.f32 %v4644_v2, %v295_v26  ;;  %v3105_v26 = vor.u32 %v3934_v20, %v3102_v22  ;;  %v3044_v22 = vld [vmem:[%s6036_s1 + $0x48] sm:$0xf] }
  0xbd   :  { %v300_v28 = vsel %vm4692_vm2, %v4644_v2, %v296_v33  ;;  %886 = vmatpush.bf16.msrb.mxu1 %v3105_v26  ;;  %v3930_v33 = vld [vmem:[%s6036_s1 + $0xa4] sm:$0xf]  ;;  %v3919_v26 = vld [vmem:[%s6036_s1 + $0x4c] sm:$0xf] }
  0xbe   :  { %v305_v51 = vsel %vm302_vm3, %v304_v43, %v300_v28  ;;  %v4796_v28 = vld [vmem:[%s6038_s0 + $0x18] sm:$0xff] }
  0xc0   :  { %v254_v46 = vpop.f32.mrf.mxu1 }
  0xc1   :  { %v285_v52 = vadd.f32 %v254_v46, %v36_v38  ;;  %v2896_v38 = vor.u32 %v3885_v30, %v2895_v3  ;;  %v2880_v46 = vor.u32 %v3881_v41, %v2879_v40  ;;  %v3110_v3 = vld [vmem:[%s6036_s1 + $0xd8] sm:$0xf0]  ;;  %v3931_v41 = vld [vmem:[%s6036_s1 + $0xac] sm:$0xf] }
  0xc3   :  { %v2865_v61 = vmul.f32 -1.442695, %v285_v52  ;;  %584 = vmatpush.bf16.msra.mxu2 %v2896_v38  ;;  %v29_v52 = vld [vmem:[%s6039_s3] sm:$0xff]  ;;  %v3933_v38 = vld [vmem:[%s6036_s1 + $0xb4] sm:$0xf0] }
  0xc5   :  { %4121 = vpow2.f32 %v2865_v61  ;;  %v340_v61 = vand.u32 2147483647, %v4663_v15 }
  0xc6   :  { %4123 = vrcp.f32 %v4663_v15 }
  0xc7   :  { %585 = vmatpush.bf16.msra.mxu2 %v2880_v46  ;;  %vm341_vm11 = vcmp.eq.f32.partialorder %v340_v61, 8.507059e+37  ;;  %v3926_v46 = vld [vmem:[%s6036_s1 + $0x84] sm:$0xf]  ;;  %v359_v61 = vunpack.c.h.bf16 %v4796_v28 }
  0xc8   :  { %v256_v12 = vpop.f32.mrf.mxu1 }
  0xc9   :  { %v3941_v12 = vld [vmem:[%s6036_s1 + $0xf4] sm:$0xf0] }
  0xca   :  { %v3125_v14 = vor.u32 %v3941_v12, %v3124_v11 }
  0xcb   :  { %v4122_v17 = vpop.eup %4121 }
  0xcc   :  { %v310_v19 = vadd.f32 1.0, %v4122_v17  ;;  %v4124_v31 = vpop.eup %4123 }
  0xcd   :  { %v332_v39 = vmul.f32 %v4124_v31, %v4663_v15  ;;  %vm337_vm9 = vweird.f32 %v4124_v31  ;;  %v3939_v15 = vld [vmem:[%s6036_s1 + $0xec] sm:$0xf] }
  0xce   :  { %4125 = vrcp.f32 %v310_v19  ;;  %v322_v44 = vand.u32 2147483648, %v310_v19  ;;  %v320_v45 = vand.u32 2147483647, %v310_v19  ;;  %vm316_vm5 = vweird.f32 %v310_v19  ;;  %vm338_vm10 = vmor %vm336_vm8, %vm337_vm9 }
  0xcf   :  { %4127 = vtanh.f32 %v286_v29  ;;  %v333_v47 = vsub.f32 1.0, %v332_v39  ;;  %v3129_v17 = vor.u32 %v3939_v15, %v3126_v16  ;;  %v3935_v29 = vld [vmem:[%s6036_s1 + $0xcc] sm:$0xf]  ;;  %v3089_v39 = vor.u32 %v3930_v33, %v3086_v35  ;;  %v3036_v16 = vld [vmem:[%s6036_s1 + $0x40] sm:$0xf] }
  0xd0   :  { %v323_v53 = vor.u32 1.1754944e-38, %v322_v44  ;;  %vm321_vm7 = vcmp.eq.f32.partialorder %v320_v45, 8.507059e+37  ;;  %v3113_v30 = vor.u32 %v3935_v29, %v3110_v3  ;;  %v3928_v45 = vld [vmem:[%s6036_s1 + $0x8c] sm:$0xf0]  ;;  %v3046_v3 = vld [vmem:[%s6036_s1 + $0x58] sm:$0xf0] }
  0xd1   :  { %v334_v55 = vmul.f32 %v4124_v31, %v333_v47  ;;  %911 = vmatpush.bf16.msra.mxu3 %v3129_v17  ;;  %887 = vmatpush.bf16.msrb.mxu1 %v3089_v39  ;;  %v3920_v17 = vld [vmem:[%s6036_s1 + $0x4c] sm:$0xf0]  ;;  %v3049_v33 = vor.u32 %v3919_v26, %v3046_v3  ;;  %v3022_v35 = vld [vmem:[%s6036_s1 + $0x30] sm:$0xf0]  ;;  %v3917_v39 = vld [vmem:[%s6036_s1 + $0x34] sm:$0xf0] }
  0xd2   :  { %v3037_v20 = vor.u32 %v3920_v17, %v3036_v16 }
  0xd3   :  { %v335_v62 = vadd.f32 %v4124_v31, %v334_v55  ;;  %v3927_v55 = vld [vmem:[%s6036_s1 + $0x8c] sm:$0xf] }
  0xd4   :  { %v4126_v32 = vpop.eup %4125 }
  0xd5   :  { %v312_v36 = vmul.f32 %v4126_v32, %v310_v19  ;;  %vm317_vm4 = vweird.f32 %v4126_v32  ;;  %v4128_v49 = vpop.eup %4127  ;;  %v339_v0 = vsel %vm338_vm10, %v4124_v31, %v335_v62  ;;  %v3936_v19 = vld [vmem:[%s6036_s1 + $0xcc] sm:$0xf0]  ;;  %v3084_v31 = vld [vmem:[%s6036_s1 + $0xa0] sm:$0xf]  ;;  %912 = vmatpush.bf16.msra.mxu3 %v3113_v30 }
  0xd6   :  { %vm318_vm6 = vmor %vm316_vm5, %vm317_vm4  ;;  %v347_v57 = vmul.f32 %v4128_v49, %v305_v51  ;;  %v344_v2 = vsel %vm341_vm11, %v343_v63, %v339_v0  ;;  %v3101_v21 = vor.u32 %v3936_v19, %v3100_v18  ;;  %v3070_v49 = vld [vmem:[%s6036_s1 + $0x90] sm:$0xf0]  ;;  %v3076_v51 = vld [vmem:[%s6036_s1 + $0x88] sm:$0xf] }
  0xd7   :  { %v313_v42 = vsub.f32 1.0, %v312_v36  ;;  %v3092_v36 = vld [vmem:[%s6036_s1 + $0xa8] sm:$0xf]  ;;  %v3052_v62 = vld [vmem:[%s6036_s1 + $0x60] sm:$0xf] }
  0xd8   :  { %873 = vmatpush.bf16.msra.mxu0 %v3101_v21  ;;  %v3093_v40 = vor.u32 %v3933_v38, %v3092_v36  ;;  %v3924_v63 = vld [vmem:[%s6036_s1 + $0x6c] sm:$0xf0]  ;;  %v3922_v0 = vld [vmem:[%s6036_s1 + $0x64] sm:$0xf]  ;;  %v3038_v21 = vld [vmem:[%s6036_s1 + $0x50] sm:$0xf0] }
  0xd9   :  { %v314_v37 = vmul.f32 %v4126_v32, %v313_v42  ;;  %v3094_v42 = vld [vmem:[%s6036_s1 + $0xb8] sm:$0xf0]  ;;  %v3918_v18 = vld [vmem:[%s6036_s1 + $0x44] sm:$0xf]  ;;  %v3020_v30 = vld [vmem:[%s6036_s1 + $0x20] sm:$0xf] }
  0xda   :  { %v3097_v43 = vor.u32 %v3931_v41, %v3094_v42  ;;  %v3041_v24 = vor.u32 %v3918_v18, %v3038_v21  ;;  %v3028_v38 = vld [vmem:[%s6036_s1 + $0x28] sm:$0xf]  ;;  %v3030_v42 = vld [vmem:[%s6036_s1 + $0x38] sm:$0xf0] }
  0xdb   :  { %v315_v48 = vadd.f32 %v4126_v32, %v314_v37  ;;  %v3068_v37 = vld [vmem:[%s6036_s1 + $0x80] sm:$0xf] }
  0xdc   :  { %913 = vmatpush.bf16.msra.mxu3 %v3097_v43 }
  0xdd   :  { %v319_v54 = vsel %vm318_vm6, %v4126_v32, %v315_v48  ;;  %v3932_v32 = vld [vmem:[%s6036_s1 + $0xac] sm:$0xf0]  ;;  %v3069_v48 = vor.u32 %v3928_v45, %v3068_v37  ;;  %v3004_v45 = vld [vmem:[%s6036_s1] sm:$0xf] }
  0xde   :  { %v324_v56 = vsel %vm321_vm7, %v323_v53, %v319_v54  ;;  %v3085_v50 = vor.u32 %v3932_v32, %v3084_v31  ;;  %v3073_v53 = vor.u32 %v3926_v46, %v3070_v49  ;;  %v3916_v31 = vld [vmem:[%s6036_s1 + $0x2c] sm:$0xf0]  ;;  %v3006_v49 = vld [vmem:[%s6036_s1 + $0x10] sm:$0xf0] }
  0xdf   :  { %v346_v58 = vmul.f32 %v324_v56, %v29_v52  ;;  %v3929_v52 = vld [vmem:[%s6036_s1 + $0x94] sm:$0xf0]  ;;  %v3078_v56 = vld [vmem:[%s6036_s1 + $0x98] sm:$0xf0]  ;;  %v3912_v46 = vld [vmem:[%s6036_s1 + $0xc] sm:$0xf0] }
  0xe0   :  { %874 = vmatpush.bf16.msra.mxu0 %v3085_v50  ;;  %v3077_v54 = vor.u32 %v3929_v52, %v3076_v51  ;;  %v3081_v59 = vor.u32 %v3927_v55, %v3078_v56  ;;  %888 = vmatpush.bf16.msrb.mxu1 %v3073_v53  ;;  %v3914_v50 = vld [vmem:[%s6036_s1 + $0x24] sm:$0xf]  ;;  %v3012_v51 = vld [vmem:[%s6036_s1 + $0x8] sm:$0xf]  ;;  %v3911_v55 = vld [vmem:[%s6036_s1 + $0xc] sm:$0xf] }
  0xe1   :  { %v4711_v60 = vadd.f32 %v347_v57, %v346_v58  ;;  %v356_v58 = vunpack.c.l.bf16 %v4760_v25  ;;  %v3921_v25 = vld [vmem:[%s6036_s1 + $0x54] sm:$0xf0]  ;;  %v3025_v36 = vor.u32 %v3914_v50, %v3022_v35  ;;  %v3014_v56 = vld [vmem:[%s6036_s1 + $0x18] sm:$0xf0] }
  0xe2   :  { %914 = vmatpush.bf16.msra.mxu3 %v3081_v59  ;;  %v3045_v29 = vor.u32 %v3921_v25, %v3044_v22 }
  0xe3   :  { %4129 = vtanh.f32 %v4711_v60 }
  0xe4   :  { %875 = vmatpush.bf16.msra.mxu0 %v3069_v48  ;;  %v3005_v48 = vor.u32 %v3912_v46, %v3004_v45  ;;  %v3973_v45 = vld [vmem:[%s6036_s1 + $0xf4] sm:$0xf0] }
  0xe6   :  { %915 = vmatpush.bf16.msra.mxu3 %v3065_v13 }
  0xe9   :  { %v4130_v1 = vpop.eup %4129 }
  0xea   :  { %v350_v4 = vmul.f32 %v4130_v1, %v344_v2  ;;  %v3053_v1 = vor.u32 %v3924_v63, %v3052_v62  ;;  %v3054_v2 = vld [vmem:[%s6036_s1 + $0x70] sm:$0xf0]  ;;  %916 = vmatpush.bf16.msra.mxu3 %v3049_v33 }
  0xeb   :  { %v3057_v7 = vor.u32 %v3922_v0, %v3054_v2 }
  0xec   :  { %v351_v5 = vpack.c.bf16 %v350_v4, %v350_v4  ;;  %v3060_v4 = vld [vmem:[%s6036_s1 + $0x68] sm:$0xf]  ;;  %876 = vmatpush.bf16.msra.mxu0 %v3053_v1  ;;  %v358_v1 = vunpack.c.l.bf16 %v4796_v28  ;;  %v3201_v28 = vld [vmem:[%s6036_s1 + $0x80] sm:$0xf] }
  0xed   :  { %889 = vmatpush.bf16.msrb.mxu1 %v3057_v7 }
  0xee   :  { %352 = vst [vmem:[#allocation4] sm:$0xf] %v351_v5  ;;  %560 = vmatmul.bf16.vlgmr.msrb.gmra.mxu2 %v351_v5  ;;  %573 = vmatmul.bf16.vlgmr.msra.gmra.mxu1 %v351_v5 }
  0xef   :  { %599 = vmatmul.bf16.vlgmr.msrb.gmra.mxu3 %v351_v5  ;;  %898 = vmatpush.bf16.msrb.mxu2 %v3125_v14 }
  0xf0   :  { %877 = vmatpush.bf16.msra.mxu0 %v3037_v20 }
  0xf1   :  { %890 = vmatpush.bf16.msrb.mxu1 %v3041_v24 }
  0xf3   :  { %899 = vmatpush.bf16.msrb.mxu2 %v3109_v27 }
  0xf5   :  { %891 = vmatpush.bf16.msrb.mxu1 %v3025_v36 }
  0xf7   :  { %900 = vmatpush.bf16.msrb.mxu2 %v3093_v40  ;;  %v3915_v40 = vld [vmem:[%s6036_s1 + $0x2c] sm:$0xf] }
  0xf8   :  { %v3033_v37 = vor.u32 %v3915_v40, %v3030_v42  ;;  %v3970_v42 = vld [vmem:[%s6036_s1 + $0xe4] sm:$0xf] }
  0xfa   :  { %917 = vmatpush.bf16.msra.mxu3 %v3033_v37  ;;  %v3257_v37 = vld [vmem:[%s6036_s1 + $0xe8] sm:$0xf] }
  0xfb   :  { %901 = vmatpush.bf16.msrb.mxu2 %v3077_v54  ;;  %v3913_v54 = vld [vmem:[%s6036_s1 + $0x14] sm:$0xf0] }
  0xfc   :  { %v3013_v59 = vor.u32 %v3913_v54, %v3012_v51  ;;  %v3966_v54 = vld [vmem:[%s6036_s1 + $0xc4] sm:$0xf] }
  0xfe   :  { %586 = vmatmul.bf16.vlgmr.msra.gmra.mxu2 %v351_v5  ;;  %v3925_v5 = vld [vmem:[%s6036_s1 + $0x74] sm:$0xf0] }
  0xff   :  { %v3061_v8 = vor.u32 %v3925_v5, %v3060_v4 }
 0x101   :  { %902 = vmatpush.bf16.msrb.mxu2 %v3061_v8 }
 0x105   :  { %903 = vmatpush.bf16.msrb.mxu2 %v3045_v29 }
 0x16b   :  { %v574_v44 = vpop.f32.mrf.mxu1 }
 0x16c   :  { %v605_v47 = vadd.f32 %v574_v44, %v357_v34  ;;  %v3021_v34 = vor.u32 %v3916_v31, %v3020_v30  ;;  %v3029_v44 = vor.u32 %v3917_v39, %v3028_v38 }
 0x16e   :  { %v2998_v57 = vmul.f32 -1.442695, %v605_v47  ;;  %878 = vmatpush.bf16.msra.mxu0 %v3021_v34  ;;  %v3910_v47 = vld [vmem:[%s6036_s1 + $0x4] sm:$0xf]  ;;  %904 = vmatpush.bf16.msrb.mxu2 %v3029_v44  ;;  %v3251_v44 = vld [vmem:[%s6036_s1 + $0xf0] sm:$0xf0] }
 0x16f   :  { %v3009_v53 = vor.u32 %v3910_v47, %v3006_v49  ;;  %v3254_v46 = vor.u32 %v3970_v42, %v3251_v44  ;;  %v3258_v47 = vor.u32 %v3973_v45, %v3257_v37  ;;  %v3259_v49 = vld [vmem:[%s6036_s1 + $0xf8] sm:$0xf0]  ;;  %v3169_v37 = vld [vmem:[%s6036_s1 + $0x40] sm:$0xf]  ;;  %v3952_v45 = vld [vmem:[%s6036_s1 + $0x4c] sm:$0xf0] }
 0x170   :  { %4131 = vpow2.f32 %v2998_v57 }
 0x171   :  { %v561_v6 = vpop.f32.mrf.mxu2  ;;  %892 = vmatpush.bf16.msrb.mxu1 %v3009_v53  ;;  %v3968_v53 = vld [vmem:[%s6036_s1 + $0xcc] sm:$0xf0] }
 0x172   :  { %v604_v11 = vadd.f32 %v561_v6, %v356_v58  ;;  %v600_v12 = vpop.f32.mrf.mxu3  ;;  %879 = vmatpush.bf16.msra.mxu0 %v3005_v48  ;;  %905 = vmatpush.bf16.msrb.mxu2 %v3013_v59  ;;  %v3971_v48 = vld [vmem:[%s6036_s1 + $0xec] sm:$0xf] }
 0x173   :  { %v607_v14 = vadd.f32 %v600_v12, %v359_v61  ;;  %v576_v15 = vpop.f32.mrf.mxu1  ;;  %v3017_v61 = vor.u32 %v3911_v55, %v3014_v56  ;;  %v3262_v51 = vor.u32 %v3971_v48, %v3259_v49  ;;  %v3235_v56 = vld [vmem:[%s6036_s1 + $0xd0] sm:$0xf0]  ;;  %v3170_v49 = vor.u32 %v3952_v45, %v3169_v37 }
 0x174   :  { %v2997_v19 = vmul.f32 -1.442695, %v604_v11  ;;  %v3238_v59 = vor.u32 %v3966_v54, %v3235_v56  ;;  %v3177_v54 = vld [vmem:[%s6036_s1 + $0x48] sm:$0xf]  ;;  %v3951_v56 = vld [vmem:[%s6036_s1 + $0x4c] sm:$0xf] }
 0x175   :  { %v2999_v23 = vmul.f32 -1.442695, %v607_v14  ;;  %918 = vmatpush.bf16.msra.mxu3 %v3017_v61  ;;  %1205 = vmatpush.bf16.msra.mxu1 %v3254_v46  ;;  %v3950_v46 = vld [vmem:[%s6036_s1 + $0x44] sm:$0xf] }
 0x176   :  { %v4132_v27 = vpop.eup %4131  ;;  %4133 = vpow2.f32 %v2997_v19  ;;  %1218 = vmatpush.bf16.msra.mxu2 %v3258_v47 }
 0x177   :  { %v4878_v32 = vadd.f32 1.0, %v4132_v27  ;;  %4135 = vpow2.f32 %v2999_v23 }
 0x179   :  { %4137 = vrcp.f32 %v4878_v32  ;;  %v563_v41 = vpop.f32.mrf.mxu2  ;;  %v642_v11 = vand.u32 2147483648, %v4878_v32  ;;  %vm636_vm13 = vweird.f32 %v4878_v32  ;;  %v640_v14 = vand.u32 2147483647, %v4878_v32  ;;  %1231 = vmatpush.bf16.msrb.mxu3 %v3262_v51  ;;  %1206 = vmatpush.bf16.msra.mxu1 %v3238_v59  ;;  %v3171_v51 = vld [vmem:[%s6036_s1 + $0x50] sm:$0xf0] }
 0x17a   :  { %v602_v43 = vpop.f32.mrf.mxu3  ;;  %v3972_v41 = vld [vmem:[%s6036_s1 + $0xec] sm:$0xf0]  ;;  %v3153_v59 = vld [vmem:[%s6036_s1 + $0x20] sm:$0xf] }
 0x17b   :  { %v643_v20 = vor.u32 1.1754944e-38, %v642_v11  ;;  %vm641_vm1 = vcmp.eq.f32.partialorder %v640_v14, 8.507059e+37  ;;  %v3963_v11 = vld [vmem:[%s6036_s1 + $0xac] sm:$0xf] }
 0x17c   :  { %v4134_v52 = vpop.eup %4133 }
 0x17d   :  { %v4136_v57 = vpop.eup %4135  ;;  %v611_v58 = vadd.f32 1.0, %v4134_v52  ;;  %v3233_v52 = vld [vmem:[%s6036_s1 + $0xc0] sm:$0xf] }
 0x17e   :  { %v650_v62 = vadd.f32 1.0, %v4136_v57  ;;  %v3234_v55 = vor.u32 %v3968_v53, %v3233_v52  ;;  %v3241_v57 = vld [vmem:[%s6036_s1 + $0xc8] sm:$0xf]  ;;  %v3174_v53 = vor.u32 %v3950_v46, %v3171_v51 }
 0x17f   :  { %v4138_v63 = vpop.eup %4137  ;;  %4139 = vrcp.f32 %v611_v58  ;;  %v623_v15 = vand.u32 2147483648, %v611_v58  ;;  %v621_v18 = vand.u32 2147483647, %v611_v58  ;;  %vm617_vm0 = vweird.f32 %v611_v58 }
 0x180   :  { %v632_v0 = vmul.f32 %v4138_v63, %v4878_v32  ;;  %4141 = vrcp.f32 %v650_v62  ;;  %vm637_vm12 = vweird.f32 %v4138_v63  ;;  %v662_v33 = vand.u32 2147483648, %v650_v62 }
 0x181   :  { %v587_v2 = vpop.f32.mrf.mxu2  ;;  %vm4928_vm14 = vmor %vm636_vm13, %vm637_vm12  ;;  %v624_v23 = vor.u32 1.1754944e-38, %v623_v15  ;;  %vm622_vm3 = vcmp.eq.f32.partialorder %v621_v18, 8.507059e+37  ;;  %vm656_vm5 = vweird.f32 %v650_v62  ;;  %v660_v34 = vand.u32 2147483647, %v650_v62  ;;  %v3960_v15 = vld [vmem:[%s6036_s1 + $0x8c] sm:$0xf0] }
 0x182   :  { %v633_v4 = vsub.f32 1.0, %v632_v0  ;;  %v606_v7 = vadd.f32 %v587_v2, %v358_v1  ;;  %v663_v35 = vor.u32 1.1754944e-38, %v662_v33  ;;  %v3217_v1 = vld [vmem:[%s6036_s1 + $0xa0] sm:$0xf]  ;;  %v3964_v2 = vld [vmem:[%s6036_s1 + $0xac] sm:$0xf0] }
 0x183   :  { %vm661_vm7 = vcmp.eq.f32.partialorder %v660_v34, 8.507059e+37  ;;  %v3203_v18 = vld [vmem:[%s6036_s1 + $0x90] sm:$0xf0]  ;;  %v3193_v34 = vld [vmem:[%s6036_s1 + $0x68] sm:$0xf] }
 0x184   :  { %v634_v5 = vmul.f32 %v4138_v63, %v633_v4  ;;  %4143 = vtanh.f32 %v606_v7  ;;  %v3962_v4 = vld [vmem:[%s6036_s1 + $0xa4] sm:$0xf]  ;;  %v3225_v7 = vld [vmem:[%s6036_s1 + $0xa8] sm:$0xf]  ;;  %v3187_v33 = vld [vmem:[%s6036_s1 + $0x70] sm:$0xf0] }
 0x185   :  { %v4140_v6 = vpop.eup %4139 }
 0x186   :  { %v4142_v8 = vpop.eup %4141  ;;  %v613_v9 = vmul.f32 %v4140_v6, %v611_v58  ;;  %v635_v10 = vadd.f32 %v4138_v63, %v634_v5  ;;  %vm618_vm15 = vweird.f32 %v4140_v6  ;;  %v3969_v58 = vld [vmem:[%s6036_s1 + $0xd4] sm:$0xf0]  ;;  %v3218_v5 = vor.u32 %v3964_v2, %v3217_v1  ;;  %v3155_v1 = vld [vmem:[%s6036_s1 + $0x30] sm:$0xf0]  ;;  %v3161_v2 = vld [vmem:[%s6036_s1 + $0x28] sm:$0xf] }
 0x187   :  { %v652_v12 = vmul.f32 %v4142_v8, %v650_v62  ;;  %vm619_vm2 = vmor %vm617_vm0, %vm618_vm15  ;;  %vm657_vm4 = vweird.f32 %v4142_v8  ;;  %v3242_v61 = vor.u32 %v3969_v58, %v3241_v57  ;;  %v3967_v62 = vld [vmem:[%s6036_s1 + $0xcc] sm:$0xf]  ;;  %v3179_v58 = vld [vmem:[%s6036_s1 + $0x58] sm:$0xf0] }
 0x188   :  { %v614_v13 = vsub.f32 1.0, %v613_v9  ;;  %v639_v19 = vsel %vm4928_vm14, %v4138_v63, %v635_v10  ;;  %vm658_vm6 = vmor %vm656_vm5, %vm657_vm4  ;;  %v3243_v63 = vld [vmem:[%s6036_s1 + $0xd8] sm:$0xf0] }
 0x189   :  { %v589_v16 = vpop.f32.mrf.mxu2  ;;  %v653_v21 = vsub.f32 1.0, %v652_v12  ;;  %v644_v24 = vsel %vm641_vm1, %v643_v20, %v639_v19  ;;  %v3246_v0 = vor.u32 %v3967_v62, %v3243_v63  ;;  %1219 = vmatpush.bf16.msra.mxu2 %v3242_v61  ;;  %v3227_v12 = vld [vmem:[%s6036_s1 + $0xb8] sm:$0xf0]  ;;  %v3209_v19 = vld [vmem:[%s6036_s1 + $0x88] sm:$0xf]  ;;  %v3182_v62 = vor.u32 %v3951_v56, %v3179_v58 }
 0x18a   :  { %v615_v17 = vmul.f32 %v4140_v6, %v614_v13  ;;  %v4144_v26 = vpop.eup %4143  ;;  %v666_v3 = vmul.f32 %v644_v24, %v4711_v60  ;;  %v3249_v60 = vld [vmem:[%s6036_s1 + $0xe0] sm:$0xf]  ;;  %v3230_v14 = vor.u32 %v3963_v11, %v3227_v12  ;;  %v3958_v16 = vld [vmem:[%s6036_s1 + $0x84] sm:$0xf]  ;;  %v3961_v20 = vld [vmem:[%s6036_s1 + $0x94] sm:$0xf0] }
 0x18b   :  { %v654_v27 = vmul.f32 %v4142_v8, %v653_v21  ;;  %v3250_v43 = vor.u32 %v3972_v41, %v3249_v60  ;;  %1232 = vmatpush.bf16.msrb.mxu3 %v3246_v0  ;;  %v3000_v13 = vld [vmem:[%s6038_s0 + $0x20] sm:$0xff]  ;;  %v3206_v21 = vor.u32 %v3958_v16, %v3203_v18  ;;  %v3211_v24 = vld [vmem:[%s6036_s1 + $0x98] sm:$0xf0]  ;;  %v3948_v61 = vld [vmem:[%s6036_s1 + $0x2c] sm:$0xf0] }
 0x18c   :  { %v616_v22 = vadd.f32 %v4140_v6, %v615_v17  ;;  %v3202_v17 = vor.u32 %v3960_v15, %v3201_v28  ;;  %v3195_v60 = vld [vmem:[%s6036_s1 + $0x78] sm:$0xf0]  ;;  %v3154_v63 = vor.u32 %v3948_v61, %v3153_v59  ;;  %v3946_v0 = vld [vmem:[%s6036_s1 + $0x24] sm:$0xf]  ;;  %v3137_v28 = vld [vmem:[%s6036_s1] sm:$0xf] }
 0x18d   :  { %v655_v32 = vadd.f32 %v4142_v8, %v654_v27  ;;  %1192 = vmatpush.bf16.msrb.mxu0 %v3250_v43  ;;  %v5064_v43 = vld [vmem:[%s6038_s0 + $0x28] sm:$0xff]  ;;  %v3944_v15 = vld [vmem:[%s6036_s1 + $0xc] sm:$0xf0]  ;;  %v3942_v16 = vld [vmem:[%s6036_s1 + $0x4] sm:$0xf] }
 0x18e   :  { %v620_v25 = vsel %vm619_vm2, %v4140_v6, %v616_v22  ;;  %v3219_v6 = vld [vmem:[%s6036_s1 + $0xb0] sm:$0xf0]  ;;  %v3210_v22 = vor.u32 %v3961_v20, %v3209_v19  ;;  %v679_v52 = vunpack.c.h.bf16 %v5064_v43  ;;  %v3145_v19 = vld [vmem:[%s6036_s1 + $0x8] sm:$0xf]  ;;  %v3945_v20 = vld [vmem:[%s6036_s1 + $0x14] sm:$0xf0] }
 0x18f   :  { %v625_v29 = vsel %vm622_vm3, %v624_v23, %v620_v25  ;;  %v659_v50 = vsel %vm658_vm6, %v4142_v8, %v655_v32  ;;  %v3965_v8 = vld [vmem:[%s6036_s1 + $0xb4] sm:$0xf0]  ;;  %v3222_v9 = vor.u32 %v3962_v4, %v3219_v6  ;;  %1233 = vmatpush.bf16.msrb.mxu3 %v3230_v14  ;;  %v3959_v23 = vld [vmem:[%s6036_s1 + $0x8c] sm:$0xf]  ;;  %v676_v25 = vunpack.c.l.bf16 %v3000_v13  ;;  %v3139_v18 = vld [vmem:[%s6036_s1 + $0x10] sm:$0xf0] }
 0x190   :  { %v667_v30 = vmul.f32 %v4144_v26, %v625_v29  ;;  %v664_v38 = vsel %vm661_vm7, %v663_v35, %v659_v50  ;;  %v3226_v10 = vor.u32 %v3965_v8, %v3225_v7  ;;  %v677_v26 = vunpack.c.h.bf16 %v3000_v13  ;;  %v3185_v29 = vld [vmem:[%s6036_s1 + $0x60] sm:$0xf]  ;;  %v3957_v50 = vld [vmem:[%s6036_s1 + $0x74] sm:$0xf0]  ;;  %v3947_v8 = vld [vmem:[%s6036_s1 + $0x2c] sm:$0xf] }
 0x191   :  { %1193 = vmatpush.bf16.msrb.mxu0 %v3234_v55  ;;  %1207 = vmatpush.bf16.msra.mxu1 %v3222_v9  ;;  %v3214_v27 = vor.u32 %v3959_v23, %v3211_v24  ;;  %v3953_v55 = vld [vmem:[%s6036_s1 + $0x54] sm:$0xf0]  ;;  %v3158_v6 = vor.u32 %v3946_v0, %v3155_v1  ;;  %v3163_v9 = vld [vmem:[%s6036_s1 + $0x38] sm:$0xf0]  ;;  %v3943_v23 = vld [vmem:[%s6036_s1 + $0xc] sm:$0xf] }
 0x192   :  { %v4935_v31 = vadd.f32 %v667_v30, %v666_v3  ;;  %1220 = vmatpush.bf16.msra.mxu2 %v3226_v10  ;;  %v3956_v3 = vld [vmem:[%s6036_s1 + $0x6c] sm:$0xf0]  ;;  %v3954_v30 = vld [vmem:[%s6036_s1 + $0x64] sm:$0xf]  ;;  %v3178_v57 = vor.u32 %v3953_v55, %v3177_v54  ;;  %v3949_v7 = vld [vmem:[%s6036_s1 + $0x34] sm:$0xf0]  ;;  %v3166_v14 = vor.u32 %v3947_v8, %v3163_v9 }
 0x193   :  { %1234 = vmatpush.bf16.msrb.mxu3 %v3214_v27  ;;  %v3186_v32 = vor.u32 %v3956_v3, %v3185_v29  ;;  %v3162_v13 = vor.u32 %v3949_v7, %v3161_v2  ;;  %v3147_v24 = vld [vmem:[%s6036_s1 + $0x18] sm:$0xf0] }
 0x194   :  { %4145 = vtanh.f32 %v4935_v31  ;;  %v3150_v3 = vor.u32 %v3943_v23, %v3147_v24  ;;  %v4000_v23 = vld [vmem:[%s6036_s1 + $0xcc] sm:$0xf0]  ;;  %v3998_v24 = vld [vmem:[%s6036_s1 + $0xc4] sm:$0xf] }
 0x195   :  { %1194 = vmatpush.bf16.msrb.mxu0 %v3218_v5  ;;  %1208 = vmatpush.bf16.msra.mxu1 %v3206_v21 }
 0x196   :  { %1221 = vmatpush.bf16.msra.mxu2 %v3210_v22  ;;  %v3142_v22 = vor.u32 %v3942_v16, %v3139_v18  ;;  %v4005_v16 = vld [vmem:[%s6036_s1 + $0xf4] sm:$0xf0] }
 0x199   :  { %1195 = vmatpush.bf16.msrb.mxu0 %v3202_v17  ;;  %v3138_v17 = vor.u32 %v3944_v15, %v3137_v28  ;;  %v3384_v28 = vld [vmem:[%s6036_s1 + $0xf0] sm:$0xf0]  ;;  %v3390_v15 = vld [vmem:[%s6036_s1 + $0xe8] sm:$0xf] }
 0x19a   :  { %v4146_v36 = vpop.eup %4145  ;;  %v3391_v18 = vor.u32 %v4005_v16, %v3390_v15  ;;  %v3302_v15 = vld [vmem:[%s6036_s1 + $0x40] sm:$0xf]  ;;  %v3984_v16 = vld [vmem:[%s6036_s1 + $0x4c] sm:$0xf0] }
 0x19b   :  { %v670_v39 = vmul.f32 %v4146_v36, %v664_v38  ;;  %v3190_v38 = vor.u32 %v3954_v30, %v3187_v33 }
 0x19d   :  { %v671_v40 = vpack.c.bf16 %v670_v39, %v670_v39  ;;  %v3194_v39 = vor.u32 %v3957_v50, %v3193_v34  ;;  %1196 = vmatpush.bf16.msrb.mxu0 %v3186_v32  ;;  %1209 = vmatpush.bf16.msra.mxu1 %v3190_v38  ;;  %v678_v34 = vunpack.c.l.bf16 %v5064_v43 }
 0x19f   :  { %672 = vst [vmem:[#allocation4 + $0x4] sm:$0xf] %v671_v40  ;;  %880 = vmatmul.bf16.vlgmr.msra.gmra.mxu0 %v671_v40  ;;  %893 = vmatmul.bf16.vlgmr.msrb.gmra.mxu1 %v671_v40 }
 0x1a0   :  { %906 = vmatmul.bf16.vlgmr.msrb.gmra.mxu2 %v671_v40  ;;  %919 = vmatmul.bf16.vlgmr.msra.gmra.mxu3 %v671_v40  ;;  %v3955_v40 = vld [vmem:[%s6036_s1 + $0x6c] sm:$0xf] }
 0x1a1   :  { %v3198_v44 = vor.u32 %v3955_v40, %v3195_v60  ;;  %1222 = vmatpush.bf16.msra.mxu2 %v3194_v39  ;;  %1197 = vmatpush.bf16.msrb.mxu0 %v3170_v49 }
 0x1a2   :  { %1210 = vmatpush.bf16.msra.mxu1 %v3174_v53 }
 0x1a3   :  { %1235 = vmatpush.bf16.msrb.mxu3 %v3198_v44 }
 0x1a5   :  { %1223 = vmatpush.bf16.msra.mxu2 %v3178_v57  ;;  %1198 = vmatpush.bf16.msrb.mxu0 %v3154_v63 }
 0x1a6   :  { %1211 = vmatpush.bf16.msra.mxu1 %v3158_v6 }
 0x1a7   :  { %1236 = vmatpush.bf16.msrb.mxu3 %v3182_v62 }
 0x1a9   :  { %1224 = vmatpush.bf16.msra.mxu2 %v3162_v13  ;;  %1199 = vmatpush.bf16.msrb.mxu0 %v3138_v17  ;;  %v4002_v13 = vld [vmem:[%s6036_s1 + $0xe4] sm:$0xf] }
 0x1aa   :  { %1212 = vmatpush.bf16.msra.mxu1 %v3142_v22  ;;  %v3387_v17 = vor.u32 %v4002_v13, %v3384_v28  ;;  %v3366_v22 = vld [vmem:[%s6036_s1 + $0xc0] sm:$0xf] }
 0x1ab   :  { %1237 = vmatpush.bf16.msrb.mxu3 %v3166_v14 }
 0x1ae   :  { %1525 = vmatpush.bf16.msrb.mxu1 %v3387_v17  ;;  %v3982_v17 = vld [vmem:[%s6036_s1 + $0x44] sm:$0xf] }
 0x1af   :  { %1238 = vmatpush.bf16.msrb.mxu3 %v3150_v3 }
 0x21c   :  { %v881_v35 = vpop.f32.mrf.mxu0  ;;  %v894_v36 = vpop.f32.mrf.mxu1 }
 0x21d   :  { %v924_v41 = vadd.f32 %v881_v35, %v676_v25  ;;  %v925_v42 = vadd.f32 %v894_v36, %v677_v26  ;;  %v3146_v26 = vor.u32 %v3945_v20, %v3145_v19  ;;  %v4003_v19 = vld [vmem:[%s6036_s1 + $0xec] sm:$0xf]  ;;  %v3392_v20 = vld [vmem:[%s6036_s1 + $0xf8] sm:$0xf0] }
 0x21f   :  { %v3130_v47 = vmul.f32 -1.442695, %v924_v41  ;;  %v3131_v48 = vmul.f32 -1.442695, %v925_v42  ;;  %1225 = vmatpush.bf16.msra.mxu2 %v3146_v26  ;;  %v3368_v26 = vld [vmem:[%s6036_s1 + $0xd0] sm:$0xf0] }
 0x220   :  { %v3371_v3 = vor.u32 %v3998_v24, %v3368_v26  ;;  %v3310_v24 = vld [vmem:[%s6036_s1 + $0x48] sm:$0xf]  ;;  %v3983_v26 = vld [vmem:[%s6036_s1 + $0x4c] sm:$0xf] }
 0x221   :  { %4147 = vpow2.f32 %v3130_v47 }
 0x222   :  { %4149 = vpow2.f32 %v3131_v48  ;;  %1526 = vmatpush.bf16.msrb.mxu1 %v3371_v3  ;;  %v3286_v3 = vld [vmem:[%s6036_s1 + $0x20] sm:$0xf] }
 0x223   :  { %v907_v4 = vpop.f32.mrf.mxu2  ;;  %v920_v5 = vpop.f32.mrf.mxu3  ;;  %1538 = vmatpush.bf16.msrb.mxu2 %v3391_v18 }
 0x224   :  { %v927_v10 = vadd.f32 %v920_v5, %v679_v52  ;;  %v883_v11 = vpop.f32.mrf.mxu0  ;;  %v896_v12 = vpop.f32.mrf.mxu1  ;;  %v926_v38 = vadd.f32 %v907_v4, %v678_v34 }
 0x225   :  { %v4004_v12 = vld [vmem:[%s6036_s1 + $0xec] sm:$0xf0] }
 0x226   :  { %v3132_v21 = vmul.f32 -1.442695, %v927_v10 }
 0x227   :  { %v4148_v25 = vpop.eup %4147 }
 0x228   :  { %v4150_v27 = vpop.eup %4149  ;;  %v931_v29 = vadd.f32 1.0, %v4148_v25  ;;  %4151 = vpow2.f32 %v3132_v21  ;;  %v3395_v21 = vor.u32 %v4003_v19, %v3392_v20  ;;  %v3367_v25 = vor.u32 %v4000_v23, %v3366_v22 }
 0x229   :  { %v950_v30 = vadd.f32 1.0, %v4150_v27  ;;  %v3374_v27 = vld [vmem:[%s6036_s1 + $0xc8] sm:$0xf]  ;;  %v3303_v20 = vor.u32 %v3984_v16, %v3302_v15 }
 0x22a   :  { %4153 = vrcp.f32 %v931_v29  ;;  %v943_v44 = vand.u32 2147483648, %v931_v29  ;;  %v941_v46 = vand.u32 2147483647, %v931_v29  ;;  %vm937_vm10 = vweird.f32 %v931_v29  ;;  %1551 = vmatpush.bf16.msra.mxu3 %v3395_v21  ;;  %v3304_v21 = vld [vmem:[%s6036_s1 + $0x50] sm:$0xf0] }
 0x22b   :  { %4155 = vrcp.f32 %v950_v30  ;;  %v909_v32 = vpop.f32.mrf.mxu2  ;;  %v922_v33 = vpop.f32.mrf.mxu3  ;;  %v962_v37 = vand.u32 2147483648, %v950_v30  ;;  %v960_v43 = vand.u32 2147483647, %v950_v30  ;;  %vm956_vm11 = vweird.f32 %v950_v30 }
 0x22c   :  { %v944_v51 = vor.u32 1.1754944e-38, %v943_v44  ;;  %vm942_vm14 = vcmp.eq.f32.partialorder %v941_v46, 8.507059e+37  ;;  %v3999_v32 = vld [vmem:[%s6036_s1 + $0xcc] sm:$0xf]  ;;  %v3376_v33 = vld [vmem:[%s6036_s1 + $0xd8] sm:$0xf0]  ;;  %v3307_v23 = vor.u32 %v3982_v17, %v3304_v21 }
 0x22d   :  { %v963_v54 = vor.u32 1.1754944e-38, %v962_v37  ;;  %vm961_vm15 = vcmp.eq.f32.partialorder %v960_v43, 8.507059e+37  ;;  %v3379_v34 = vor.u32 %v3999_v32, %v3376_v33  ;;  %v3995_v44 = vld [vmem:[%s6036_s1 + $0xac] sm:$0xf]  ;;  %v3360_v37 = vld [vmem:[%s6036_s1 + $0xb8] sm:$0xf0] }
 0x22e   :  { %v4152_v50 = vpop.eup %4151  ;;  %v3363_v46 = vor.u32 %v3995_v44, %v3360_v37  ;;  %v3992_v43 = vld [vmem:[%s6036_s1 + $0x8c] sm:$0xf0] }
 0x22f   :  { %v970_v35 = vadd.f32 1.0, %v4152_v50  ;;  %v3350_v50 = vld [vmem:[%s6036_s1 + $0xa0] sm:$0xf]  ;;  %1552 = vmatpush.bf16.msra.mxu3 %v3379_v34  ;;  %v3978_v34 = vld [vmem:[%s6036_s1 + $0x24] sm:$0xf] }
 0x230   :  { %v4154_v36 = vpop.eup %4153 }
 0x231   :  { %v4156_v39 = vpop.eup %4155  ;;  %v933_v40 = vmul.f32 %v4154_v36, %v931_v29  ;;  %4157 = vrcp.f32 %v970_v35  ;;  %vm938_vm8 = vweird.f32 %v4154_v36  ;;  %v982_v4 = vand.u32 2147483648, %v970_v35  ;;  %v4001_v29 = vld [vmem:[%s6036_s1 + $0xd4] sm:$0xf0] }
 0x232   :  { %v952_v60 = vmul.f32 %v4156_v39, %v950_v30  ;;  %4159 = vtanh.f32 %v926_v38  ;;  %vm957_vm9 = vweird.f32 %v4156_v39  ;;  %vm939_vm12 = vmor %vm937_vm10, %vm938_vm8  ;;  %vm976_vm1 = vweird.f32 %v970_v35 }
 0x233   :  { %v934_v41 = vsub.f32 1.0, %v933_v40  ;;  %vm958_vm13 = vmor %vm956_vm11, %vm957_vm9  ;;  %v980_v5 = vand.u32 2147483647, %v970_v35  ;;  %v983_v7 = vor.u32 1.1754944e-38, %v982_v4  ;;  %v3375_v30 = vor.u32 %v4001_v29, %v3374_v27  ;;  %v3358_v40 = vld [vmem:[%s6036_s1 + $0xa8] sm:$0xf]  ;;  %1553 = vmatpush.bf16.msra.mxu3 %v3363_v46 }
 0x234   :  { %v953_v42 = vsub.f32 1.0, %v952_v60  ;;  %v3997_v60 = vld [vmem:[%s6036_s1 + $0xb4] sm:$0xf0]  ;;  %v3320_v4 = vld [vmem:[%s6036_s1 + $0x70] sm:$0xf0] }
 0x235   :  { %v935_v45 = vmul.f32 %v4154_v36, %v934_v41  ;;  %vm981_vm3 = vcmp.eq.f32.partialorder %v980_v5, 8.507059e+37  ;;  %1539 = vmatpush.bf16.msrb.mxu2 %v3375_v30  ;;  %v3326_v5 = vld [vmem:[%s6036_s1 + $0x68] sm:$0xf]  ;;  %v3312_v29 = vld [vmem:[%s6036_s1 + $0x58] sm:$0xf0] }
 0x236   :  { %v954_v47 = vmul.f32 %v4156_v39, %v953_v42  ;;  %v3359_v42 = vor.u32 %v3997_v60, %v3358_v40  ;;  %v3980_v30 = vld [vmem:[%s6036_s1 + $0x2c] sm:$0xf0]  ;;  %v3315_v32 = vor.u32 %v3983_v26, %v3312_v29  ;;  %v3981_v40 = vld [vmem:[%s6036_s1 + $0x34] sm:$0xf0]  ;;  %v3979_v60 = vld [vmem:[%s6036_s1 + $0x2c] sm:$0xf] }
 0x237   :  { %v4158_v48 = vpop.eup %4157  ;;  %v936_v49 = vadd.f32 %v4154_v36, %v935_v45  ;;  %v3133_v45 = vld [vmem:[%s6038_s0 + $0x30] sm:$0xff]  ;;  %v3287_v33 = vor.u32 %v3980_v30, %v3286_v3 }
 0x238   :  { %v955_v52 = vadd.f32 %v4156_v39, %v954_v47  ;;  %v972_v53 = vmul.f32 %v4158_v48, %v970_v35  ;;  %v4160_v56 = vpop.eup %4159  ;;  %vm977_vm0 = vweird.f32 %v4158_v48  ;;  %v3996_v35 = vld [vmem:[%s6036_s1 + $0xac] sm:$0xf0]  ;;  %v3334_v47 = vld [vmem:[%s6036_s1 + $0x80] sm:$0xf] }
 0x239   :  { %v940_v55 = vsel %vm939_vm12, %v4154_v36, %v936_v49  ;;  %vm978_vm2 = vmor %vm976_vm1, %vm977_vm0  ;;  %v3994_v36 = vld [vmem:[%s6036_s1 + $0xa4] sm:$0xf]  ;;  %v3351_v38 = vor.u32 %v3996_v35, %v3350_v50  ;;  %1540 = vmatpush.bf16.msrb.mxu2 %v3359_v42  ;;  %v3335_v49 = vor.u32 %v3992_v43, %v3334_v47  ;;  %v3288_v50 = vld [vmem:[%s6036_s1 + $0x30] sm:$0xf0] }
 0x23a   :  { %v945_v57 = vsel %vm942_vm14, %v944_v51, %v940_v55  ;;  %v959_v58 = vsel %vm958_vm13, %v4156_v39, %v955_v52  ;;  %v973_v59 = vsub.f32 1.0, %v972_v53  ;;  %v3352_v39 = vld [vmem:[%s6036_s1 + $0xb0] sm:$0xf0]  ;;  %v3342_v52 = vld [vmem:[%s6036_s1 + $0x88] sm:$0xf] }
 0x23b   :  { %v964_v61 = vsel %vm961_vm15, %v963_v54, %v959_v58  ;;  %v987_v62 = vmul.f32 %v4160_v56, %v945_v57  ;;  %v3355_v41 = vor.u32 %v3994_v36, %v3352_v39  ;;  %v3336_v51 = vld [vmem:[%s6036_s1 + $0x90] sm:$0xf0]  ;;  %v3993_v53 = vld [vmem:[%s6036_s1 + $0x94] sm:$0xf0]  ;;  %v3991_v56 = vld [vmem:[%s6036_s1 + $0x8c] sm:$0xf]  ;;  %v996_v58 = vunpack.c.l.bf16 %v3133_v45 }
 0x23c   :  { %v986_v63 = vmul.f32 %v964_v61, %v4935_v31  ;;  %v974_v0 = vmul.f32 %v4158_v48, %v973_v59  ;;  %v3382_v31 = vld [vmem:[%s6036_s1 + $0xe0] sm:$0xf]  ;;  %v3343_v55 = vor.u32 %v3993_v53, %v3342_v52  ;;  %v3344_v57 = vld [vmem:[%s6036_s1 + $0x98] sm:$0xf0]  ;;  %v997_v59 = vunpack.c.h.bf16 %v3133_v45  ;;  %v3294_v35 = vld [vmem:[%s6036_s1 + $0x28] sm:$0xf] }
 0x23d   :  { %v3383_v14 = vor.u32 %v4004_v12, %v3382_v31  ;;  %1527 = vmatpush.bf16.msrb.mxu1 %v3355_v41  ;;  %v3347_v61 = vor.u32 %v3991_v56, %v3344_v57  ;;  %v3328_v31 = vld [vmem:[%s6036_s1 + $0x78] sm:$0xf0]  ;;  %v3291_v39 = vor.u32 %v3978_v34, %v3288_v50  ;;  %v3295_v45 = vor.u32 %v3981_v40, %v3294_v35  ;;  %v3270_v47 = vld [vmem:[%s6036_s1] sm:$0xf]  ;;  %v3976_v43 = vld [vmem:[%s6036_s1 + $0xc] sm:$0xf0] }
 0x23e   :  { %v5141_v1 = vadd.f32 %v987_v62, %v986_v63  ;;  %v975_v2 = vadd.f32 %v4158_v48, %v974_v0  ;;  %1541 = vmatpush.bf16.msrb.mxu2 %v3343_v55  ;;  %v3318_v62 = vld [vmem:[%s6036_s1 + $0x60] sm:$0xf]  ;;  %v3988_v63 = vld [vmem:[%s6036_s1 + $0x6c] sm:$0xf0]  ;;  %v3986_v0 = vld [vmem:[%s6036_s1 + $0x64] sm:$0xf] }
 0x23f   :  { %1512 = vmatpush.bf16.msra.mxu0 %v3383_v14  ;;  %1554 = vmatpush.bf16.msra.mxu3 %v3347_v61  ;;  %v5270_v14 = vld [vmem:[%s6038_s0 + $0x38] sm:$0xff]  ;;  %v3278_v52 = vld [vmem:[%s6036_s1 + $0x8] sm:$0xf]  ;;  %v3975_v56 = vld [vmem:[%s6036_s1 + $0xc] sm:$0xf] }
 0x240   :  { %4161 = vtanh.f32 %v5141_v1  ;;  %v979_v6 = vsel %vm978_vm2, %v4158_v48, %v975_v2  ;;  %v3990_v48 = vld [vmem:[%s6036_s1 + $0x84] sm:$0xf]  ;;  %v3319_v2 = vor.u32 %v3988_v63, %v3318_v62  ;;  %v999_v22 = vunpack.c.h.bf16 %v5270_v14  ;;  %v3296_v41 = vld [vmem:[%s6036_s1 + $0x38] sm:$0xf0]  ;;  %v3977_v53 = vld [vmem:[%s6036_s1 + $0x14] sm:$0xf0] }
 0x241   :  { %v984_v9 = vsel %vm981_vm3, %v983_v7, %v979_v6  ;;  %v3339_v54 = vor.u32 %v3990_v48, %v3336_v51  ;;  %v3989_v6 = vld [vmem:[%s6036_s1 + $0x74] sm:$0xf0]  ;;  %v3299_v46 = vor.u32 %v3979_v60, %v3296_v41  ;;  %v3974_v48 = vld [vmem:[%s6036_s1 + $0x4] sm:$0xf]  ;;  %v3272_v51 = vld [vmem:[%s6036_s1 + $0x10] sm:$0xf0] }
 0x242   :  { %v3275_v55 = vor.u32 %v3974_v48, %v3272_v51  ;;  %v3280_v57 = vld [vmem:[%s6036_s1 + $0x18] sm:$0xf0]  ;;  %v4037_v48 = vld [vmem:[%s6036_s1 + $0xf4] sm:$0xf0] }
 0x243   :  { %1513 = vmatpush.bf16.msra.mxu0 %v3367_v25  ;;  %1528 = vmatpush.bf16.msrb.mxu1 %v3339_v54  ;;  %v3985_v25 = vld [vmem:[%s6036_s1 + $0x54] sm:$0xf0]  ;;  %v3283_v63 = vor.u32 %v3975_v56, %v3280_v57  ;;  %v4032_v56 = vld [vmem:[%s6036_s1 + $0xcc] sm:$0xf0]  ;;  %v4030_v57 = vld [vmem:[%s6036_s1 + $0xc4] sm:$0xf] }
 0x244   :  { %v3311_v27 = vor.u32 %v3985_v25, %v3310_v24 }
 0x246   :  { %v4162_v8 = vpop.eup %4161 }
 0x247   :  { %v990_v10 = vmul.f32 %v4162_v8, %v984_v9  ;;  %1514 = vmatpush.bf16.msra.mxu0 %v3351_v38  ;;  %v3323_v9 = vor.u32 %v3986_v0, %v3320_v4 }
 0x249   :  { %v991_v11 = vpack.c.bf16 %v990_v10, %v990_v10  ;;  %v3327_v10 = vor.u32 %v3989_v6, %v3326_v5  ;;  %1529 = vmatpush.bf16.msrb.mxu1 %v3323_v9  ;;  %v998_v5 = vunpack.c.l.bf16 %v5270_v14 }
 0x24b   :  { %992 = vst [vmem:[#allocation4 + $0x8] sm:$0xf] %v991_v11  ;;  %1200 = vmatmul.bf16.vlgmr.msrb.gmra.mxu0 %v991_v11  ;;  %1213 = vmatmul.bf16.vlgmr.msra.gmra.mxu1 %v991_v11 }
 0x24c   :  { %1226 = vmatmul.bf16.vlgmr.msra.gmra.mxu2 %v991_v11  ;;  %1239 = vmatmul.bf16.vlgmr.msrb.gmra.mxu3 %v991_v11  ;;  %v3987_v11 = vld [vmem:[%s6036_s1 + $0x6c] sm:$0xf] }
 0x24d   :  { %1515 = vmatpush.bf16.msra.mxu0 %v3335_v49  ;;  %v3331_v28 = vor.u32 %v3987_v11, %v3328_v31  ;;  %1542 = vmatpush.bf16.msrb.mxu2 %v3327_v10  ;;  %v3271_v49 = vor.u32 %v3976_v43, %v3270_v47  ;;  %v3517_v47 = vld [vmem:[%s6036_s1 + $0xf0] sm:$0xf0]  ;;  %v3523_v43 = vld [vmem:[%s6036_s1 + $0xe8] sm:$0xf] }
 0x24e   :  { %1530 = vmatpush.bf16.msrb.mxu1 %v3307_v23  ;;  %v3524_v51 = vor.u32 %v4037_v48, %v3523_v43  ;;  %v3435_v43 = vld [vmem:[%s6036_s1 + $0x40] sm:$0xf]  ;;  %v4016_v48 = vld [vmem:[%s6036_s1 + $0x4c] sm:$0xf0] }
 0x24f   :  { %1555 = vmatpush.bf16.msra.mxu3 %v3331_v28 }
 0x251   :  { %1516 = vmatpush.bf16.msra.mxu0 %v3319_v2  ;;  %1543 = vmatpush.bf16.msrb.mxu2 %v3311_v27 }
 0x252   :  { %1531 = vmatpush.bf16.msrb.mxu1 %v3291_v39 }
 0x253   :  { %1556 = vmatpush.bf16.msra.mxu3 %v3315_v32 }
 0x255   :  { %1517 = vmatpush.bf16.msra.mxu0 %v3303_v20  ;;  %1544 = vmatpush.bf16.msrb.mxu2 %v3295_v45  ;;  %v4034_v45 = vld [vmem:[%s6036_s1 + $0xe4] sm:$0xf] }
 0x256   :  { %1532 = vmatpush.bf16.msrb.mxu1 %v3275_v55  ;;  %v3499_v55 = vld [vmem:[%s6036_s1 + $0xc0] sm:$0xf] }
 0x257   :  { %1557 = vmatpush.bf16.msra.mxu3 %v3299_v46 }
 0x259   :  { %1518 = vmatpush.bf16.msra.mxu0 %v3287_v33 }
 0x25b   :  { %1558 = vmatpush.bf16.msra.mxu3 %v3283_v63 }
 0x25d   :  { %1519 = vmatpush.bf16.msra.mxu0 %v3271_v49  ;;  %v3520_v49 = vor.u32 %v4034_v45, %v3517_v47 }
 0x25f   :  { %1845 = vmatpush.bf16.msra.mxu1 %v3520_v49  ;;  %v4014_v49 = vld [vmem:[%s6036_s1 + $0x44] sm:$0xf] }
 0x2c8   :  { %v1201_v7 = vpop.f32.mrf.mxu0  ;;  %v1214_v8 = vpop.f32.mrf.mxu1 }
 0x2c9   :  { %v1244_v12 = vadd.f32 %v1201_v7, %v996_v58  ;;  %v1245_v13 = vadd.f32 %v1214_v8, %v997_v59  ;;  %v3279_v59 = vor.u32 %v3977_v53, %v3278_v52  ;;  %v4035_v52 = vld [vmem:[%s6036_s1 + $0xec] sm:$0xf]  ;;  %v3525_v53 = vld [vmem:[%s6036_s1 + $0xf8] sm:$0xf0] }
 0x2cb   :  { %v3263_v18 = vmul.f32 -1.442695, %v1244_v12  ;;  %v3264_v19 = vmul.f32 -1.442695, %v1245_v13  ;;  %1545 = vmatpush.bf16.msrb.mxu2 %v3279_v59  ;;  %v3501_v59 = vld [vmem:[%s6036_s1 + $0xd0] sm:$0xf0] }
 0x2cc   :  { %v3504_v63 = vor.u32 %v4030_v57, %v3501_v59  ;;  %v3443_v57 = vld [vmem:[%s6036_s1 + $0x48] sm:$0xf]  ;;  %v4015_v59 = vld [vmem:[%s6036_s1 + $0x4c] sm:$0xf] }
 0x2cd   :  { %4163 = vpow2.f32 %v3263_v18 }
 0x2ce   :  { %4165 = vpow2.f32 %v3264_v19  ;;  %1846 = vmatpush.bf16.msra.mxu1 %v3504_v63  ;;  %v3419_v63 = vld [vmem:[%s6036_s1 + $0x20] sm:$0xf] }
 0x2cf   :  { %v1227_v36 = vpop.f32.mrf.mxu2  ;;  %v1240_v38 = vpop.f32.mrf.mxu3  ;;  %1858 = vmatpush.bf16.msra.mxu2 %v3524_v51 }
 0x2d0   :  { %v1247_v42 = vadd.f32 %v1240_v38, %v999_v22  ;;  %v1203_v44 = vpop.f32.mrf.mxu0  ;;  %v1216_v37 = vpop.f32.mrf.mxu1  ;;  %v1246_v9 = vadd.f32 %v1227_v36, %v998_v5 }
 0x2d1   :  { %v4036_v37 = vld [vmem:[%s6036_s1 + $0xec] sm:$0xf0] }
 0x2d2   :  { %v3265_v54 = vmul.f32 -1.442695, %v1247_v42 }
 0x2d3   :  { %v4164_v58 = vpop.eup %4163 }
 0x2d4   :  { %v4166_v61 = vpop.eup %4165  ;;  %v1251_v62 = vadd.f32 1.0, %v4164_v58  ;;  %4167 = vpow2.f32 %v3265_v54  ;;  %v3528_v54 = vor.u32 %v4035_v52, %v3525_v53  ;;  %v3500_v58 = vor.u32 %v4032_v56, %v3499_v55 }
 0x2d5   :  { %v1270_v0 = vadd.f32 1.0, %v4166_v61  ;;  %v3507_v61 = vld [vmem:[%s6036_s1 + $0xc8] sm:$0xf]  ;;  %v3436_v53 = vor.u32 %v4016_v48, %v3435_v43 }
 0x2d6   :  { %4169 = vrcp.f32 %v1251_v62  ;;  %v1263_v28 = vand.u32 2147483648, %v1251_v62  ;;  %v1261_v17 = vand.u32 2147483647, %v1251_v62  ;;  %vm1257_vm6 = vweird.f32 %v1251_v62  ;;  %1871 = vmatpush.bf16.msrb.mxu3 %v3528_v54  ;;  %v3437_v54 = vld [vmem:[%s6036_s1 + $0x50] sm:$0xf0] }
 0x2d7   :  { %4171 = vrcp.f32 %v1270_v0  ;;  %v1229_v2 = vpop.f32.mrf.mxu2  ;;  %v1242_v4 = vpop.f32.mrf.mxu3  ;;  %v1282_v15 = vand.u32 2147483648, %v1270_v0  ;;  %v1280_v14 = vand.u32 2147483647, %v1270_v0  ;;  %vm1276_vm7 = vweird.f32 %v1270_v0 }
 0x2d8   :  { %v1264_v21 = vor.u32 1.1754944e-38, %v1263_v28  ;;  %vm1262_vm10 = vcmp.eq.f32.partialorder %v1261_v17, 8.507059e+37  ;;  %v4031_v2 = vld [vmem:[%s6036_s1 + $0xcc] sm:$0xf]  ;;  %v3509_v4 = vld [vmem:[%s6036_s1 + $0xd8] sm:$0xf0]  ;;  %v3440_v56 = vor.u32 %v4014_v49, %v3437_v54 }
 0x2d9   :  { %v1283_v24 = vor.u32 1.1754944e-38, %v1282_v15  ;;  %vm1281_vm11 = vcmp.eq.f32.partialorder %v1280_v14, 8.507059e+37  ;;  %v3512_v5 = vor.u32 %v4031_v2, %v3509_v4  ;;  %v4027_v28 = vld [vmem:[%s6036_s1 + $0xac] sm:$0xf]  ;;  %v3493_v15 = vld [vmem:[%s6036_s1 + $0xb8] sm:$0xf0] }
 0x2da   :  { %v4168_v6 = vpop.eup %4167  ;;  %v3496_v17 = vor.u32 %v4027_v28, %v3493_v15  ;;  %v4024_v14 = vld [vmem:[%s6036_s1 + $0x8c] sm:$0xf0] }
 0x2db   :  { %v1290_v7 = vadd.f32 1.0, %v4168_v6  ;;  %v3483_v6 = vld [vmem:[%s6036_s1 + $0xa0] sm:$0xf]  ;;  %1872 = vmatpush.bf16.msrb.mxu3 %v3512_v5  ;;  %v4010_v5 = vld [vmem:[%s6036_s1 + $0x24] sm:$0xf] }
 0x2dc   :  { %v4170_v8 = vpop.eup %4169 }
 0x2dd   :  { %v4172_v10 = vpop.eup %4171  ;;  %v1253_v11 = vmul.f32 %v4170_v8, %v1251_v62  ;;  %4173 = vrcp.f32 %v1290_v7  ;;  %vm1258_vm4 = vweird.f32 %v4170_v8  ;;  %v1302_v36 = vand.u32 2147483648, %v1290_v7  ;;  %v4033_v62 = vld [vmem:[%s6036_s1 + $0xd4] sm:$0xf0] }
 0x2de   :  { %v1272_v31 = vmul.f32 %v4172_v10, %v1270_v0  ;;  %4175 = vtanh.f32 %v1246_v9  ;;  %vm1277_vm5 = vweird.f32 %v4172_v10  ;;  %vm1259_vm8 = vmor %vm1257_vm6, %vm1258_vm4  ;;  %vm1296_vm13 = vweird.f32 %v1290_v7 }
 0x2df   :  { %v1254_v12 = vsub.f32 1.0, %v1253_v11  ;;  %vm1278_vm9 = vmor %vm1276_vm7, %vm1277_vm5  ;;  %v1300_v38 = vand.u32 2147483647, %v1290_v7  ;;  %v1303_v40 = vor.u32 1.1754944e-38, %v1302_v36  ;;  %v3508_v0 = vor.u32 %v4033_v62, %v3507_v61  ;;  %v3491_v11 = vld [vmem:[%s6036_s1 + $0xa8] sm:$0xf]  ;;  %1873 = vmatpush.bf16.msrb.mxu3 %v3496_v17 }
 0x2e0   :  { %v1273_v13 = vsub.f32 1.0, %v1272_v31  ;;  %v4029_v31 = vld [vmem:[%s6036_s1 + $0xb4] sm:$0xf0]  ;;  %v3453_v36 = vld [vmem:[%s6036_s1 + $0x70] sm:$0xf0] }
 0x2e1   :  { %v1255_v16 = vmul.f32 %v4170_v8, %v1254_v12  ;;  %vm1301_vm15 = vcmp.eq.f32.partialorder %v1300_v38, 8.507059e+37  ;;  %1859 = vmatpush.bf16.msra.mxu2 %v3508_v0  ;;  %v3459_v38 = vld [vmem:[%s6036_s1 + $0x68] sm:$0xf]  ;;  %v3445_v62 = vld [vmem:[%s6036_s1 + $0x58] sm:$0xf0] }
 0x2e2   :  { %v1274_v18 = vmul.f32 %v4172_v10, %v1273_v13  ;;  %v3492_v13 = vor.u32 %v4029_v31, %v3491_v11  ;;  %v4012_v0 = vld [vmem:[%s6036_s1 + $0x2c] sm:$0xf0]  ;;  %v3448_v2 = vor.u32 %v4015_v59, %v3445_v62  ;;  %v4013_v11 = vld [vmem:[%s6036_s1 + $0x34] sm:$0xf0]  ;;  %v4011_v31 = vld [vmem:[%s6036_s1 + $0x2c] sm:$0xf] }
 0x2e3   :  { %v4174_v19 = vpop.eup %4173  ;;  %v1256_v20 = vadd.f32 %v4170_v8, %v1255_v16  ;;  %v3266_v16 = vld [vmem:[%s6038_s0 + $0x40] sm:$0xff]  ;;  %v3420_v4 = vor.u32 %v4012_v0, %v3419_v63 }
 0x2e4   :  { %v1275_v22 = vadd.f32 %v4172_v10, %v1274_v18  ;;  %v1292_v23 = vmul.f32 %v4174_v19, %v1290_v7  ;;  %v4176_v26 = vpop.eup %4175  ;;  %vm1297_vm12 = vweird.f32 %v4174_v19  ;;  %v4028_v7 = vld [vmem:[%s6036_s1 + $0xac] sm:$0xf0]  ;;  %v3467_v18 = vld [vmem:[%s6036_s1 + $0x80] sm:$0xf] }
 0x2e5   :  { %v1260_v25 = vsel %vm1259_vm8, %v4170_v8, %v1256_v20  ;;  %vm1298_vm14 = vmor %vm1296_vm13, %vm1297_vm12  ;;  %v4026_v8 = vld [vmem:[%s6036_s1 + $0xa4] sm:$0xf]  ;;  %v3484_v9 = vor.u32 %v4028_v7, %v3483_v6  ;;  %1860 = vmatpush.bf16.msra.mxu2 %v3492_v13  ;;  %v3468_v20 = vor.u32 %v4024_v14, %v3467_v18  ;;  %v3421_v6 = vld [vmem:[%s6036_s1 + $0x30] sm:$0xf0] }
 0x2e6   :  { %v1265_v27 = vsel %vm1262_vm10, %v1264_v21, %v1260_v25  ;;  %v1279_v29 = vsel %vm1278_vm9, %v4172_v10, %v1275_v22  ;;  %v1293_v3 = vsub.f32 1.0, %v1292_v23  ;;  %v3485_v10 = vld [vmem:[%s6036_s1 + $0xb0] sm:$0xf0]  ;;  %v3475_v22 = vld [vmem:[%s6036_s1 + $0x88] sm:$0xf] }
 0x2e7   :  { %v1284_v30 = vsel %vm1281_vm11, %v1283_v24, %v1279_v29  ;;  %v1307_v32 = vmul.f32 %v4176_v26, %v1265_v27  ;;  %v3488_v12 = vor.u32 %v4026_v8, %v3485_v10  ;;  %v3469_v21 = vld [vmem:[%s6036_s1 + $0x90] sm:$0xf0]  ;;  %v4025_v23 = vld [vmem:[%s6036_s1 + $0x94] sm:$0xf0]  ;;  %v4023_v26 = vld [vmem:[%s6036_s1 + $0x8c] sm:$0xf]  ;;  %v1316_v29 = vunpack.c.l.bf16 %v3266_v16 }
 0x2e8   :  { %v1306_v33 = vmul.f32 %v1284_v30, %v5141_v1  ;;  %v1294_v34 = vmul.f32 %v4174_v19, %v1293_v3  ;;  %v3515_v1 = vld [vmem:[%s6036_s1 + $0xe0] sm:$0xf]  ;;  %v3476_v25 = vor.u32 %v4025_v23, %v3475_v22  ;;  %v3477_v27 = vld [vmem:[%s6036_s1 + $0x98] sm:$0xf0]  ;;  %v1317_v3 = vunpack.c.h.bf16 %v3266_v16  ;;  %v3427_v7 = vld [vmem:[%s6036_s1 + $0x28] sm:$0xf] }
 0x2e9   :  { %v3516_v46 = vor.u32 %v4036_v37, %v3515_v1  ;;  %1847 = vmatpush.bf16.msra.mxu1 %v3488_v12  ;;  %v3480_v30 = vor.u32 %v4023_v26, %v3477_v27  ;;  %v3461_v1 = vld [vmem:[%s6036_s1 + $0x78] sm:$0xf0]  ;;  %v3424_v10 = vor.u32 %v4010_v5, %v3421_v6  ;;  %v3428_v16 = vor.u32 %v4013_v11, %v3427_v7  ;;  %v3403_v18 = vld [vmem:[%s6036_s1] sm:$0xf]  ;;  %v4008_v14 = vld [vmem:[%s6036_s1 + $0xc] sm:$0xf0] }
 0x2ea   :  { %v5347_v50 = vadd.f32 %v1307_v32, %v1306_v33  ;;  %v1295_v35 = vadd.f32 %v4174_v19, %v1294_v34  ;;  %1861 = vmatpush.bf16.msra.mxu2 %v3476_v25  ;;  %v3451_v32 = vld [vmem:[%s6036_s1 + $0x60] sm:$0xf]  ;;  %v4020_v33 = vld [vmem:[%s6036_s1 + $0x6c] sm:$0xf0]  ;;  %v4018_v34 = vld [vmem:[%s6036_s1 + $0x64] sm:$0xf] }
 0x2eb   :  { %1832 = vmatpush.bf16.msrb.mxu0 %v3516_v46  ;;  %1874 = vmatpush.bf16.msrb.mxu3 %v3480_v30  ;;  %v5476_v46 = vld [vmem:[%s6038_s0 + $0x48] sm:$0xff]  ;;  %v3429_v12 = vld [vmem:[%s6036_s1 + $0x38] sm:$0xf0]  ;;  %v4009_v23 = vld [vmem:[%s6036_s1 + $0x14] sm:$0xf0] }
 0x2ec   :  { %4177 = vtanh.f32 %v5347_v50  ;;  %v1299_v39 = vsel %vm1298_vm14, %v4174_v19, %v1295_v35  ;;  %v4022_v19 = vld [vmem:[%s6036_s1 + $0x84] sm:$0xf]  ;;  %v3452_v35 = vor.u32 %v4020_v33, %v3451_v32  ;;  %v1319_v55 = vunpack.c.h.bf16 %v5476_v46  ;;  %v3411_v22 = vld [vmem:[%s6036_s1 + $0x8] sm:$0xf]  ;;  %v4007_v26 = vld [vmem:[%s6036_s1 + $0xc] sm:$0xf] }
 0x2ed   :  { %v1304_v41 = vsel %vm1301_vm15, %v1303_v40, %v1299_v39  ;;  %v3472_v24 = vor.u32 %v4022_v19, %v3469_v21  ;;  %v4021_v39 = vld [vmem:[%s6036_s1 + $0x74] sm:$0xf0]  ;;  %v3432_v17 = vor.u32 %v4011_v31, %v3429_v12  ;;  %v4006_v19 = vld [vmem:[%s6036_s1 + $0x4] sm:$0xf]  ;;  %v3405_v21 = vld [vmem:[%s6036_s1 + $0x10] sm:$0xf0] }
 0x2ee   :  { %v3408_v25 = vor.u32 %v4006_v19, %v3405_v21  ;;  %v3413_v27 = vld [vmem:[%s6036_s1 + $0x18] sm:$0xf0]  ;;  %v4069_v19 = vld [vmem:[%s6036_s1 + $0xf4] sm:$0xf0] }
 0x2ef   :  { %1833 = vmatpush.bf16.msrb.mxu0 %v3500_v58  ;;  %1848 = vmatpush.bf16.msra.mxu1 %v3472_v24  ;;  %v4017_v58 = vld [vmem:[%s6036_s1 + $0x54] sm:$0xf0]  ;;  %v3416_v33 = vor.u32 %v4007_v26, %v3413_v27  ;;  %v4064_v26 = vld [vmem:[%s6036_s1 + $0xcc] sm:$0xf0]  ;;  %v4062_v27 = vld [vmem:[%s6036_s1 + $0xc4] sm:$0xf] }
 0x2f0   :  { %v3444_v61 = vor.u32 %v4017_v58, %v3443_v57 }
 0x2f2   :  { %v4178_v60 = vpop.eup %4177 }
 0x2f3   :  { %v1310_v42 = vmul.f32 %v4178_v60, %v1304_v41  ;;  %1834 = vmatpush.bf16.msrb.mxu0 %v3484_v9  ;;  %v3456_v41 = vor.u32 %v4018_v34, %v3453_v36 }
 0x2f5   :  { %v1311_v44 = vpack.c.bf16 %v1310_v42, %v1310_v42  ;;  %v3460_v42 = vor.u32 %v4021_v39, %v3459_v38  ;;  %1849 = vmatpush.bf16.msra.mxu1 %v3456_v41  ;;  %v1318_v38 = vunpack.c.l.bf16 %v5476_v46 }
 0x2f7   :  { %1312 = vst [vmem:[#allocation4 + $0xc] sm:$0xf] %v1311_v44  ;;  %1520 = vmatmul.bf16.vlgmr.msra.gmra.mxu0 %v1311_v44  ;;  %1533 = vmatmul.bf16.vlgmr.msrb.gmra.mxu1 %v1311_v44 }
 0x2f8   :  { %1546 = vmatmul.bf16.vlgmr.msrb.gmra.mxu2 %v1311_v44  ;;  %1559 = vmatmul.bf16.vlgmr.msra.gmra.mxu3 %v1311_v44  ;;  %v4019_v44 = vld [vmem:[%s6036_s1 + $0x6c] sm:$0xf] }
 0x2f9   :  { %1835 = vmatpush.bf16.msrb.mxu0 %v3468_v20  ;;  %v3464_v47 = vor.u32 %v4019_v44, %v3461_v1  ;;  %1862 = vmatpush.bf16.msra.mxu2 %v3460_v42  ;;  %v3404_v20 = vor.u32 %v4008_v14, %v3403_v18  ;;  %v3650_v18 = vld [vmem:[%s6036_s1 + $0xf0] sm:$0xf0]  ;;  %v3656_v14 = vld [vmem:[%s6036_s1 + $0xe8] sm:$0xf] }
 0x2fa   :  { %1850 = vmatpush.bf16.msra.mxu1 %v3440_v56  ;;  %v3657_v21 = vor.u32 %v4069_v19, %v3656_v14  ;;  %v3568_v14 = vld [vmem:[%s6036_s1 + $0x40] sm:$0xf]  ;;  %v4048_v19 = vld [vmem:[%s6036_s1 + $0x4c] sm:$0xf0] }
 0x2fb   :  { %1875 = vmatpush.bf16.msrb.mxu3 %v3464_v47 }
 0x2fd   :  { %1836 = vmatpush.bf16.msrb.mxu0 %v3452_v35  ;;  %1863 = vmatpush.bf16.msra.mxu2 %v3444_v61 }
 0x2fe   :  { %1851 = vmatpush.bf16.msra.mxu1 %v3424_v10 }
 0x2ff   :  { %1876 = vmatpush.bf16.msrb.mxu3 %v3448_v2 }
 0x301   :  { %1837 = vmatpush.bf16.msrb.mxu0 %v3436_v53  ;;  %1864 = vmatpush.bf16.msra.mxu2 %v3428_v16  ;;  %v4066_v16 = vld [vmem:[%s6036_s1 + $0xe4] sm:$0xf] }
 0x302   :  { %1852 = vmatpush.bf16.msra.mxu1 %v3408_v25  ;;  %v3632_v25 = vld [vmem:[%s6036_s1 + $0xc0] sm:$0xf] }
 0x303   :  { %1877 = vmatpush.bf16.msrb.mxu3 %v3432_v17 }
 0x305   :  { %1838 = vmatpush.bf16.msrb.mxu0 %v3420_v4 }
 0x307   :  { %1878 = vmatpush.bf16.msrb.mxu3 %v3416_v33 }
 0x309   :  { %1839 = vmatpush.bf16.msrb.mxu0 %v3404_v20  ;;  %v3653_v20 = vor.u32 %v4066_v16, %v3650_v18 }
 0x30b   :  { %2165 = vmatpush.bf16.msrb.mxu1 %v3653_v20  ;;  %v4046_v20 = vld [vmem:[%s6036_s1 + $0x44] sm:$0xf] }
 0x374   :  { %v1521_v40 = vpop.f32.mrf.mxu0  ;;  %v1534_v60 = vpop.f32.mrf.mxu1 }
 0x375   :  { %v1564_v37 = vadd.f32 %v1521_v40, %v1316_v29  ;;  %v1565_v45 = vadd.f32 %v1534_v60, %v1317_v3  ;;  %v3412_v3 = vor.u32 %v4009_v23, %v3411_v22  ;;  %v4067_v22 = vld [vmem:[%s6036_s1 + $0xec] sm:$0xf]  ;;  %v3658_v23 = vld [vmem:[%s6036_s1 + $0xf8] sm:$0xf0] }
 0x377   :  { %v3396_v51 = vmul.f32 -1.442695, %v1564_v37  ;;  %v3397_v52 = vmul.f32 -1.442695, %v1565_v45  ;;  %1865 = vmatpush.bf16.msra.mxu2 %v3412_v3  ;;  %v3634_v3 = vld [vmem:[%s6036_s1 + $0xd0] sm:$0xf0] }
 0x378   :  { %v3637_v33 = vor.u32 %v4062_v27, %v3634_v3  ;;  %v3576_v27 = vld [vmem:[%s6036_s1 + $0x48] sm:$0xf]  ;;  %v4047_v3 = vld [vmem:[%s6036_s1 + $0x4c] sm:$0xf] }
 0x379   :  { %4179 = vpow2.f32 %v3396_v51 }
 0x37a   :  { %4181 = vpow2.f32 %v3397_v52  ;;  %2166 = vmatpush.bf16.msrb.mxu1 %v3637_v33  ;;  %v3552_v33 = vld [vmem:[%s6036_s1 + $0x20] sm:$0xf] }
 0x37b   :  { %v1547_v8 = vpop.f32.mrf.mxu2  ;;  %v1560_v9 = vpop.f32.mrf.mxu3  ;;  %2178 = vmatpush.bf16.msrb.mxu2 %v3657_v21 }
 0x37c   :  { %v1567_v13 = vadd.f32 %v1560_v9, %v1319_v55  ;;  %v1523_v28 = vpop.f32.mrf.mxu0  ;;  %v1536_v15 = vpop.f32.mrf.mxu1  ;;  %v1566_v41 = vadd.f32 %v1547_v8, %v1318_v38 }
 0x37d   :  { %v4068_v15 = vld [vmem:[%s6036_s1 + $0xec] sm:$0xf0] }
 0x37e   :  { %v3398_v24 = vmul.f32 -1.442695, %v1567_v13 }
 0x37f   :  { %v4180_v29 = vpop.eup %4179 }
 0x380   :  { %v4182_v30 = vpop.eup %4181  ;;  %v1571_v32 = vadd.f32 1.0, %v4180_v29  ;;  %4183 = vpow2.f32 %v3398_v24  ;;  %v3661_v24 = vor.u32 %v4067_v22, %v3658_v23  ;;  %v3633_v29 = vor.u32 %v4064_v26, %v3632_v25 }
 0x381   :  { %v1590_v34 = vadd.f32 1.0, %v4182_v30  ;;  %v3640_v30 = vld [vmem:[%s6036_s1 + $0xc8] sm:$0xf]  ;;  %v3569_v23 = vor.u32 %v4048_v19, %v3568_v14 }
 0x382   :  { %4185 = vrcp.f32 %v1571_v32  ;;  %v1583_v47 = vand.u32 2147483648, %v1571_v32  ;;  %v1581_v49 = vand.u32 2147483647, %v1571_v32  ;;  %vm1577_vm2 = vweird.f32 %v1571_v32  ;;  %2191 = vmatpush.bf16.msra.mxu3 %v3661_v24  ;;  %v3570_v24 = vld [vmem:[%s6036_s1 + $0x50] sm:$0xf0] }
 0x383   :  { %4187 = vrcp.f32 %v1590_v34  ;;  %v1549_v35 = vpop.f32.mrf.mxu2  ;;  %v1562_v36 = vpop.f32.mrf.mxu3  ;;  %v1602_v43 = vand.u32 2147483648, %v1590_v34  ;;  %v1600_v46 = vand.u32 2147483647, %v1590_v34  ;;  %vm1596_vm3 = vweird.f32 %v1590_v34 }
 0x384   :  { %v1584_v54 = vor.u32 1.1754944e-38, %v1583_v47  ;;  %vm1582_vm6 = vcmp.eq.f32.partialorder %v1581_v49, 8.507059e+37  ;;  %v4063_v35 = vld [vmem:[%s6036_s1 + $0xcc] sm:$0xf]  ;;  %v3642_v36 = vld [vmem:[%s6036_s1 + $0xd8] sm:$0xf0]  ;;  %v3573_v26 = vor.u32 %v4046_v20, %v3570_v24 }
 0x385   :  { %v1603_v57 = vor.u32 1.1754944e-38, %v1602_v43  ;;  %vm1601_vm7 = vcmp.eq.f32.partialorder %v1600_v46, 8.507059e+37  ;;  %v3645_v38 = vor.u32 %v4063_v35, %v3642_v36  ;;  %v4059_v47 = vld [vmem:[%s6036_s1 + $0xac] sm:$0xf]  ;;  %v3626_v43 = vld [vmem:[%s6036_s1 + $0xb8] sm:$0xf0] }
 0x386   :  { %v4184_v39 = vpop.eup %4183  ;;  %v3629_v49 = vor.u32 %v4059_v47, %v3626_v43  ;;  %v4056_v46 = vld [vmem:[%s6036_s1 + $0x8c] sm:$0xf0] }
 0x387   :  { %v1610_v40 = vadd.f32 1.0, %v4184_v39  ;;  %v3616_v39 = vld [vmem:[%s6036_s1 + $0xa0] sm:$0xf]  ;;  %2192 = vmatpush.bf16.msra.mxu3 %v3645_v38  ;;  %v4042_v38 = vld [vmem:[%s6036_s1 + $0x24] sm:$0xf] }
 0x388   :  { %v4186_v60 = vpop.eup %4185 }
 0x389   :  { %v4188_v42 = vpop.eup %4187  ;;  %v1573_v44 = vmul.f32 %v4186_v60, %v1571_v32  ;;  %4189 = vrcp.f32 %v1610_v40  ;;  %vm1578_vm0 = vweird.f32 %v4186_v60  ;;  %v1622_v8 = vand.u32 2147483648, %v1610_v40  ;;  %v4065_v32 = vld [vmem:[%s6036_s1 + $0xd4] sm:$0xf0] }
 0x38a   :  { %v1592_v1 = vmul.f32 %v4188_v42, %v1590_v34  ;;  %4191 = vtanh.f32 %v1566_v41  ;;  %vm1597_vm1 = vweird.f32 %v4188_v42  ;;  %vm1579_vm4 = vmor %vm1577_vm2, %vm1578_vm0  ;;  %vm1616_vm9 = vweird.f32 %v1610_v40 }
 0x38b   :  { %v1574_v37 = vsub.f32 1.0, %v1573_v44  ;;  %vm1598_vm5 = vmor %vm1596_vm3, %vm1597_vm1  ;;  %v1620_v9 = vand.u32 2147483647, %v1610_v40  ;;  %v1623_v11 = vor.u32 1.1754944e-38, %v1622_v8  ;;  %v3641_v34 = vor.u32 %v4065_v32, %v3640_v30  ;;  %v3624_v44 = vld [vmem:[%s6036_s1 + $0xa8] sm:$0xf]  ;;  %2193 = vmatpush.bf16.msra.mxu3 %v3629_v49 }
 0x38c   :  { %v1593_v45 = vsub.f32 1.0, %v1592_v1  ;;  %v4061_v1 = vld [vmem:[%s6036_s1 + $0xb4] sm:$0xf0]  ;;  %v3586_v8 = vld [vmem:[%s6036_s1 + $0x70] sm:$0xf0] }
 0x38d   :  { %v1575_v48 = vmul.f32 %v4186_v60, %v1574_v37  ;;  %vm1621_vm11 = vcmp.eq.f32.partialorder %v1620_v9, 8.507059e+37  ;;  %2179 = vmatpush.bf16.msrb.mxu2 %v3641_v34  ;;  %v3592_v9 = vld [vmem:[%s6036_s1 + $0x68] sm:$0xf]  ;;  %v3578_v32 = vld [vmem:[%s6036_s1 + $0x58] sm:$0xf0] }
 0x38e   :  { %v1594_v51 = vmul.f32 %v4188_v42, %v1593_v45  ;;  %v3625_v45 = vor.u32 %v4061_v1, %v3624_v44  ;;  %v4044_v34 = vld [vmem:[%s6036_s1 + $0x2c] sm:$0xf0]  ;;  %v3581_v35 = vor.u32 %v4047_v3, %v3578_v32  ;;  %v4045_v44 = vld [vmem:[%s6036_s1 + $0x34] sm:$0xf0]  ;;  %v4043_v1 = vld [vmem:[%s6036_s1 + $0x2c] sm:$0xf] }
 0x38f   :  { %v4190_v52 = vpop.eup %4189  ;;  %v1576_v53 = vadd.f32 %v4186_v60, %v1575_v48  ;;  %v3399_v48 = vld [vmem:[%s6038_s0 + $0x50] sm:$0xff]  ;;  %v3553_v36 = vor.u32 %v4044_v34, %v3552_v33 }
 0x390   :  { %v1595_v55 = vadd.f32 %v4188_v42, %v1594_v51  ;;  %v1612_v56 = vmul.f32 %v4190_v52, %v1610_v40  ;;  %v4192_v59 = vpop.eup %4191  ;;  %vm1617_vm8 = vweird.f32 %v4190_v52  ;;  %v4060_v40 = vld [vmem:[%s6036_s1 + $0xac] sm:$0xf0]  ;;  %v3600_v51 = vld [vmem:[%s6036_s1 + $0x80] sm:$0xf] }
 0x391   :  { %v1580_v58 = vsel %vm1579_vm4, %v4186_v60, %v1576_v53  ;;  %vm1618_vm10 = vmor %vm1616_vm9, %vm1617_vm8  ;;  %v4058_v60 = vld [vmem:[%s6036_s1 + $0xa4] sm:$0xf]  ;;  %v3617_v41 = vor.u32 %v4060_v40, %v3616_v39  ;;  %2180 = vmatpush.bf16.msrb.mxu2 %v3625_v45  ;;  %v3601_v53 = vor.u32 %v4056_v46, %v3600_v51  ;;  %v3554_v39 = vld [vmem:[%s6036_s1 + $0x30] sm:$0xf0] }
 0x392   :  { %v1585_v61 = vsel %vm1582_vm6, %v1584_v54, %v1580_v58  ;;  %v1599_v62 = vsel %vm1598_vm5, %v4188_v42, %v1595_v55  ;;  %v1613_v63 = vsub.f32 1.0, %v1612_v56  ;;  %v3618_v42 = vld [vmem:[%s6036_s1 + $0xb0] sm:$0xf0]  ;;  %v3608_v55 = vld [vmem:[%s6036_s1 + $0x88] sm:$0xf] }
 0x393   :  { %v1604_v0 = vsel %vm1601_vm7, %v1603_v57, %v1599_v62  ;;  %v1627_v2 = vmul.f32 %v4192_v59, %v1585_v61  ;;  %v3621_v37 = vor.u32 %v4058_v60, %v3618_v42  ;;  %v3602_v54 = vld [vmem:[%s6036_s1 + $0x90] sm:$0xf0]  ;;  %v4057_v56 = vld [vmem:[%s6036_s1 + $0x94] sm:$0xf0]  ;;  %v4055_v59 = vld [vmem:[%s6036_s1 + $0x8c] sm:$0xf]  ;;  %v1636_v62 = vunpack.c.l.bf16 %v3399_v48 }
 0x394   :  { %v1626_v4 = vmul.f32 %v1604_v0, %v5347_v50  ;;  %v1614_v5 = vmul.f32 %v4190_v52, %v1613_v63  ;;  %v3648_v50 = vld [vmem:[%s6036_s1 + $0xe0] sm:$0xf]  ;;  %v3609_v58 = vor.u32 %v4057_v56, %v3608_v55  ;;  %v3610_v61 = vld [vmem:[%s6036_s1 + $0x98] sm:$0xf0]  ;;  %v1637_v63 = vunpack.c.h.bf16 %v3399_v48  ;;  %v3560_v40 = vld [vmem:[%s6036_s1 + $0x28] sm:$0xf] }
 0x395   :  { %v3649_v17 = vor.u32 %v4068_v15, %v3648_v50  ;;  %2167 = vmatpush.bf16.msrb.mxu1 %v3621_v37  ;;  %v3613_v0 = vor.u32 %v4055_v59, %v3610_v61  ;;  %v3594_v50 = vld [vmem:[%s6036_s1 + $0x78] sm:$0xf0]  ;;  %v3557_v42 = vor.u32 %v4042_v38, %v3554_v39  ;;  %v3561_v48 = vor.u32 %v4045_v44, %v3560_v40  ;;  %v3536_v51 = vld [vmem:[%s6036_s1] sm:$0xf]  ;;  %v4040_v46 = vld [vmem:[%s6036_s1 + $0xc] sm:$0xf0] }
 0x396   :  { %v5553_v6 = vadd.f32 %v1627_v2, %v1626_v4  ;;  %v1615_v7 = vadd.f32 %v4190_v52, %v1614_v5  ;;  %2181 = vmatpush.bf16.msrb.mxu2 %v3609_v58  ;;  %v3584_v2 = vld [vmem:[%s6036_s1 + $0x60] sm:$0xf]  ;;  %v4052_v4 = vld [vmem:[%s6036_s1 + $0x6c] sm:$0xf0]  ;;  %v4050_v5 = vld [vmem:[%s6036_s1 + $0x64] sm:$0xf] }
 0x397   :  { %2152 = vmatpush.bf16.msra.mxu0 %v3649_v17  ;;  %2194 = vmatpush.bf16.msra.mxu3 %v3613_v0  ;;  %v5682_v17 = vld [vmem:[%s6038_s0 + $0x58] sm:$0xff]  ;;  %v3544_v55 = vld [vmem:[%s6036_s1 + $0x8] sm:$0xf]  ;;  %v4039_v59 = vld [vmem:[%s6036_s1 + $0xc] sm:$0xf] }
 0x398   :  { %4193 = vtanh.f32 %v5553_v6  ;;  %v1619_v10 = vsel %vm1618_vm10, %v4190_v52, %v1615_v7  ;;  %v4054_v52 = vld [vmem:[%s6036_s1 + $0x84] sm:$0xf]  ;;  %v3585_v7 = vor.u32 %v4052_v4, %v3584_v2  ;;  %v1639_v25 = vunpack.c.h.bf16 %v5682_v17  ;;  %v3562_v37 = vld [vmem:[%s6036_s1 + $0x38] sm:$0xf0]  ;;  %v4041_v56 = vld [vmem:[%s6036_s1 + $0x14] sm:$0xf0] }
 0x399   :  { %v1624_v12 = vsel %vm1621_vm11, %v1623_v11, %v1619_v10  ;;  %v3605_v57 = vor.u32 %v4054_v52, %v3602_v54  ;;  %v4053_v10 = vld [vmem:[%s6036_s1 + $0x74] sm:$0xf0]  ;;  %v3565_v49 = vor.u32 %v4043_v1, %v3562_v37  ;;  %v4038_v52 = vld [vmem:[%s6036_s1 + $0x4] sm:$0xf]  ;;  %v3538_v54 = vld [vmem:[%s6036_s1 + $0x10] sm:$0xf0] }
 0x39a   :  { %v3541_v58 = vor.u32 %v4038_v52, %v3538_v54  ;;  %v3546_v61 = vld [vmem:[%s6036_s1 + $0x18] sm:$0xf0]  ;;  %v3749_v52 = vld [vmem:[%s6036_s1 + $0xa0] sm:$0xf] }
 0x39b   :  { %2153 = vmatpush.bf16.msra.mxu0 %v3633_v29  ;;  %2168 = vmatpush.bf16.msrb.mxu1 %v3605_v57  ;;  %v4049_v29 = vld [vmem:[%s6036_s1 + $0x54] sm:$0xf0]  ;;  %v3549_v4 = vor.u32 %v4039_v59, %v3546_v61  ;;  %v3783_v59 = vld [vmem:[%s6036_s1 + $0xf0] sm:$0xf0]  ;;  %v3789_v61 = vld [vmem:[%s6036_s1 + $0xe8] sm:$0xf] }
 0x39c   :  { %v3577_v30 = vor.u32 %v4049_v29, %v3576_v27 }
 0x39e   :  { %v4194_v31 = vpop.eup %4193 }
 0x39f   :  { %v1630_v13 = vmul.f32 %v4194_v31, %v1624_v12  ;;  %2154 = vmatpush.bf16.msra.mxu0 %v3617_v41  ;;  %v3589_v12 = vor.u32 %v4050_v5, %v3586_v8 }
 0x3a1   :  { %v1631_v28 = vpack.c.bf16 %v1630_v13, %v1630_v13  ;;  %v3593_v13 = vor.u32 %v4053_v10, %v3592_v9  ;;  %2169 = vmatpush.bf16.msrb.mxu1 %v3589_v12  ;;  %v1638_v9 = vunpack.c.l.bf16 %v5682_v17 }
 0x3a3   :  { %1632 = vst [vmem:[#allocation4 + $0x10] sm:$0xf] %v1631_v28  ;;  %1840 = vmatmul.bf16.vlgmr.msrb.gmra.mxu0 %v1631_v28  ;;  %1853 = vmatmul.bf16.vlgmr.msra.gmra.mxu1 %v1631_v28 }
 0x3a4   :  { %1866 = vmatmul.bf16.vlgmr.msra.gmra.mxu2 %v1631_v28  ;;  %1879 = vmatmul.bf16.vlgmr.msrb.gmra.mxu3 %v1631_v28  ;;  %v4051_v28 = vld [vmem:[%s6036_s1 + $0x6c] sm:$0xf] }
 0x3a5   :  { %2155 = vmatpush.bf16.msra.mxu0 %v3601_v53  ;;  %v3597_v18 = vor.u32 %v4051_v28, %v3594_v50  ;;  %2182 = vmatpush.bf16.msrb.mxu2 %v3593_v13  ;;  %v3537_v53 = vor.u32 %v4040_v46, %v3536_v51  ;;  %v4096_v51 = vld [vmem:[%s6036_s1 + $0xcc] sm:$0xf0] }
 0x3a6   :  { %2170 = vmatpush.bf16.msrb.mxu1 %v3573_v26 }
 0x3a7   :  { %2195 = vmatpush.bf16.msra.mxu3 %v3597_v18 }
 0x3a9   :  { %2156 = vmatpush.bf16.msra.mxu0 %v3585_v7  ;;  %2183 = vmatpush.bf16.msrb.mxu2 %v3577_v30 }
 0x3aa   :  { %2171 = vmatpush.bf16.msrb.mxu1 %v3557_v42 }
 0x3ab   :  { %2196 = vmatpush.bf16.msra.mxu3 %v3581_v35 }
 0x3ad   :  { %2157 = vmatpush.bf16.msra.mxu0 %v3569_v23  ;;  %2184 = vmatpush.bf16.msrb.mxu2 %v3561_v48 }
 0x3ae   :  { %2172 = vmatpush.bf16.msrb.mxu1 %v3541_v58  ;;  %v4098_v58 = vld [vmem:[%s6036_s1 + $0xe4] sm:$0xf] }
 0x3af   :  { %2197 = vmatpush.bf16.msra.mxu3 %v3565_v49  ;;  %v3765_v49 = vld [vmem:[%s6036_s1 + $0xc0] sm:$0xf] }
 0x3b0   :  { %v3766_v46 = vor.u32 %v4096_v51, %v3765_v49  ;;  %v4085_v51 = vld [vmem:[%s6036_s1 + $0x74] sm:$0xf0] }
 0x3b1   :  { %2158 = vmatpush.bf16.msra.mxu0 %v3553_v36 }
 0x3b3   :  { %2198 = vmatpush.bf16.msra.mxu3 %v3549_v4 }
 0x3b5   :  { %2159 = vmatpush.bf16.msra.mxu0 %v3537_v53  ;;  %v4092_v53 = vld [vmem:[%s6036_s1 + $0xac] sm:$0xf0] }
 0x3b6   :  { %v3750_v54 = vor.u32 %v4092_v53, %v3749_v52  ;;  %v3727_v52 = vld [vmem:[%s6036_s1 + $0x78] sm:$0xf0] }
 0x420   :  { %v1841_v11 = vpop.f32.mrf.mxu0  ;;  %v1854_v31 = vpop.f32.mrf.mxu1 }
 0x421   :  { %v1884_v15 = vadd.f32 %v1841_v11, %v1636_v62  ;;  %v1885_v16 = vadd.f32 %v1854_v31, %v1637_v63  ;;  %v3545_v63 = vor.u32 %v4041_v56, %v3544_v55  ;;  %v3733_v55 = vld [vmem:[%s6036_s1 + $0x80] sm:$0xf]  ;;  %v4088_v56 = vld [vmem:[%s6036_s1 + $0x8c] sm:$0xf0] }
 0x423   :  { %v3529_v21 = vmul.f32 -1.442695, %v1884_v15  ;;  %v3530_v22 = vmul.f32 -1.442695, %v1885_v16  ;;  %2185 = vmatpush.bf16.msrb.mxu2 %v3545_v63  ;;  %v4101_v63 = vld [vmem:[%s6036_s1 + $0xf4] sm:$0xf0] }
 0x424   :  { %v3790_v4 = vor.u32 %v4101_v63, %v3789_v61  ;;  %v5909_v61 = vld [vmem:[%s6038_s0 + $0x68] sm:$0xff]  ;;  %v3703_v63 = vld [vmem:[%s6036_s1 + $0x50] sm:$0xf0] }
 0x425   :  { %4195 = vpow2.f32 %v3529_v21 }
 0x426   :  { %4197 = vpow2.f32 %v3530_v22 }
 0x427   :  { %v1867_v60 = vpop.f32.mrf.mxu2  ;;  %v1880_v41 = vpop.f32.mrf.mxu3  ;;  %2498 = vmatpush.bf16.msra.mxu2 %v3790_v4 }
 0x428   :  { %v1887_v45 = vadd.f32 %v1880_v41, %v1639_v25  ;;  %v1843_v47 = vpop.f32.mrf.mxu0  ;;  %v1856_v43 = vpop.f32.mrf.mxu1  ;;  %v1886_v12 = vadd.f32 %v1867_v60, %v1638_v9 }
 0x429   :  { %v4100_v43 = vld [vmem:[%s6036_s1 + $0xec] sm:$0xf0] }
 0x42a   :  { %v3531_v57 = vmul.f32 -1.442695, %v1887_v45 }
 0x42b   :  { %v4196_v62 = vpop.eup %4195 }
 0x42c   :  { %v4198_v0 = vpop.eup %4197  ;;  %v1891_v2 = vadd.f32 1.0, %v4196_v62  ;;  %4199 = vpow2.f32 %v3531_v57  ;;  %v3734_v57 = vor.u32 %v4088_v56, %v3733_v55  ;;  %v3786_v62 = vor.u32 %v4098_v58, %v3783_v59 }
 0x42d   :  { %v1910_v5 = vadd.f32 1.0, %v4198_v0  ;;  %v4099_v0 = vld [vmem:[%s6036_s1 + $0xec] sm:$0xf] }
 0x42e   :  { %4201 = vrcp.f32 %v1891_v2  ;;  %v1903_v18 = vand.u32 2147483648, %v1891_v2  ;;  %v1901_v20 = vand.u32 2147483647, %v1891_v2  ;;  %vm1897_vm14 = vweird.f32 %v1891_v2  ;;  %2485 = vmatpush.bf16.msra.mxu1 %v3786_v62  ;;  %v4078_v62 = vld [vmem:[%s6036_s1 + $0x44] sm:$0xf] }
 0x42f   :  { %4203 = vrcp.f32 %v1910_v5  ;;  %v1869_v7 = vpop.f32.mrf.mxu2  ;;  %v1882_v8 = vpop.f32.mrf.mxu3  ;;  %v1922_v14 = vand.u32 2147483648, %v1910_v5  ;;  %v1920_v17 = vand.u32 2147483647, %v1910_v5  ;;  %vm1916_vm15 = vweird.f32 %v1910_v5 }
 0x430   :  { %v1904_v24 = vor.u32 1.1754944e-38, %v1903_v18  ;;  %vm1902_vm2 = vcmp.eq.f32.partialorder %v1901_v20, 8.507059e+37  ;;  %v3717_v7 = vld [vmem:[%s6036_s1 + $0x60] sm:$0xf]  ;;  %v4084_v8 = vld [vmem:[%s6036_s1 + $0x6c] sm:$0xf0] }
 0x431   :  { %v1923_v27 = vor.u32 1.1754944e-38, %v1922_v14  ;;  %vm1921_vm3 = vcmp.eq.f32.partialorder %v1920_v17, 8.507059e+37  ;;  %v3718_v9 = vor.u32 %v4084_v8, %v3717_v7  ;;  %v3701_v18 = vld [vmem:[%s6036_s1 + $0x40] sm:$0xf]  ;;  %v4080_v14 = vld [vmem:[%s6036_s1 + $0x4c] sm:$0xf0]  ;;  %v1959_v8 = vunpack.c.h.bf16 %v5909_v61 }
 0x432   :  { %v4200_v10 = vpop.eup %4199  ;;  %v4090_v20 = vld [vmem:[%s6036_s1 + $0xa4] sm:$0xf]  ;;  %v3757_v17 = vld [vmem:[%s6036_s1 + $0xa8] sm:$0xf]  ;;  %v4081_v7 = vld [vmem:[%s6036_s1 + $0x54] sm:$0xf0] }
 0x433   :  { %v1930_v11 = vadd.f32 1.0, %v4200_v10  ;;  %v4094_v10 = vld [vmem:[%s6036_s1 + $0xc4] sm:$0xf] }
 0x434   :  { %v4202_v31 = vpop.eup %4201 }
 0x435   :  { %v4204_v13 = vpop.eup %4203  ;;  %v1893_v28 = vmul.f32 %v4202_v31, %v1891_v2  ;;  %4205 = vrcp.f32 %v1930_v11  ;;  %vm1898_vm12 = vweird.f32 %v4202_v31  ;;  %v1942_v60 = vand.u32 2147483648, %v1930_v11  ;;  %v3791_v2 = vld [vmem:[%s6036_s1 + $0xf8] sm:$0xf0] }
 0x436   :  { %v1912_v50 = vmul.f32 %v4204_v13, %v1910_v5  ;;  %4207 = vtanh.f32 %v1886_v12  ;;  %vm1917_vm13 = vweird.f32 %v4204_v13  ;;  %vm1899_vm0 = vmor %vm1897_vm14, %vm1898_vm12  ;;  %vm1936_vm5 = vweird.f32 %v1930_v11 }
 0x437   :  { %v1894_v15 = vsub.f32 1.0, %v1893_v28  ;;  %vm1918_vm1 = vmor %vm1916_vm15, %vm1917_vm13  ;;  %v1940_v41 = vand.u32 2147483647, %v1930_v11  ;;  %v1943_v44 = vor.u32 1.1754944e-38, %v1942_v60  ;;  %v3794_v5 = vor.u32 %v4099_v0, %v3791_v2  ;;  %v4095_v28 = vld [vmem:[%s6036_s1 + $0xcc] sm:$0xf] }
 0x438   :  { %v1913_v16 = vsub.f32 1.0, %v1912_v50  ;;  %v3775_v50 = vld [vmem:[%s6036_s1 + $0xd8] sm:$0xf0]  ;;  %v3709_v0 = vld [vmem:[%s6036_s1 + $0x48] sm:$0xf] }
 0x439   :  { %v1895_v19 = vmul.f32 %v4202_v31, %v1894_v15  ;;  %vm1941_vm7 = vcmp.eq.f32.partialorder %v1940_v41, 8.507059e+37  ;;  %2511 = vmatpush.bf16.msrb.mxu3 %v3794_v5  ;;  %v3743_v60 = vld [vmem:[%s6036_s1 + $0x98] sm:$0xf0]  ;;  %v3706_v5 = vor.u32 %v4078_v62, %v3703_v63 }
 0x43a   :  { %v1914_v21 = vmul.f32 %v4204_v13, %v1913_v16  ;;  %v3778_v16 = vor.u32 %v4095_v28, %v3775_v50  ;;  %v3687_v28 = vld [vmem:[%s6036_s1 + $0x30] sm:$0xf0]  ;;  %v3693_v50 = vld [vmem:[%s6036_s1 + $0x28] sm:$0xf] }
 0x43b   :  { %v4206_v22 = vpop.eup %4205  ;;  %v1896_v23 = vadd.f32 %v4202_v31, %v1895_v19  ;;  %v3702_v19 = vor.u32 %v4080_v14, %v3701_v18  ;;  %v4075_v18 = vld [vmem:[%s6036_s1 + $0x2c] sm:$0xf]  ;;  %v3695_v14 = vld [vmem:[%s6036_s1 + $0x38] sm:$0xf0] }
 0x43c   :  { %v1915_v25 = vadd.f32 %v4204_v13, %v1914_v21  ;;  %v1932_v26 = vmul.f32 %v4206_v22, %v1930_v11  ;;  %v4208_v3 = vpop.eup %4207  ;;  %vm1937_vm4 = vweird.f32 %v4206_v22  ;;  %v3767_v11 = vld [vmem:[%s6036_s1 + $0xd0] sm:$0xf0] }
 0x43d   :  { %v1900_v29 = vsel %vm1899_vm0, %v4202_v31, %v1896_v23  ;;  %vm1938_vm6 = vmor %vm1936_vm5, %vm1937_vm4  ;;  %v3773_v31 = vld [vmem:[%s6036_s1 + $0xc8] sm:$0xf]  ;;  %v3770_v12 = vor.u32 %v4094_v10, %v3767_v11  ;;  %2512 = vmatpush.bf16.msrb.mxu3 %v3778_v16  ;;  %v3751_v21 = vld [vmem:[%s6036_s1 + $0xb0] sm:$0xf0] }
 0x43e   :  { %v1905_v30 = vsel %vm1902_vm2, %v1904_v24, %v1900_v29  ;;  %v1919_v32 = vsel %vm1918_vm1, %v4204_v13, %v1915_v25  ;;  %v1933_v33 = vsub.f32 1.0, %v1932_v26  ;;  %v4097_v13 = vld [vmem:[%s6036_s1 + $0xd4] sm:$0xf0]  ;;  %v4091_v24 = vld [vmem:[%s6036_s1 + $0xac] sm:$0xf]  ;;  %v3532_v29 = vld [vmem:[%s6038_s0 + $0x60] sm:$0xff] }
 0x43f   :  { %v1924_v34 = vsel %vm1921_vm3, %v1923_v27, %v1919_v32  ;;  %v1947_v35 = vmul.f32 %v4208_v3, %v1905_v30  ;;  %v3774_v15 = vor.u32 %v4097_v13, %v3773_v31  ;;  %2486 = vmatpush.bf16.msra.mxu1 %v3770_v12  ;;  %v4093_v23 = vld [vmem:[%s6036_s1 + $0xb4] sm:$0xf0]  ;;  %v3759_v25 = vld [vmem:[%s6036_s1 + $0xb8] sm:$0xf0]  ;;  %v3685_v3 = vld [vmem:[%s6036_s1 + $0x20] sm:$0xf] }
 0x440   :  { %v1946_v36 = vmul.f32 %v1924_v34, %v5553_v6  ;;  %v1934_v38 = vmul.f32 %v4206_v22, %v1933_v33  ;;  %v3781_v6 = vld [vmem:[%s6036_s1 + $0xe0] sm:$0xf]  ;;  %v3758_v26 = vor.u32 %v4093_v23, %v3757_v17  ;;  %v3762_v27 = vor.u32 %v4091_v24, %v3759_v25  ;;  %v4076_v30 = vld [vmem:[%s6036_s1 + $0x2c] sm:$0xf0]  ;;  %v4086_v33 = vld [vmem:[%s6036_s1 + $0x84] sm:$0xf] }
 0x441   :  { %v3782_v48 = vor.u32 %v4100_v43, %v3781_v6  ;;  %2499 = vmatpush.bf16.msra.mxu2 %v3774_v15  ;;  %v3686_v32 = vor.u32 %v4076_v30, %v3685_v3  ;;  %v3735_v34 = vld [vmem:[%s6036_s1 + $0x90] sm:$0xf0]  ;;  %v4082_v6 = vld [vmem:[%s6036_s1 + $0x64] sm:$0xf]  ;;  %v4079_v10 = vld [vmem:[%s6036_s1 + $0x4c] sm:$0xf]  ;;  %v3698_v17 = vor.u32 %v4075_v18, %v3695_v14 }
 0x442   :  { %v5759_v39 = vadd.f32 %v1947_v35, %v1946_v36  ;;  %v1935_v40 = vadd.f32 %v4206_v22, %v1934_v38  ;;  %2513 = vmatpush.bf16.msrb.mxu3 %v3762_v27  ;;  %v3741_v35 = vld [vmem:[%s6036_s1 + $0x88] sm:$0xf]  ;;  %v3738_v36 = vor.u32 %v4086_v33, %v3735_v34  ;;  %v4089_v38 = vld [vmem:[%s6036_s1 + $0x94] sm:$0xf0]  ;;  %v3719_v43 = vld [vmem:[%s6036_s1 + $0x70] sm:$0xf0] }
 0x443   :  { %2472 = vmatpush.bf16.msrb.mxu0 %v3782_v48  ;;  %v3742_v41 = vor.u32 %v4089_v38, %v3741_v35  ;;  %v3725_v48 = vld [vmem:[%s6036_s1 + $0x68] sm:$0xf]  ;;  %v3722_v49 = vor.u32 %v4082_v6, %v3719_v43  ;;  %v3711_v11 = vld [vmem:[%s6036_s1 + $0x58] sm:$0xf0]  ;;  %v4112_v31 = vld [vmem:[%s6040_s4 + $0x30] sm:$0xff] }
 0x444   :  { %4209 = vtanh.f32 %v5759_v39  ;;  %v1939_v42 = vsel %vm1938_vm6, %v4206_v22, %v1935_v40  ;;  %v3754_v22 = vor.u32 %v4090_v20, %v3751_v21  ;;  %v4087_v40 = vld [vmem:[%s6036_s1 + $0x8c] sm:$0xf]  ;;  %v3726_v55 = vor.u32 %v4085_v51, %v3725_v48  ;;  %v4074_v13 = vld [vmem:[%s6036_s1 + $0x24] sm:$0xf]  ;;  %v4077_v16 = vld [vmem:[%s6036_s1 + $0x34] sm:$0xf0] }
 0x445   :  { %v1944_v37 = vsel %vm1941_vm7, %v1943_v44, %v1939_v42  ;;  %2500 = vmatpush.bf16.msra.mxu2 %v3758_v26  ;;  %v3746_v42 = vor.u32 %v4087_v40, %v3743_v60  ;;  %v1956_v44 = vunpack.c.l.bf16 %v3532_v29  ;;  %v3714_v12 = vor.u32 %v4079_v10, %v3711_v11  ;;  %v4070_v23 = vld [vmem:[%s6036_s1 + $0x4] sm:$0xf]  ;;  %v3671_v24 = vld [vmem:[%s6036_s1 + $0x10] sm:$0xf0]  ;;  %v4073_v3 = vld [vmem:[%s6036_s1 + $0x14] sm:$0xf0] }
 0x446   :  { %2487 = vmatpush.bf16.msra.mxu1 %v3754_v22  ;;  %v3690_v15 = vor.u32 %v4074_v13, %v3687_v28  ;;  %v3694_v21 = vor.u32 %v4077_v16, %v3693_v50  ;;  %v4111_v22 = vld [vmem:[%s6040_s4 + $0x28] sm:$0xff]  ;;  %v3679_v33 = vld [vmem:[%s6036_s1 + $0x18] sm:$0xf0]  ;;  %v4110_v40 = vld [vmem:[%s6040_s4 + $0x20] sm:$0xff] }
 0x447   :  { %2473 = vmatpush.bf16.msrb.mxu0 %v3766_v46  ;;  %2514 = vmatpush.bf16.msrb.mxu3 %v3746_v42  ;;  %v4083_v46 = vld [vmem:[%s6036_s1 + $0x6c] sm:$0xf]  ;;  %v4108_v43 = vld [vmem:[%s6040_s4 + $0x10] sm:$0xff] }
 0x448   :  { %v3730_v56 = vor.u32 %v4083_v46, %v3727_v52  ;;  %v4071_v30 = vld [vmem:[%s6036_s1 + $0xc] sm:$0xf] }
 0x449   :  { %2501 = vmatpush.bf16.msra.mxu2 %v3742_v41  ;;  %v3682_v38 = vor.u32 %v4071_v30, %v3679_v33 }
 0x44a   :  { %v4210_v1 = vpop.eup %4209  ;;  %2488 = vmatpush.bf16.msra.mxu1 %v3738_v36 }
 0x44b   :  { %v1950_v45 = vmul.f32 %v4210_v1, %v1944_v37  ;;  %2474 = vmatpush.bf16.msrb.mxu0 %v3750_v54  ;;  %v1957_v1 = vunpack.c.h.bf16 %v3532_v29  ;;  %v3669_v37 = vld [vmem:[%s6036_s1] sm:$0xf]  ;;  %2515 = vmatpush.bf16.msrb.mxu3 %v3730_v56  ;;  %v3677_v29 = vld [vmem:[%s6036_s1 + $0x8] sm:$0xf] }
 0x44c   :  { %v3678_v35 = vor.u32 %v4073_v3, %v3677_v29 }
 0x44d   :  { %v1951_v47 = vpack.c.bf16 %v1950_v45, %v1950_v45  ;;  %v4072_v45 = vld [vmem:[%s6036_s1 + $0xc] sm:$0xf0]  ;;  %2502 = vmatpush.bf16.msra.mxu2 %v3726_v55 }
 0x44e   :  { %2489 = vmatpush.bf16.msra.mxu1 %v3722_v49 }
 0x44f   :  { %1952 = vst [vmem:[#allocation4 + $0x14] sm:$0xf] %v1951_v47  ;;  %2160 = vmatmul.bf16.vlgmr.msra.gmra.mxu0 %v1951_v47  ;;  %2173 = vmatmul.bf16.vlgmr.msrb.gmra.mxu1 %v1951_v47 }
 0x450   :  { %2186 = vmatmul.bf16.vlgmr.msrb.gmra.mxu2 %v1951_v47  ;;  %2199 = vmatmul.bf16.vlgmr.msra.gmra.mxu3 %v1951_v47  ;;  %v3670_v47 = vor.u32 %v4072_v45, %v3669_v37  ;;  %v4109_v37 = vld [vmem:[%s6040_s4 + $0x18] sm:$0xff]  ;;  %v1958_v45 = vunpack.c.l.bf16 %v5909_v61 }
 0x451   :  { %2475 = vmatpush.bf16.msrb.mxu0 %v3734_v57  ;;  %v4113_v57 = vld [vmem:[%s6040_s4 + $0x38] sm:$0xff]  ;;  %2516 = vmatpush.bf16.msrb.mxu3 %v3714_v12 }
 0x452   :  { %2490 = vmatpush.bf16.msra.mxu1 %v3706_v5 }
 0x455   :  { %2476 = vmatpush.bf16.msrb.mxu0 %v3718_v9  ;;  %v3710_v9 = vor.u32 %v4081_v7, %v3709_v0  ;;  %2517 = vmatpush.bf16.msrb.mxu3 %v3698_v17 }
 0x456   :  { %2491 = vmatpush.bf16.msra.mxu1 %v3690_v15 }
 0x457   :  { %2503 = vmatpush.bf16.msra.mxu2 %v3710_v9 }
 0x459   :  { %2477 = vmatpush.bf16.msrb.mxu0 %v3702_v19  ;;  %2518 = vmatpush.bf16.msrb.mxu3 %v3682_v38 }
 0x45b   :  { %2504 = vmatpush.bf16.msra.mxu2 %v3694_v21 }
 0x45d   :  { %2478 = vmatpush.bf16.msrb.mxu0 %v3686_v32  ;;  %v3674_v32 = vor.u32 %v4070_v23, %v3671_v24 }
 0x45f   :  { %2492 = vmatpush.bf16.msra.mxu1 %v3674_v32  ;;  %2505 = vmatpush.bf16.msra.mxu2 %v3678_v35  ;;  %v3666_v35 = vld [vmem:[%s6038_s0 + $0x78] sm:$0xff] }
 0x461   :  { %2479 = vmatpush.bf16.msrb.mxu0 %v3670_v47 }
 0x465   :  { %2695 = vmatpush.bf16.msra.mxu0 %v4113_v57 }
 0x469   :  { %2696 = vmatpush.bf16.msra.mxu0 %v4112_v31 }
 0x46d   :  { %2697 = vmatpush.bf16.msra.mxu0 %v4111_v22 }
 0x471   :  { %2698 = vmatpush.bf16.msra.mxu0 %v4110_v40  ;;  %v2279_v40 = vunpack.c.h.bf16 %v3666_v35 }
 0x475   :  { %2699 = vmatpush.bf16.msra.mxu0 %v4109_v37 }
 0x479   :  { %2700 = vmatpush.bf16.msra.mxu0 %v4108_v43 }
 0x4cc   :  { %v2161_v53 = vpop.f32.mrf.mxu0  ;;  %v2174_v54 = vpop.f32.mrf.mxu1 }
 0x4cd   :  { %v2204_v58 = vadd.f32 %v2161_v53, %v1956_v44  ;;  %v2205_v59 = vadd.f32 %v2174_v54, %v1957_v1  ;;  %v4107_v54 = vld [vmem:[%s6040_s4 + $0x8] sm:$0xff] }
 0x4ce   :  { %2701 = vmatpush.bf16.msra.mxu0 %v4107_v54 }
 0x4cf   :  { %v3662_v2 = vmul.f32 -1.442695, %v2204_v58  ;;  %v3663_v4 = vmul.f32 -1.442695, %v2205_v59 }
 0x4d1   :  { %4211 = vpow2.f32 %v3662_v2  ;;  %v4106_v2 = vld [vmem:[%s6040_s4] sm:$0xff] }
 0x4d2   :  { %4213 = vpow2.f32 %v3663_v4  ;;  %2702 = vmatpush.bf16.msra.mxu0 %v4106_v2 }
 0x4d3   :  { %v2187_v19 = vpop.f32.mrf.mxu2  ;;  %v2200_v20 = vpop.f32.mrf.mxu3 }
 0x4d4   :  { %v2207_v25 = vadd.f32 %v2200_v20, %v1959_v8  ;;  %v2163_v26 = vpop.f32.mrf.mxu0  ;;  %v2176_v27 = vpop.f32.mrf.mxu1  ;;  %v2206_v49 = vadd.f32 %v2187_v19, %v1958_v45 }
 0x4d5   :  { %v4104_v26 = vld [vmem:[#allocation4 + $0x10] sm:$0xff] }
 0x4d6   :  { %v3664_v34 = vmul.f32 -1.442695, %v2207_v25  ;;  %v4103_v25 = vld [vmem:[#allocation4 + $0x8] sm:$0xff]  ;;  %v3665_v27 = vld [vmem:[%s6038_s0 + $0x70] sm:$0xff] }
 0x4d7   :  { %v4212_v36 = vpop.eup %4211  ;;  %v2276_v29 = vunpack.c.l.bf16 %v3665_v27  ;;  %v2277_v3 = vunpack.c.h.bf16 %v3665_v27 }
 0x4d8   :  { %v4214_v60 = vpop.eup %4213  ;;  %v2211_v41 = vadd.f32 1.0, %v4212_v36  ;;  %4215 = vpow2.f32 %v3664_v34 }
 0x4d9   :  { %v2230_v42 = vadd.f32 1.0, %v4214_v60 }
 0x4da   :  { %4217 = vrcp.f32 %v2211_v41  ;;  %v2223_v56 = vand.u32 2147483648, %v2211_v41  ;;  %v2221_v59 = vand.u32 2147483647, %v2211_v41  ;;  %vm2217_vm10 = vweird.f32 %v2211_v41 }
 0x4db   :  { %4219 = vrcp.f32 %v2230_v42  ;;  %v2189_v44 = vpop.f32.mrf.mxu2  ;;  %v2202_v1 = vpop.f32.mrf.mxu3  ;;  %v2242_v57 = vand.u32 2147483648, %v2230_v42  ;;  %v2240_v62 = vand.u32 2147483647, %v2230_v42  ;;  %vm2236_vm11 = vweird.f32 %v2230_v42 }
 0x4dc   :  { %v2224_v4 = vor.u32 1.1754944e-38, %v2223_v56  ;;  %vm2222_vm14 = vcmp.eq.f32.partialorder %v2221_v59, 8.507059e+37 }
 0x4dd   :  { %v2243_v8 = vor.u32 1.1754944e-38, %v2242_v57  ;;  %vm2241_vm15 = vcmp.eq.f32.partialorder %v2240_v62, 8.507059e+37 }
 0x4de   :  { %v4216_v47 = vpop.eup %4215 }
 0x4df   :  { %v2250_v6 = vadd.f32 1.0, %v4216_v47 }
 0x4e0   :  { %v4218_v48 = vpop.eup %4217 }
 0x4e1   :  { %v4220_v51 = vpop.eup %4219  ;;  %v2213_v46 = vmul.f32 %v4218_v48, %v2211_v41  ;;  %4221 = vrcp.f32 %v2250_v6  ;;  %vm2218_vm8 = vweird.f32 %v4218_v48  ;;  %v2262_v14 = vand.u32 2147483648, %v2250_v6 }
 0x4e2   :  { %v2232_v52 = vmul.f32 %v4220_v51, %v2230_v42  ;;  %4223 = vtanh.f32 %v2206_v49  ;;  %vm2237_vm9 = vweird.f32 %v4220_v51  ;;  %vm2219_vm12 = vmor %vm2217_vm10, %vm2218_vm8  ;;  %vm2256_vm1 = vweird.f32 %v2250_v6 }
 0x4e3   :  { %v2214_v53 = vsub.f32 1.0, %v2213_v46  ;;  %vm2238_vm13 = vmor %vm2236_vm11, %vm2237_vm9  ;;  %v2260_v19 = vand.u32 2147483647, %v2250_v6  ;;  %v2263_v21 = vor.u32 1.1754944e-38, %v2262_v14  ;;  %v2278_v46 = vunpack.c.l.bf16 %v3666_v35 }
 0x4e4   :  { %v2233_v55 = vsub.f32 1.0, %v2232_v52 }
 0x4e5   :  { %v2215_v58 = vmul.f32 %v4218_v48, %v2214_v53  ;;  %vm2261_vm3 = vcmp.eq.f32.partialorder %v2260_v19, 8.507059e+37 }
 0x4e6   :  { %v2234_v61 = vmul.f32 %v4220_v51, %v2233_v55 }
 0x4e7   :  { %v4222_v63 = vpop.eup %4221  ;;  %v2216_v0 = vadd.f32 %v4218_v48, %v2215_v58 }
 0x4e8   :  { %v2235_v5 = vadd.f32 %v4220_v51, %v2234_v61  ;;  %v2252_v7 = vmul.f32 %v4222_v63, %v2250_v6  ;;  %v4224_v10 = vpop.eup %4223  ;;  %vm2257_vm0 = vweird.f32 %v4222_v63 }
 0x4e9   :  { %v2220_v9 = vsel %vm2219_vm12, %v4218_v48, %v2216_v0  ;;  %vm2258_vm2 = vmor %vm2256_vm1, %vm2257_vm0  ;;  %v6001_v48 = vld [vmem:[%s6041_s5] ss:$0 sm:$0xff] }
 0x4ea   :  { %v2225_v11 = vsel %vm2222_vm14, %v2224_v4, %v2220_v9  ;;  %v2239_v31 = vsel %vm2238_vm13, %v4220_v51, %v2235_v5  ;;  %v2253_v12 = vsub.f32 1.0, %v2252_v7 }
 0x4eb   :  { %v2244_v13 = vsel %vm2241_vm15, %v2243_v8, %v2239_v31  ;;  %v2267_v28 = vmul.f32 %v4224_v10, %v2225_v11 }
 0x4ec   :  { %v2266_v50 = vmul.f32 %v2244_v13, %v5759_v39  ;;  %v2254_v15 = vmul.f32 %v4222_v63, %v2253_v12  ;;  %v4102_v39 = vld [vmem:[#allocation4] sm:$0xff] }
 0x4ee   :  { %v5989_v16 = vadd.f32 %v2267_v28, %v2266_v50  ;;  %v2255_v18 = vadd.f32 %v4222_v63, %v2254_v15 }
 0x4f0   :  { %4225 = vtanh.f32 %v5989_v16  ;;  %v2259_v20 = vsel %vm2258_vm2, %v4222_v63, %v2255_v18 }
 0x4f1   :  { %v2264_v22 = vsel %vm2261_vm3, %v2263_v21, %v2259_v20 }
 0x4f6   :  { %v4226_v17 = vpop.eup %4225 }
 0x4f7   :  { %v2270_v23 = vmul.f32 %v4226_v17, %v2264_v22 }
 0x4f9   :  { %v2271_v24 = vpack.c.bf16 %v2270_v23, %v2270_v23 }
 0x4fb   :  { %2272 = vst [vmem:[#allocation4 + $0x18] sm:$0xf] %v2271_v24  ;;  %2480 = vmatmul.bf16.vlgmr.msrb.gmra.mxu0 %v2271_v24  ;;  %2493 = vmatmul.bf16.vlgmr.msra.gmra.mxu1 %v2271_v24 }
 0x4fc   :  { %2506 = vmatmul.bf16.vlgmr.msra.gmra.mxu2 %v2271_v24  ;;  %2519 = vmatmul.bf16.vlgmr.msrb.gmra.mxu3 %v2271_v24 }
 0x50b   :  { %2703 = vmatmul.bf16.vlgmr.msra.gmra.mxu0 %v4102_v39 }
 0x51b   :  { %2708 = vmatmul.bf16.gmra.mxu0 %v4103_v25 }
 0x52b   :  { %2713 = vmatmul.bf16.gmra.mxu0 %v4104_v26 }
 0x578   :  { %v2481_v30 = vpop.f32.mrf.mxu0  ;;  %v2494_v32 = vpop.f32.mrf.mxu1 }
 0x579   :  { %v2524_v33 = vadd.f32 %v2481_v30, %v2276_v29  ;;  %v2525_v34 = vadd.f32 %v2494_v32, %v2277_v3 }
 0x57b   :  { %v3795_v36 = vmul.f32 -1.442695, %v2524_v33  ;;  %v3796_v38 = vmul.f32 -1.442695, %v2525_v34 }
 0x57d   :  { %4227 = vpow2.f32 %v3795_v36 }
 0x57e   :  { %4229 = vpow2.f32 %v3796_v38 }
 0x57f   :  { %v2507_v60 = vpop.f32.mrf.mxu2  ;;  %v2520_v41 = vpop.f32.mrf.mxu3 }
 0x580   :  { %v2527_v42 = vadd.f32 %v2520_v41, %v2279_v40  ;;  %v2483_v44 = vpop.f32.mrf.mxu0  ;;  %v2496_v1 = vpop.f32.mrf.mxu1  ;;  %v2526_v57 = vadd.f32 %v2507_v60, %v2278_v46 }
 0x582   :  { %v3797_v37 = vmul.f32 -1.442695, %v2527_v42 }
 0x583   :  { %v4228_v45 = vpop.eup %4227 }
 0x584   :  { %v4230_v47 = vpop.eup %4229  ;;  %v2531_v6 = vadd.f32 1.0, %v4228_v45  ;;  %4231 = vpow2.f32 %v3797_v37 }
 0x585   :  { %v2550_v43 = vadd.f32 1.0, %v4230_v47 }
 0x586   :  { %4233 = vrcp.f32 %v2531_v6  ;;  %v2541_v0 = vand.u32 2147483647, %v2531_v6  ;;  %v2543_v2 = vand.u32 2147483648, %v2531_v6  ;;  %vm2537_vm6 = vweird.f32 %v2531_v6 }
 0x587   :  { %4235 = vrcp.f32 %v2550_v43  ;;  %v2509_v49 = vpop.f32.mrf.mxu2  ;;  %v2522_v51 = vpop.f32.mrf.mxu3  ;;  %v2562_v5 = vand.u32 2147483648, %v2550_v43  ;;  %v2560_v10 = vand.u32 2147483647, %v2550_v43  ;;  %vm2556_vm7 = vweird.f32 %v2550_v43 }
 0x588   :  { %v2704_v52 = vpop.f32.mrf.mxu0  ;;  %v2544_v12 = vor.u32 1.1754944e-38, %v2543_v2  ;;  %vm2542_vm10 = vcmp.eq.f32.partialorder %v2541_v0, 8.507059e+37 }
 0x589   :  { %v2705_v53 = vadd.f32 %v6001_v48, %v2704_v52  ;;  %v2563_v50 = vor.u32 1.1754944e-38, %v2562_v5  ;;  %vm2561_vm11 = vcmp.eq.f32.partialorder %v2560_v10, 8.507059e+37 }
 0x58a   :  { %v4232_v54 = vpop.eup %4231 }
 0x58b   :  { %v2570_v55 = vadd.f32 1.0, %v4232_v54  ;;  %2724 = vst [vmem:[%s6042_s6] sm:$0xff] %v2705_v53 }
 0x58c   :  { %v4234_v56 = vpop.eup %4233 }
 0x58d   :  { %v4236_v58 = vpop.eup %4235  ;;  %v2533_v59 = vmul.f32 %v4234_v56, %v2531_v6  ;;  %4237 = vrcp.f32 %v2570_v55  ;;  %vm2538_vm4 = vweird.f32 %v4234_v56  ;;  %v2582_v27 = vand.u32 2147483648, %v2570_v55 }
 0x58e   :  { %v2552_v61 = vmul.f32 %v4236_v58, %v2550_v43  ;;  %4239 = vtanh.f32 %v2526_v57  ;;  %vm2557_vm5 = vweird.f32 %v4236_v58  ;;  %vm2539_vm8 = vmor %vm2537_vm6, %vm2538_vm4  ;;  %vm2576_vm13 = vweird.f32 %v2570_v55 }
 0x58f   :  { %v2534_v62 = vsub.f32 1.0, %v2533_v59  ;;  %vm2558_vm9 = vmor %vm2556_vm7, %vm2557_vm5  ;;  %v2580_v29 = vand.u32 2147483647, %v2570_v55  ;;  %v2583_v30 = vor.u32 1.1754944e-38, %v2582_v27 }
 0x590   :  { %v2553_v63 = vsub.f32 1.0, %v2552_v61  ;;  %v2706_v4 = vpop.f32.mrf.mxu0 }
 0x591   :  { %v2535_v7 = vmul.f32 %v4234_v56, %v2534_v62  ;;  %v2707_v8 = vadd.f32 %v6001_v48, %v2706_v4  ;;  %vm2581_vm15 = vcmp.eq.f32.partialorder %v2580_v29, 8.507059e+37 }
 0x592   :  { %v2554_v9 = vmul.f32 %v4236_v58, %v2553_v63 }
 0x593   :  { %v4238_v11 = vpop.eup %4237  ;;  %v2536_v31 = vadd.f32 %v4234_v56, %v2535_v7  ;;  %2725 = vst [vmem:[%s6042_s6 + $0x8] sm:$0xff] %v2707_v8 }
 0x594   :  { %v2555_v13 = vadd.f32 %v4236_v58, %v2554_v9  ;;  %v2572_v28 = vmul.f32 %v4238_v11, %v2570_v55  ;;  %v4240_v18 = vpop.eup %4239  ;;  %vm2577_vm12 = vweird.f32 %v4238_v11 }
 0x595   :  { %v2540_v15 = vsel %vm2539_vm8, %v4234_v56, %v2536_v31  ;;  %vm2578_vm14 = vmor %vm2576_vm13, %vm2577_vm12 }
 0x596   :  { %v2545_v14 = vsel %vm2542_vm10, %v2544_v12, %v2540_v15  ;;  %v2559_v19 = vsel %vm2558_vm9, %v4236_v58, %v2555_v13  ;;  %v2573_v20 = vsub.f32 1.0, %v2572_v28 }
 0x597   :  { %v2564_v21 = vsel %vm2561_vm11, %v2563_v50, %v2559_v19  ;;  %v2587_v17 = vmul.f32 %v4240_v18, %v2545_v14 }
 0x598   :  { %v2586_v22 = vmul.f32 %v2564_v21, %v5989_v16  ;;  %v2574_v23 = vmul.f32 %v4238_v11, %v2573_v20  ;;  %v2709_v24 = vpop.f32.mrf.mxu0 }
 0x599   :  { %v2710_v39 = vadd.f32 %v6001_v48, %v2709_v24 }
 0x59a   :  { %v2588_v25 = vadd.f32 %v2587_v17, %v2586_v22  ;;  %v2575_v26 = vadd.f32 %v4238_v11, %v2574_v23 }
 0x59b   :  { %2726 = vst [vmem:[%s6042_s6 + $0x10] sm:$0xff] %v2710_v39 }
 0x59c   :  { %4241 = vtanh.f32 %v2588_v25  ;;  %v2579_v3 = vsel %vm2578_vm14, %v4238_v11, %v2575_v26 }
 0x59d   :  { %v2584_v34 = vsel %vm2581_vm15, %v2583_v30, %v2579_v3 }
 0x5a0   :  { %v2711_v32 = vpop.f32.mrf.mxu0 }
 0x5a1   :  { %v2712_v16 = vadd.f32 %v6001_v48, %v2711_v32 }
 0x5a2   :  { %v4242_v33 = vpop.eup %4241 }
 0x5a3   :  { %v2590_v35 = vmul.f32 %v4242_v33, %v2584_v34  ;;  %2727 = vst [vmem:[%s6042_s6 + $0x18] sm:$0xff] %v2712_v16 }
 0x5a5   :  { %v2591_v36 = vpack.c.bf16 %v2590_v35, %v2590_v35 }
 0x5a7   :  { %2592 = vst [vmem:[#allocation4 + $0x1c] sm:$0xf] %v2591_v36 }
 0x5a8   :  { %v2714_v38 = vpop.f32.mrf.mxu0 }
 0x5a9   :  { %v2715_v40 = vadd.f32 %v6001_v48, %v2714_v38 }
 0x5ab   :  { %2728 = vst [vmem:[%s6042_s6 + $0x20] sm:$0xff] %v2715_v40 }
 0x5ae   :  { %v4105_v60 = vld [vmem:[#allocation4 + $0x18] sm:$0xff] }
 0x5af   :  { %2718 = vmatmul.bf16.gmra.mxu0 %v4105_v60 }
 0x5b0   :  { %v2716_v41 = vpop.f32.mrf.mxu0 }
 0x5b1   :  { %v2717_v42 = vadd.f32 %v6001_v48, %v2716_v41 }
 0x5b3   :  { %2729 = vst [vmem:[%s6042_s6 + $0x28] sm:$0xff] %v2717_v42 }
 0x62c   :  { %v2719_v44 = vpop.f32.mrf.mxu0 }
 0x62d   :  { %v2720_v1 = vadd.f32 %v6001_v48, %v2719_v44 }
 0x62f   :  { %2730 = vst [vmem:[%s6042_s6 + $0x30] sm:$0xff] %v2720_v1 }
 0x634   :  { %v2721_v37 = vpop.f32.mrf.mxu0 }
 0x635   :  { %v2722_v45 = vadd.f32 %v6001_v48, %v2721_v37 }
 0x637   :  { %2731 = vst [vmem:[%s6042_s6 + $0x38] sm:$0xff] %v2722_v45 }

</bundles_post_ra>
